<compile_context>
chip_gen: v7x
topology: tpu7x:2x2x1
jax: 0.10.0
libtpu: 0.0.40
codegen_flags: <defaults>
</compile_context>

<pallas_src>
import math

import numpy as np
import jax
import jax.numpy as jnp
from jax.experimental import pallas as pl
from jax.experimental.pallas import tpu as pltpu

# Static network geometry (CIFAR-sized LeNet).
_H = _W = 32
_GRID = _H * _W          # 1024: flattened 32x32 grid, lives on the lane axis
_CPAD = 8                # input channels padded to one f32 sublane tile
_KP = 25 * _CPAD         # 200: im2col contraction dim (5x5 window x 8 channels)
_NCLS = 10


# ----------------------------- fused kernel -----------------------------

def _lenet_kernel(x_ref, w1_ref, b1_ref, w2_ref, b2_ref, sel_ref,
                  wf1_ref, bf1_ref, wf2_ref, bf2_ref, wf3_ref, bf3_ref,
                  o_ref):
    f32, bf16 = jnp.float32, jnp.bfloat16
    x = x_ref[0]                                              # (8, 1280) f32

    # ---- conv1 (3->6, 5x5) as one (8,200)@(200,1024) MXU matmul ------------
    offs1 = [kh * _W + kw for kh in range(5) for kw in range(5)]
    p1 = jnp.concatenate([x[:, o:o + _GRID] for o in offs1], axis=0)  # (200,1024)
    z1 = jnp.dot(w1_ref[...], p1.astype(bf16), preferred_element_type=f32)
    a1 = jnp.maximum(z1 + b1_ref[...], 0.0)                   # (8, 1024)
    # a1[c, 32*h + w] = relu(conv1)[c, h, w], valid for h, w < 28

    # ---- maxpool1 2x2/2 (down-sampling deferred into conv2's offsets) ------
    a1p = jnp.concatenate([a1, jnp.zeros((_CPAD, 128), f32)], axis=1)  # (8,1152)
    m1 = a1p[:, 0:_GRID]
    for d in (1, _W, _W + 1):
        m1 = jnp.maximum(m1, a1p[:, d:d + _GRID])             # (8, 1024)
    # pooled1[c, i, j] = m1[c, 64*i + 2*j], valid for i, j < 14

    # ---- conv2 (6->16, 5x5) on the pooled grid ------------------------------
    m1p = jnp.concatenate([m1, jnp.zeros((_CPAD, 384), f32)], axis=1)  # (8,1408)
    offs2 = [64 * kh + 2 * kw for kh in range(5) for kw in range(5)]
    p2 = jnp.concatenate([m1p[:, o:o + _GRID] for o in offs2], axis=0)  # (200,1024)
    z2 = jnp.dot(w2_ref[...], p2.astype(bf16), preferred_element_type=f32)
    a2 = jnp.maximum(z2 + b2_ref[...], 0.0)                   # (16, 1024)
    # a2[c, 64*oh + 2*ow] = relu(conv2)[c, oh, ow], valid for oh, ow < 10

    # ---- maxpool2 2x2/2 ------------------------------------------------------
    a2p = jnp.concatenate([a2, jnp.zeros((16, 128), f32)], axis=1)  # (16,1152)
    m2 = a2p[:, 0:_GRID]
    for d in (2, 64, 66):
        m2 = jnp.maximum(m2, a2p[:, d:d + _GRID])             # (16, 1024)
    # pooled2[c, ph, pw] = m2[c, 128*ph + 4*pw], valid for ph, pw < 5

    # ---- compact the 25 valid lanes per channel with a 0/1 selection matmul -
    compact = jnp.dot(m2[:, :640].astype(bf16), sel_ref[...],
                      preferred_element_type=f32)             # (16, 128): [c, 5*ph+pw]

    # ---- fc1 (400->120): joint contraction over channels (sublanes) x pos ---
    h = bf1_ref[...]                                          # (1, 128) f32
    for c in range(16):
        h = h + jnp.dot(compact[c:c + 1, :].astype(bf16), wf1_ref[c],
                        preferred_element_type=f32)
    h = jnp.maximum(h, 0.0)

    # ---- fc2 (120->84) -> fc3 (84->10); padded lanes stay exactly zero ------
    h = jnp.maximum(
        jnp.dot(h.astype(bf16), wf2_ref[...], preferred_element_type=f32)
        + bf2_ref[...], 0.0)
    out = (jnp.dot(h.astype(bf16), wf3_ref[...], preferred_element_type=f32)
           + bf3_ref[...])
    o_ref[0] = out.astype(o_ref.dtype)                        # lane-dense (1,128) store


# ----------------------------- wrapper -----------------------------

def _compiler_params():
    cp_cls = (getattr(pltpu, "CompilerParams", None)
              or getattr(pltpu, "TPUCompilerParams", None))
    if cp_cls is None:
        return None
    return cp_cls(dimension_semantics=("parallel",))


def net_forward(prep, x):
    B, C, H, W = x.shape
    assert (C, H, W) == (3, 32, 32), "Net requires 3x32x32 (CIFAR) inputs."
    # Only wrapper-side glue: flatten the spatial grid onto lanes + zero-pad.
    xp = jnp.pad(x.reshape(B, 3, _GRID).astype(jnp.float32),
                 ((0, 0), (0, _CPAD - 3), (0, 256)))           # (B, 8, 1280)
    out = pl.pallas_call(
        _lenet_kernel,
        out_shape=jax.ShapeDtypeStruct((B, 1, 128), jnp.float32),
        grid=(B,),
        in_specs=[
            pl.BlockSpec((1, _CPAD, _GRID + 256), lambda b: (b, 0, 0)),
            pl.BlockSpec((_CPAD, _KP), lambda b: (0, 0)),
            pl.BlockSpec((_CPAD, 1), lambda b: (0, 0)),
            pl.BlockSpec((16, _KP), lambda b: (0, 0)),
            pl.BlockSpec((16, 1), lambda b: (0, 0)),
            pl.BlockSpec((640, 128), lambda b: (0, 0)),
            pl.BlockSpec((16, 128, 128), lambda b: (0, 0, 0)),
            pl.BlockSpec((1, 128), lambda b: (0, 0)),
            pl.BlockSpec((128, 128), lambda b: (0, 0)),
            pl.BlockSpec((1, 128), lambda b: (0, 0)),
            pl.BlockSpec((128, 128), lambda b: (0, 0)),
            pl.BlockSpec((1, 128), lambda b: (0, 0)),
        ],
        out_specs=pl.BlockSpec((1, 1, 128), lambda b: (b, 0, 0)),
        compiler_params=_compiler_params(),
    )(xp, prep["w1"], prep["b1"], prep["w2"], prep["b2"], prep["sel"],
      prep["wf1"], prep["bf1"], prep["wf2"], prep["bf2"],
      prep["wf3"], prep["bf3"])
    return out[:, 0, :_NCLS]


# ----------------------------- parameters -----------------------------

def init_params(key):
    # PyTorch-default-like U(-1/sqrt(fan_in), 1/sqrt(fan_in)).
    def uniform(k, shape, fan_in):
        bound = 1.0 / math.sqrt(fan_in)
        return jax.random.uniform(k, shape, jnp.float32, -bound, bound)

    ks = jax.random.split(key, 10)
    return {
        "conv1_w": uniform(ks[0], (6, 3, 5, 5), 3 * 5 * 5),
        "conv1_b": uniform(ks[1], (6,), 3 * 5 * 5),
        "conv2_w": uniform(ks[2], (16, 6, 5, 5), 6 * 5 * 5),
        "conv2_b": uniform(ks[3], (16,), 6 * 5 * 5),
        "fc1_w": uniform(ks[4], (120, 400), 400),   # PyTorch (out, in)
        "fc1_b": uniform(ks[5], (120,), 400),
        "fc2_w": uniform(ks[6], (84, 120), 120),
        "fc2_b": uniform(ks[7], (84,), 120),
        "fc3_w": uniform(ks[8], (10, 84), 84),
        "fc3_b": uniform(ks[9], (10,), 84),
    }


def prepare_params(p):
    """One-time re-layout: bf16 MXU weights, kernel-friendly orderings, zero pads."""
    f32, bf16 = jnp.float32, jnp.bfloat16

    def pad_to(a, shape):
        return jnp.pad(a, [(0, t - s) for s, t in zip(a.shape, shape)])

    # Conv weights -> (OC, 200) with column index (kh*5 + kw)*8 + c.
    w1 = pad_to(p["conv1_w"].transpose(0, 2, 3, 1), (_CPAD, 5, 5, _CPAD))
    w2 = pad_to(p["conv2_w"].transpose(0, 2, 3, 1), (16, 5, 5, _CPAD))
    # fc1 weight -> (16, 128, 128): [channel, pooled position (ph*5+pw), out unit].
    wf1 = pad_to(p["fc1_w"].T.reshape(16, 25, 120), (16, 128, 128))
    # 0/1 selection: pooled2 lane 128*ph + 4*pw  ->  compact lane 5*ph + pw.
    sel = np.zeros((640, 128), np.float32)
    for ph in range(5):
        for pw in range(5):
            sel[128 * ph + 4 * pw, 5 * ph + pw] = 1.0

    return {
        "w1": w1.reshape(_CPAD, _KP).astype(bf16),
        "b1": pad_to(p["conv1_b"], (_CPAD,)).reshape(_CPAD, 1).astype(f32),
        "w2": w2.reshape(16, _KP).astype(bf16),
        "b2": p["conv2_b"].reshape(16, 1).astype(f32),
        "sel": jnp.asarray(sel, bf16),
        "wf1": wf1.astype(bf16),
        "bf1": pad_to(p["fc1_b"], (128,)).reshape(1, 128).astype(f32),
        "wf2": pad_to(p["fc2_w"].T, (128, 128)).astype(bf16),
        "bf2": pad_to(p["fc2_b"], (128,)).reshape(1, 128).astype(f32),
        "wf3": pad_to(p["fc3_w"].T, (128, 128)).astype(bf16),
        "bf3": pad_to(p["fc3_b"], (128,)).reshape(1, 128).astype(f32),
    }


# ----------------------------- pure-JAX reference -----------------------------

def net_reference(p, x):
    dn = ("NCHW", "OIHW", "NCHW")
    h = jax.lax.conv_general_dilated(x, p["conv1_w"], (1, 1), "VALID",
                                     dimension_numbers=dn)
    h = jax.nn.relu(h + p["conv1_b"].reshape(1, -1, 1, 1))
    h = jax.lax.reduce_window(h, -jnp.inf, jax.lax.max,
                              (1, 1, 2, 2), (1, 1, 2, 2), "VALID")
    h = jax.lax.conv_general_dilated(h, p["conv2_w"], (1, 1), "VALID",
                                     dimension_numbers=dn)
    h = jax.nn.relu(h + p["conv2_b"].reshape(1, -1, 1, 1))
    h = jax.lax.reduce_window(h, -jnp.inf, jax.lax.max,
                              (1, 1, 2, 2), (1, 1, 2, 2), "VALID")
    h = h.reshape(h.shape[0], 16 * 5 * 5)
    h = jax.nn.relu(h @ p["fc1_w"].T + p["fc1_b"])
    h = jax.nn.relu(h @ p["fc2_w"].T + p["fc2_b"])
    return h @ p["fc3_w"].T + p["fc3_b"]


if __name__ == "__main__":
    key = jax.random.PRNGKey(0)
    pkey, xkey = jax.random.split(key)
    params = init_params(pkey)
    prep = prepare_params(params)
    # CIFAR-sized input required by the 16*5*5 flatten: (batch=2, 3, 32, 32).
    x = jax.random.normal(xkey, (2, 3, 32, 32), jnp.float32)

    fwd = jax.jit(net_forward)
    out = jax.block_until_ready(fwd(prep, x))
    assert out.shape == (2, 10) and out.dtype == jnp.float32

    ref = jax.block_until_ready(net_reference(params, x))
    assert bool(jnp.allclose(out, ref, atol=5e-2, rtol=5e-2)), (
        "mismatch vs reference, max abs err = "
        f"{float(jnp.max(jnp.abs(out - ref)))}")
    print("KERNEL_OK")
</pallas_src>

<mosaic_0001>
module attributes {stable_mosaic.version = 11 : i64} {
  func.func @_lenet_kernel(%arg0: i32, %arg1: memref<1x8x1280xf32, #tpu.memory_space<vmem>>, %arg2: memref<8x200xbf16, #tpu.memory_space<vmem>>, %arg3: memref<8x1xf32, #tpu.memory_space<vmem>>, %arg4: memref<16x200xbf16, #tpu.memory_space<vmem>>, %arg5: memref<16x1xf32, #tpu.memory_space<vmem>>, %arg6: memref<640x128xbf16, #tpu.memory_space<vmem>>, %arg7: memref<16x128x128xbf16, #tpu.memory_space<vmem>>, %arg8: memref<1x128xf32, #tpu.memory_space<vmem>>, %arg9: memref<128x128xbf16, #tpu.memory_space<vmem>>, %arg10: memref<1x128xf32, #tpu.memory_space<vmem>>, %arg11: memref<128x128xbf16, #tpu.memory_space<vmem>>, %arg12: memref<1x128xf32, #tpu.memory_space<vmem>>, %arg13: memref<1x1x128xf32, #tpu.memory_space<vmem>>) attributes {dimension_semantics = [#tpu.dimension_semantics<parallel>], iteration_bounds = array<i64: 2>, scalar_prefetch = 0 : i64, scratch_operands = 0 : i64, tpu.core_type = #tpu.core_type<tc>, window_params = [{transform_indices = @transform_0, window_bounds = array<i64: 1, 8, 1280>}, {pipeline_mode = #tpu.pipeline_mode<synchronous>, transform_indices = @transform_1, window_bounds = array<i64: 8, 200>}, {pipeline_mode = #tpu.pipeline_mode<synchronous>, transform_indices = @transform_2, window_bounds = array<i64: 8, 1>}, {pipeline_mode = #tpu.pipeline_mode<synchronous>, transform_indices = @transform_3, window_bounds = array<i64: 16, 200>}, {pipeline_mode = #tpu.pipeline_mode<synchronous>, transform_indices = @transform_4, window_bounds = array<i64: 16, 1>}, {pipeline_mode = #tpu.pipeline_mode<synchronous>, transform_indices = @transform_5, window_bounds = array<i64: 640, 128>}, {pipeline_mode = #tpu.pipeline_mode<synchronous>, transform_indices = @transform_6, window_bounds = array<i64: 16, 128, 128>}, {pipeline_mode = #tpu.pipeline_mode<synchronous>, transform_indices = @transform_7, window_bounds = array<i64: 1, 128>}, {pipeline_mode = #tpu.pipeline_mode<synchronous>, transform_indices = @transform_8, window_bounds = array<i64: 128, 128>}, {pipeline_mode = #tpu.pipeline_mode<synchronous>, transform_indices = @transform_9, window_bounds = array<i64: 1, 128>}, {pipeline_mode = #tpu.pipeline_mode<synchronous>, transform_indices = @transform_10, window_bounds = array<i64: 128, 128>}, {pipeline_mode = #tpu.pipeline_mode<synchronous>, transform_indices = @transform_11, window_bounds = array<i64: 1, 128>}, {transform_indices = @transform_12, window_bounds = array<i64: 1, 1, 128>}]} {
    %c0 = arith.constant 0 : index
    %c0_0 = arith.constant 0 : index
    %c0_1 = arith.constant 0 : index
    %0 = vector.load %arg1[%c0, %c0_0, %c0_1] : memref<1x8x1280xf32, #tpu.memory_space<vmem>>, vector<1x8x1280xf32>
    %1 = vector.shape_cast %0 : vector<1x8x1280xf32> to vector<8x1280xf32>
    %2 = vector.extract_strided_slice %1 {offsets = [0, 0], sizes = [8, 1024], strides = [1, 1]} : vector<8x1280xf32> to vector<8x1024xf32>
    %3 = vector.extract_strided_slice %1 {offsets = [0, 1], sizes = [8, 1024], strides = [1, 1]} : vector<8x1280xf32> to vector<8x1024xf32>
    %4 = vector.extract_strided_slice %1 {offsets = [0, 2], sizes = [8, 1024], strides = [1, 1]} : vector<8x1280xf32> to vector<8x1024xf32>
    %5 = vector.extract_strided_slice %1 {offsets = [0, 3], sizes = [8, 1024], strides = [1, 1]} : vector<8x1280xf32> to vector<8x1024xf32>
    %6 = vector.extract_strided_slice %1 {offsets = [0, 4], sizes = [8, 1024], strides = [1, 1]} : vector<8x1280xf32> to vector<8x1024xf32>
    %7 = vector.extract_strided_slice %1 {offsets = [0, 32], sizes = [8, 1024], strides = [1, 1]} : vector<8x1280xf32> to vector<8x1024xf32>
    %8 = vector.extract_strided_slice %1 {offsets = [0, 33], sizes = [8, 1024], strides = [1, 1]} : vector<8x1280xf32> to vector<8x1024xf32>
    %9 = vector.extract_strided_slice %1 {offsets = [0, 34], sizes = [8, 1024], strides = [1, 1]} : vector<8x1280xf32> to vector<8x1024xf32>
    %10 = vector.extract_strided_slice %1 {offsets = [0, 35], sizes = [8, 1024], strides = [1, 1]} : vector<8x1280xf32> to vector<8x1024xf32>
    %11 = vector.extract_strided_slice %1 {offsets = [0, 36], sizes = [8, 1024], strides = [1, 1]} : vector<8x1280xf32> to vector<8x1024xf32>
    %12 = vector.extract_strided_slice %1 {offsets = [0, 64], sizes = [8, 1024], strides = [1, 1]} : vector<8x1280xf32> to vector<8x1024xf32>
    %13 = vector.extract_strided_slice %1 {offsets = [0, 65], sizes = [8, 1024], strides = [1, 1]} : vector<8x1280xf32> to vector<8x1024xf32>
    %14 = vector.extract_strided_slice %1 {offsets = [0, 66], sizes = [8, 1024], strides = [1, 1]} : vector<8x1280xf32> to vector<8x1024xf32>
    %15 = vector.extract_strided_slice %1 {offsets = [0, 67], sizes = [8, 1024], strides = [1, 1]} : vector<8x1280xf32> to vector<8x1024xf32>
    %16 = vector.extract_strided_slice %1 {offsets = [0, 68], sizes = [8, 1024], strides = [1, 1]} : vector<8x1280xf32> to vector<8x1024xf32>
    %17 = vector.extract_strided_slice %1 {offsets = [0, 96], sizes = [8, 1024], strides = [1, 1]} : vector<8x1280xf32> to vector<8x1024xf32>
    %18 = vector.extract_strided_slice %1 {offsets = [0, 97], sizes = [8, 1024], strides = [1, 1]} : vector<8x1280xf32> to vector<8x1024xf32>
    %19 = vector.extract_strided_slice %1 {offsets = [0, 98], sizes = [8, 1024], strides = [1, 1]} : vector<8x1280xf32> to vector<8x1024xf32>
    %20 = vector.extract_strided_slice %1 {offsets = [0, 99], sizes = [8, 1024], strides = [1, 1]} : vector<8x1280xf32> to vector<8x1024xf32>
    %21 = vector.extract_strided_slice %1 {offsets = [0, 100], sizes = [8, 1024], strides = [1, 1]} : vector<8x1280xf32> to vector<8x1024xf32>
    %22 = vector.extract_strided_slice %1 {offsets = [0, 128], sizes = [8, 1024], strides = [1, 1]} : vector<8x1280xf32> to vector<8x1024xf32>
    %23 = vector.extract_strided_slice %1 {offsets = [0, 129], sizes = [8, 1024], strides = [1, 1]} : vector<8x1280xf32> to vector<8x1024xf32>
    %24 = vector.extract_strided_slice %1 {offsets = [0, 130], sizes = [8, 1024], strides = [1, 1]} : vector<8x1280xf32> to vector<8x1024xf32>
    %25 = vector.extract_strided_slice %1 {offsets = [0, 131], sizes = [8, 1024], strides = [1, 1]} : vector<8x1280xf32> to vector<8x1024xf32>
    %26 = vector.extract_strided_slice %1 {offsets = [0, 132], sizes = [8, 1024], strides = [1, 1]} : vector<8x1280xf32> to vector<8x1024xf32>
    %27 = tpu.concatenate %2, %3, %4, %5, %6, %7, %8, %9, %10, %11, %12, %13, %14, %15, %16, %17 in 0 : vector<8x1024xf32>, vector<8x1024xf32>, vector<8x1024xf32>, vector<8x1024xf32>, vector<8x1024xf32>, vector<8x1024xf32>, vector<8x1024xf32>, vector<8x1024xf32>, vector<8x1024xf32>, vector<8x1024xf32>, vector<8x1024xf32>, vector<8x1024xf32>, vector<8x1024xf32>, vector<8x1024xf32>, vector<8x1024xf32>, vector<8x1024xf32> -> vector<128x1024xf32>
    %28 = tpu.concatenate %18, %19, %20, %21, %22, %23, %24, %25, %26 in 0 : vector<8x1024xf32>, vector<8x1024xf32>, vector<8x1024xf32>, vector<8x1024xf32>, vector<8x1024xf32>, vector<8x1024xf32>, vector<8x1024xf32>, vector<8x1024xf32>, vector<8x1024xf32> -> vector<72x1024xf32>
    %29 = tpu.concatenate %27, %28 in 0 : vector<128x1024xf32>, vector<72x1024xf32> -> vector<200x1024xf32>
    %c0_2 = arith.constant 0 : index
    %c0_3 = arith.constant 0 : index
    %30 = vector.load %arg2[%c0_2, %c0_3] : memref<8x200xbf16, #tpu.memory_space<vmem>>, vector<8x200xbf16>
    %31 = arith.truncf %29 : vector<200x1024xf32> to vector<200x1024xbf16>
    %cst = arith.constant dense<0.000000e+00> : vector<8x1024xf32>
    %32 = tpu.matmul %30, %31, %cst {dimension_numbers = #tpu.dot_dimension_numbers<[1], [0], [0], [1], [0, 0, 1, 1], [], []>} : vector<8x200xbf16>, vector<200x1024xbf16>, vector<8x1024xf32> -> vector<8x1024xf32>
    %c0_4 = arith.constant 0 : index
    %c0_5 = arith.constant 0 : index
    %33 = vector.load %arg3[%c0_4, %c0_5] : memref<8x1xf32, #tpu.memory_space<vmem>>, vector<8x1xf32>
    %34 = vector.broadcast %33 : vector<8x1xf32> to vector<8x1024xf32>
    %35 = arith.addf %32, %34 : vector<8x1024xf32>
    %cst_6 = arith.constant 0.000000e+00 : f32
    %36 = vector.broadcast %cst_6 : f32 to vector<8x1024xf32>
    %37 = arith.maximumf %35, %36 : vector<8x1024xf32>
    %cst_7 = arith.constant 0.000000e+00 : f32
    %38 = vector.broadcast %cst_7 : f32 to vector<8x128xf32>
    %39 = tpu.concatenate %37, %38 in 1 : vector<8x1024xf32>, vector<8x128xf32> -> vector<8x1152xf32>
    %40 = vector.extract_strided_slice %39 {offsets = [0, 0], sizes = [8, 1024], strides = [1, 1]} : vector<8x1152xf32> to vector<8x1024xf32>
    %41 = vector.extract_strided_slice %39 {offsets = [0, 1], sizes = [8, 1024], strides = [1, 1]} : vector<8x1152xf32> to vector<8x1024xf32>
    %42 = arith.maximumf %40, %41 : vector<8x1024xf32>
    %43 = vector.extract_strided_slice %39 {offsets = [0, 32], sizes = [8, 1024], strides = [1, 1]} : vector<8x1152xf32> to vector<8x1024xf32>
    %44 = arith.maximumf %42, %43 : vector<8x1024xf32>
    %45 = vector.extract_strided_slice %39 {offsets = [0, 33], sizes = [8, 1024], strides = [1, 1]} : vector<8x1152xf32> to vector<8x1024xf32>
    %46 = arith.maximumf %44, %45 : vector<8x1024xf32>
    %cst_8 = arith.constant 0.000000e+00 : f32
    %47 = vector.broadcast %cst_8 : f32 to vector<8x384xf32>
    %48 = tpu.concatenate %46, %47 in 1 : vector<8x1024xf32>, vector<8x384xf32> -> vector<8x1408xf32>
    %49 = vector.extract_strided_slice %48 {offsets = [0, 0], sizes = [8, 1024], strides = [1, 1]} : vector<8x1408xf32> to vector<8x1024xf32>
    %50 = vector.extract_strided_slice %48 {offsets = [0, 2], sizes = [8, 1024], strides = [1, 1]} : vector<8x1408xf32> to vector<8x1024xf32>
    %51 = vector.extract_strided_slice %48 {offsets = [0, 4], sizes = [8, 1024], strides = [1, 1]} : vector<8x1408xf32> to vector<8x1024xf32>
    %52 = vector.extract_strided_slice %48 {offsets = [0, 6], sizes = [8, 1024], strides = [1, 1]} : vector<8x1408xf32> to vector<8x1024xf32>
    %53 = vector.extract_strided_slice %48 {offsets = [0, 8], sizes = [8, 1024], strides = [1, 1]} : vector<8x1408xf32> to vector<8x1024xf32>
    %54 = vector.extract_strided_slice %48 {offsets = [0, 64], sizes = [8, 1024], strides = [1, 1]} : vector<8x1408xf32> to vector<8x1024xf32>
    %55 = vector.extract_strided_slice %48 {offsets = [0, 66], sizes = [8, 1024], strides = [1, 1]} : vector<8x1408xf32> to vector<8x1024xf32>
    %56 = vector.extract_strided_slice %48 {offsets = [0, 68], sizes = [8, 1024], strides = [1, 1]} : vector<8x1408xf32> to vector<8x1024xf32>
    %57 = vector.extract_strided_slice %48 {offsets = [0, 70], sizes = [8, 1024], strides = [1, 1]} : vector<8x1408xf32> to vector<8x1024xf32>
    %58 = vector.extract_strided_slice %48 {offsets = [0, 72], sizes = [8, 1024], strides = [1, 1]} : vector<8x1408xf32> to vector<8x1024xf32>
    %59 = vector.extract_strided_slice %48 {offsets = [0, 128], sizes = [8, 1024], strides = [1, 1]} : vector<8x1408xf32> to vector<8x1024xf32>
    %60 = vector.extract_strided_slice %48 {offsets = [0, 130], sizes = [8, 1024], strides = [1, 1]} : vector<8x1408xf32> to vector<8x1024xf32>
    %61 = vector.extract_strided_slice %48 {offsets = [0, 132], sizes = [8, 1024], strides = [1, 1]} : vector<8x1408xf32> to vector<8x1024xf32>
    %62 = vector.extract_strided_slice %48 {offsets = [0, 134], sizes = [8, 1024], strides = [1, 1]} : vector<8x1408xf32> to vector<8x1024xf32>
    %63 = vector.extract_strided_slice %48 {offsets = [0, 136], sizes = [8, 1024], strides = [1, 1]} : vector<8x1408xf32> to vector<8x1024xf32>
    %64 = vector.extract_strided_slice %48 {offsets = [0, 192], sizes = [8, 1024], strides = [1, 1]} : vector<8x1408xf32> to vector<8x1024xf32>
    %65 = vector.extract_strided_slice %48 {offsets = [0, 194], sizes = [8, 1024], strides = [1, 1]} : vector<8x1408xf32> to vector<8x1024xf32>
    %66 = vector.extract_strided_slice %48 {offsets = [0, 196], sizes = [8, 1024], strides = [1, 1]} : vector<8x1408xf32> to vector<8x1024xf32>
    %67 = vector.extract_strided_slice %48 {offsets = [0, 198], sizes = [8, 1024], strides = [1, 1]} : vector<8x1408xf32> to vector<8x1024xf32>
    %68 = vector.extract_strided_slice %48 {offsets = [0, 200], sizes = [8, 1024], strides = [1, 1]} : vector<8x1408xf32> to vector<8x1024xf32>
    %69 = vector.extract_strided_slice %48 {offsets = [0, 256], sizes = [8, 1024], strides = [1, 1]} : vector<8x1408xf32> to vector<8x1024xf32>
    %70 = vector.extract_strided_slice %48 {offsets = [0, 258], sizes = [8, 1024], strides = [1, 1]} : vector<8x1408xf32> to vector<8x1024xf32>
    %71 = vector.extract_strided_slice %48 {offsets = [0, 260], sizes = [8, 1024], strides = [1, 1]} : vector<8x1408xf32> to vector<8x1024xf32>
    %72 = vector.extract_strided_slice %48 {offsets = [0, 262], sizes = [8, 1024], strides = [1, 1]} : vector<8x1408xf32> to vector<8x1024xf32>
    %73 = vector.extract_strided_slice %48 {offsets = [0, 264], sizes = [8, 1024], strides = [1, 1]} : vector<8x1408xf32> to vector<8x1024xf32>
    %74 = tpu.concatenate %49, %50, %51, %52, %53, %54, %55, %56, %57, %58, %59, %60, %61, %62, %63, %64 in 0 : vector<8x1024xf32>, vector<8x1024xf32>, vector<8x1024xf32>, vector<8x1024xf32>, vector<8x1024xf32>, vector<8x1024xf32>, vector<8x1024xf32>, vector<8x1024xf32>, vector<8x1024xf32>, vector<8x1024xf32>, vector<8x1024xf32>, vector<8x1024xf32>, vector<8x1024xf32>, vector<8x1024xf32>, vector<8x1024xf32>, vector<8x1024xf32> -> vector<128x1024xf32>
    %75 = tpu.concatenate %65, %66, %67, %68, %69, %70, %71, %72, %73 in 0 : vector<8x1024xf32>, vector<8x1024xf32>, vector<8x1024xf32>, vector<8x1024xf32>, vector<8x1024xf32>, vector<8x1024xf32>, vector<8x1024xf32>, vector<8x1024xf32>, vector<8x1024xf32> -> vector<72x1024xf32>
    %76 = tpu.concatenate %74, %75 in 0 : vector<128x1024xf32>, vector<72x1024xf32> -> vector<200x1024xf32>
    %c0_9 = arith.constant 0 : index
    %c0_10 = arith.constant 0 : index
    %77 = vector.load %arg4[%c0_9, %c0_10] : memref<16x200xbf16, #tpu.memory_space<vmem>>, vector<16x200xbf16>
    %78 = arith.truncf %76 : vector<200x1024xf32> to vector<200x1024xbf16>
    %cst_11 = arith.constant dense<0.000000e+00> : vector<16x1024xf32>
    %79 = tpu.matmul %77, %78, %cst_11 {dimension_numbers = #tpu.dot_dimension_numbers<[1], [0], [0], [1], [0, 0, 1, 1], [], []>} : vector<16x200xbf16>, vector<200x1024xbf16>, vector<16x1024xf32> -> vector<16x1024xf32>
    %c0_12 = arith.constant 0 : index
    %c0_13 = arith.constant 0 : index
    %80 = vector.load %arg5[%c0_12, %c0_13] : memref<16x1xf32, #tpu.memory_space<vmem>>, vector<16x1xf32>
    %81 = vector.broadcast %80 : vector<16x1xf32> to vector<16x1024xf32>
    %82 = arith.addf %79, %81 : vector<16x1024xf32>
    %cst_14 = arith.constant 0.000000e+00 : f32
    %83 = vector.broadcast %cst_14 : f32 to vector<16x1024xf32>
    %84 = arith.maximumf %82, %83 : vector<16x1024xf32>
    %cst_15 = arith.constant 0.000000e+00 : f32
    %85 = vector.broadcast %cst_15 : f32 to vector<16x128xf32>
    %86 = tpu.concatenate %84, %85 in 1 : vector<16x1024xf32>, vector<16x128xf32> -> vector<16x1152xf32>
    %87 = vector.extract_strided_slice %86 {offsets = [0, 0], sizes = [16, 1024], strides = [1, 1]} : vector<16x1152xf32> to vector<16x1024xf32>
    %88 = vector.extract_strided_slice %86 {offsets = [0, 2], sizes = [16, 1024], strides = [1, 1]} : vector<16x1152xf32> to vector<16x1024xf32>
    %89 = arith.maximumf %87, %88 : vector<16x1024xf32>
    %90 = vector.extract_strided_slice %86 {offsets = [0, 64], sizes = [16, 1024], strides = [1, 1]} : vector<16x1152xf32> to vector<16x1024xf32>
    %91 = arith.maximumf %89, %90 : vector<16x1024xf32>
    %92 = vector.extract_strided_slice %86 {offsets = [0, 66], sizes = [16, 1024], strides = [1, 1]} : vector<16x1152xf32> to vector<16x1024xf32>
    %93 = arith.maximumf %91, %92 : vector<16x1024xf32>
    %94 = vector.extract_strided_slice %93 {offsets = [0, 0], sizes = [16, 640], strides = [1, 1]} : vector<16x1024xf32> to vector<16x640xf32>
    %95 = arith.truncf %94 : vector<16x640xf32> to vector<16x640xbf16>
    %c0_16 = arith.constant 0 : index
    %c0_17 = arith.constant 0 : index
    %96 = vector.load %arg6[%c0_16, %c0_17] : memref<640x128xbf16, #tpu.memory_space<vmem>>, vector<640x128xbf16>
    %cst_18 = arith.constant dense<0.000000e+00> : vector<16x128xf32>
    %97 = tpu.matmul %95, %96, %cst_18 {dimension_numbers = #tpu.dot_dimension_numbers<[1], [0], [0], [1], [0, 0, 1, 1], [], []>} : vector<16x640xbf16>, vector<640x128xbf16>, vector<16x128xf32> -> vector<16x128xf32>
    %c0_19 = arith.constant 0 : index
    %c0_20 = arith.constant 0 : index
    %98 = vector.load %arg8[%c0_19, %c0_20] : memref<1x128xf32, #tpu.memory_space<vmem>>, vector<1x128xf32>
    %99 = vector.extract_strided_slice %97 {offsets = [0, 0], sizes = [1, 128], strides = [1, 1]} : vector<16x128xf32> to vector<1x128xf32>
    %100 = arith.truncf %99 : vector<1x128xf32> to vector<1x128xbf16>
    %c0_21 = arith.constant 0 : index
    %c0_22 = arith.constant 0 : index
    %c0_23 = arith.constant 0 : index
    %101 = vector.load %arg7[%c0_21, %c0_22, %c0_23] : memref<16x128x128xbf16, #tpu.memory_space<vmem>>, vector<1x128x128xbf16>
    %102 = vector.shape_cast %101 : vector<1x128x128xbf16> to vector<128x128xbf16>
    %cst_24 = arith.constant dense<0.000000e+00> : vector<1x128xf32>
    %103 = tpu.matmul %100, %102, %cst_24 {dimension_numbers = #tpu.dot_dimension_numbers<[1], [0], [0], [1], [0, 0, 1, 1], [], []>} : vector<1x128xbf16>, vector<128x128xbf16>, vector<1x128xf32> -> vector<1x128xf32>
    %104 = arith.addf %98, %103 : vector<1x128xf32>
    %105 = vector.extract_strided_slice %97 {offsets = [1, 0], sizes = [1, 128], strides = [1, 1]} : vector<16x128xf32> to vector<1x128xf32>
    %106 = arith.truncf %105 : vector<1x128xf32> to vector<1x128xbf16>
    %c1 = arith.constant 1 : index
    %c0_25 = arith.constant 0 : index
    %c0_26 = arith.constant 0 : index
    %107 = vector.load %arg7[%c1, %c0_25, %c0_26] : memref<16x128x128xbf16, #tpu.memory_space<vmem>>, vector<1x128x128xbf16>
    %108 = vector.shape_cast %107 : vector<1x128x128xbf16> to vector<128x128xbf16>
    %cst_27 = arith.constant dense<0.000000e+00> : vector<1x128xf32>
    %109 = tpu.matmul %106, %108, %cst_27 {dimension_numbers = #tpu.dot_dimension_numbers<[1], [0], [0], [1], [0, 0, 1, 1], [], []>} : vector<1x128xbf16>, vector<128x128xbf16>, vector<1x128xf32> -> vector<1x128xf32>
    %110 = arith.addf %104, %109 : vector<1x128xf32>
    %111 = vector.extract_strided_slice %97 {offsets = [2, 0], sizes = [1, 128], strides = [1, 1]} : vector<16x128xf32> to vector<1x128xf32>
    %112 = arith.truncf %111 : vector<1x128xf32> to vector<1x128xbf16>
    %c2 = arith.constant 2 : index
    %c0_28 = arith.constant 0 : index
    %c0_29 = arith.constant 0 : index
    %113 = vector.load %arg7[%c2, %c0_28, %c0_29] : memref<16x128x128xbf16, #tpu.memory_space<vmem>>, vector<1x128x128xbf16>
    %114 = vector.shape_cast %113 : vector<1x128x128xbf16> to vector<128x128xbf16>
    %cst_30 = arith.constant dense<0.000000e+00> : vector<1x128xf32>
    %115 = tpu.matmul %112, %114, %cst_30 {dimension_numbers = #tpu.dot_dimension_numbers<[1], [0], [0], [1], [0, 0, 1, 1], [], []>} : vector<1x128xbf16>, vector<128x128xbf16>, vector<1x128xf32> -> vector<1x128xf32>
    %116 = arith.addf %110, %115 : vector<1x128xf32>
    %117 = vector.extract_strided_slice %97 {offsets = [3, 0], sizes = [1, 128], strides = [1, 1]} : vector<16x128xf32> to vector<1x128xf32>
    %118 = arith.truncf %117 : vector<1x128xf32> to vector<1x128xbf16>
    %c3 = arith.constant 3 : index
    %c0_31 = arith.constant 0 : index
    %c0_32 = arith.constant 0 : index
    %119 = vector.load %arg7[%c3, %c0_31, %c0_32] : memref<16x128x128xbf16, #tpu.memory_space<vmem>>, vector<1x128x128xbf16>
    %120 = vector.shape_cast %119 : vector<1x128x128xbf16> to vector<128x128xbf16>
    %cst_33 = arith.constant dense<0.000000e+00> : vector<1x128xf32>
    %121 = tpu.matmul %118, %120, %cst_33 {dimension_numbers = #tpu.dot_dimension_numbers<[1], [0], [0], [1], [0, 0, 1, 1], [], []>} : vector<1x128xbf16>, vector<128x128xbf16>, vector<1x128xf32> -> vector<1x128xf32>
    %122 = arith.addf %116, %121 : vector<1x128xf32>
    %123 = vector.extract_strided_slice %97 {offsets = [4, 0], sizes = [1, 128], strides = [1, 1]} : vector<16x128xf32> to vector<1x128xf32>
    %124 = arith.truncf %123 : vector<1x128xf32> to vector<1x128xbf16>
    %c4 = arith.constant 4 : index
    %c0_34 = arith.constant 0 : index
    %c0_35 = arith.constant 0 : index
    %125 = vector.load %arg7[%c4, %c0_34, %c0_35] : memref<16x128x128xbf16, #tpu.memory_space<vmem>>, vector<1x128x128xbf16>
    %126 = vector.shape_cast %125 : vector<1x128x128xbf16> to vector<128x128xbf16>
    %cst_36 = arith.constant dense<0.000000e+00> : vector<1x128xf32>
    %127 = tpu.matmul %124, %126, %cst_36 {dimension_numbers = #tpu.dot_dimension_numbers<[1], [0], [0], [1], [0, 0, 1, 1], [], []>} : vector<1x128xbf16>, vector<128x128xbf16>, vector<1x128xf32> -> vector<1x128xf32>
    %128 = arith.addf %122, %127 : vector<1x128xf32>
    %129 = vector.extract_strided_slice %97 {offsets = [5, 0], sizes = [1, 128], strides = [1, 1]} : vector<16x128xf32> to vector<1x128xf32>
    %130 = arith.truncf %129 : vector<1x128xf32> to vector<1x128xbf16>
    %c5 = arith.constant 5 : index
    %c0_37 = arith.constant 0 : index
    %c0_38 = arith.constant 0 : index
    %131 = vector.load %arg7[%c5, %c0_37, %c0_38] : memref<16x128x128xbf16, #tpu.memory_space<vmem>>, vector<1x128x128xbf16>
    %132 = vector.shape_cast %131 : vector<1x128x128xbf16> to vector<128x128xbf16>
    %cst_39 = arith.constant dense<0.000000e+00> : vector<1x128xf32>
    %133 = tpu.matmul %130, %132, %cst_39 {dimension_numbers = #tpu.dot_dimension_numbers<[1], [0], [0], [1], [0, 0, 1, 1], [], []>} : vector<1x128xbf16>, vector<128x128xbf16>, vector<1x128xf32> -> vector<1x128xf32>
    %134 = arith.addf %128, %133 : vector<1x128xf32>
    %135 = vector.extract_strided_slice %97 {offsets = [6, 0], sizes = [1, 128], strides = [1, 1]} : vector<16x128xf32> to vector<1x128xf32>
    %136 = arith.truncf %135 : vector<1x128xf32> to vector<1x128xbf16>
    %c6 = arith.constant 6 : index
    %c0_40 = arith.constant 0 : index
    %c0_41 = arith.constant 0 : index
    %137 = vector.load %arg7[%c6, %c0_40, %c0_41] : memref<16x128x128xbf16, #tpu.memory_space<vmem>>, vector<1x128x128xbf16>
    %138 = vector.shape_cast %137 : vector<1x128x128xbf16> to vector<128x128xbf16>
    %cst_42 = arith.constant dense<0.000000e+00> : vector<1x128xf32>
    %139 = tpu.matmul %136, %138, %cst_42 {dimension_numbers = #tpu.dot_dimension_numbers<[1], [0], [0], [1], [0, 0, 1, 1], [], []>} : vector<1x128xbf16>, vector<128x128xbf16>, vector<1x128xf32> -> vector<1x128xf32>
    %140 = arith.addf %134, %139 : vector<1x128xf32>
    %141 = vector.extract_strided_slice %97 {offsets = [7, 0], sizes = [1, 128], strides = [1, 1]} : vector<16x128xf32> to vector<1x128xf32>
    %142 = arith.truncf %141 : vector<1x128xf32> to vector<1x128xbf16>
    %c7 = arith.constant 7 : index
    %c0_43 = arith.constant 0 : index
    %c0_44 = arith.constant 0 : index
    %143 = vector.load %arg7[%c7, %c0_43, %c0_44] : memref<16x128x128xbf16, #tpu.memory_space<vmem>>, vector<1x128x128xbf16>
    %144 = vector.shape_cast %143 : vector<1x128x128xbf16> to vector<128x128xbf16>
    %cst_45 = arith.constant dense<0.000000e+00> : vector<1x128xf32>
    %145 = tpu.matmul %142, %144, %cst_45 {dimension_numbers = #tpu.dot_dimension_numbers<[1], [0], [0], [1], [0, 0, 1, 1], [], []>} : vector<1x128xbf16>, vector<128x128xbf16>, vector<1x128xf32> -> vector<1x128xf32>
    %146 = arith.addf %140, %145 : vector<1x128xf32>
    %147 = vector.extract_strided_slice %97 {offsets = [8, 0], sizes = [1, 128], strides = [1, 1]} : vector<16x128xf32> to vector<1x128xf32>
    %148 = arith.truncf %147 : vector<1x128xf32> to vector<1x128xbf16>
    %c8 = arith.constant 8 : index
    %c0_46 = arith.constant 0 : index
    %c0_47 = arith.constant 0 : index
    %149 = vector.load %arg7[%c8, %c0_46, %c0_47] : memref<16x128x128xbf16, #tpu.memory_space<vmem>>, vector<1x128x128xbf16>
    %150 = vector.shape_cast %149 : vector<1x128x128xbf16> to vector<128x128xbf16>
    %cst_48 = arith.constant dense<0.000000e+00> : vector<1x128xf32>
    %151 = tpu.matmul %148, %150, %cst_48 {dimension_numbers = #tpu.dot_dimension_numbers<[1], [0], [0], [1], [0, 0, 1, 1], [], []>} : vector<1x128xbf16>, vector<128x128xbf16>, vector<1x128xf32> -> vector<1x128xf32>
    %152 = arith.addf %146, %151 : vector<1x128xf32>
    %153 = vector.extract_strided_slice %97 {offsets = [9, 0], sizes = [1, 128], strides = [1, 1]} : vector<16x128xf32> to vector<1x128xf32>
    %154 = arith.truncf %153 : vector<1x128xf32> to vector<1x128xbf16>
    %c9 = arith.constant 9 : index
    %c0_49 = arith.constant 0 : index
    %c0_50 = arith.constant 0 : index
    %155 = vector.load %arg7[%c9, %c0_49, %c0_50] : memref<16x128x128xbf16, #tpu.memory_space<vmem>>, vector<1x128x128xbf16>
    %156 = vector.shape_cast %155 : vector<1x128x128xbf16> to vector<128x128xbf16>
    %cst_51 = arith.constant dense<0.000000e+00> : vector<1x128xf32>
    %157 = tpu.matmul %154, %156, %cst_51 {dimension_numbers = #tpu.dot_dimension_numbers<[1], [0], [0], [1], [0, 0, 1, 1], [], []>} : vector<1x128xbf16>, vector<128x128xbf16>, vector<1x128xf32> -> vector<1x128xf32>
    %158 = arith.addf %152, %157 : vector<1x128xf32>
    %159 = vector.extract_strided_slice %97 {offsets = [10, 0], sizes = [1, 128], strides = [1, 1]} : vector<16x128xf32> to vector<1x128xf32>
    %160 = arith.truncf %159 : vector<1x128xf32> to vector<1x128xbf16>
    %c10 = arith.constant 10 : index
    %c0_52 = arith.constant 0 : index
    %c0_53 = arith.constant 0 : index
    %161 = vector.load %arg7[%c10, %c0_52, %c0_53] : memref<16x128x128xbf16, #tpu.memory_space<vmem>>, vector<1x128x128xbf16>
    %162 = vector.shape_cast %161 : vector<1x128x128xbf16> to vector<128x128xbf16>
    %cst_54 = arith.constant dense<0.000000e+00> : vector<1x128xf32>
    %163 = tpu.matmul %160, %162, %cst_54 {dimension_numbers = #tpu.dot_dimension_numbers<[1], [0], [0], [1], [0, 0, 1, 1], [], []>} : vector<1x128xbf16>, vector<128x128xbf16>, vector<1x128xf32> -> vector<1x128xf32>
    %164 = arith.addf %158, %163 : vector<1x128xf32>
    %165 = vector.extract_strided_slice %97 {offsets = [11, 0], sizes = [1, 128], strides = [1, 1]} : vector<16x128xf32> to vector<1x128xf32>
    %166 = arith.truncf %165 : vector<1x128xf32> to vector<1x128xbf16>
    %c11 = arith.constant 11 : index
    %c0_55 = arith.constant 0 : index
    %c0_56 = arith.constant 0 : index
    %167 = vector.load %arg7[%c11, %c0_55, %c0_56] : memref<16x128x128xbf16, #tpu.memory_space<vmem>>, vector<1x128x128xbf16>
    %168 = vector.shape_cast %167 : vector<1x128x128xbf16> to vector<128x128xbf16>
    %cst_57 = arith.constant dense<0.000000e+00> : vector<1x128xf32>
    %169 = tpu.matmul %166, %168, %cst_57 {dimension_numbers = #tpu.dot_dimension_numbers<[1], [0], [0], [1], [0, 0, 1, 1], [], []>} : vector<1x128xbf16>, vector<128x128xbf16>, vector<1x128xf32> -> vector<1x128xf32>
    %170 = arith.addf %164, %169 : vector<1x128xf32>
    %171 = vector.extract_strided_slice %97 {offsets = [12, 0], sizes = [1, 128], strides = [1, 1]} : vector<16x128xf32> to vector<1x128xf32>
    %172 = arith.truncf %171 : vector<1x128xf32> to vector<1x128xbf16>
    %c12 = arith.constant 12 : index
    %c0_58 = arith.constant 0 : index
    %c0_59 = arith.constant 0 : index
    %173 = vector.load %arg7[%c12, %c0_58, %c0_59] : memref<16x128x128xbf16, #tpu.memory_space<vmem>>, vector<1x128x128xbf16>
    %174 = vector.shape_cast %173 : vector<1x128x128xbf16> to vector<128x128xbf16>
    %cst_60 = arith.constant dense<0.000000e+00> : vector<1x128xf32>
    %175 = tpu.matmul %172, %174, %cst_60 {dimension_numbers = #tpu.dot_dimension_numbers<[1], [0], [0], [1], [0, 0, 1, 1], [], []>} : vector<1x128xbf16>, vector<128x128xbf16>, vector<1x128xf32> -> vector<1x128xf32>
    %176 = arith.addf %170, %175 : vector<1x128xf32>
    %177 = vector.extract_strided_slice %97 {offsets = [13, 0], sizes = [1, 128], strides = [1, 1]} : vector<16x128xf32> to vector<1x128xf32>
    %178 = arith.truncf %177 : vector<1x128xf32> to vector<1x128xbf16>
    %c13 = arith.constant 13 : index
    %c0_61 = arith.constant 0 : index
    %c0_62 = arith.constant 0 : index
    %179 = vector.load %arg7[%c13, %c0_61, %c0_62] : memref<16x128x128xbf16, #tpu.memory_space<vmem>>, vector<1x128x128xbf16>
    %180 = vector.shape_cast %179 : vector<1x128x128xbf16> to vector<128x128xbf16>
    %cst_63 = arith.constant dense<0.000000e+00> : vector<1x128xf32>
    %181 = tpu.matmul %178, %180, %cst_63 {dimension_numbers = #tpu.dot_dimension_numbers<[1], [0], [0], [1], [0, 0, 1, 1], [], []>} : vector<1x128xbf16>, vector<128x128xbf16>, vector<1x128xf32> -> vector<1x128xf32>
    %182 = arith.addf %176, %181 : vector<1x128xf32>
    %183 = vector.extract_strided_slice %97 {offsets = [14, 0], sizes = [1, 128], strides = [1, 1]} : vector<16x128xf32> to vector<1x128xf32>
    %184 = arith.truncf %183 : vector<1x128xf32> to vector<1x128xbf16>
    %c14 = arith.constant 14 : index
    %c0_64 = arith.constant 0 : index
    %c0_65 = arith.constant 0 : index
    %185 = vector.load %arg7[%c14, %c0_64, %c0_65] : memref<16x128x128xbf16, #tpu.memory_space<vmem>>, vector<1x128x128xbf16>
    %186 = vector.shape_cast %185 : vector<1x128x128xbf16> to vector<128x128xbf16>
    %cst_66 = arith.constant dense<0.000000e+00> : vector<1x128xf32>
    %187 = tpu.matmul %184, %186, %cst_66 {dimension_numbers = #tpu.dot_dimension_numbers<[1], [0], [0], [1], [0, 0, 1, 1], [], []>} : vector<1x128xbf16>, vector<128x128xbf16>, vector<1x128xf32> -> vector<1x128xf32>
    %188 = arith.addf %182, %187 : vector<1x128xf32>
    %189 = vector.extract_strided_slice %97 {offsets = [15, 0], sizes = [1, 128], strides = [1, 1]} : vector<16x128xf32> to vector<1x128xf32>
    %190 = arith.truncf %189 : vector<1x128xf32> to vector<1x128xbf16>
    %c15 = arith.constant 15 : index
    %c0_67 = arith.constant 0 : index
    %c0_68 = arith.constant 0 : index
    %191 = vector.load %arg7[%c15, %c0_67, %c0_68] : memref<16x128x128xbf16, #tpu.memory_space<vmem>>, vector<1x128x128xbf16>
    %192 = vector.shape_cast %191 : vector<1x128x128xbf16> to vector<128x128xbf16>
    %cst_69 = arith.constant dense<0.000000e+00> : vector<1x128xf32>
    %193 = tpu.matmul %190, %192, %cst_69 {dimension_numbers = #tpu.dot_dimension_numbers<[1], [0], [0], [1], [0, 0, 1, 1], [], []>} : vector<1x128xbf16>, vector<128x128xbf16>, vector<1x128xf32> -> vector<1x128xf32>
    %194 = arith.addf %188, %193 : vector<1x128xf32>
    %cst_70 = arith.constant 0.000000e+00 : f32
    %195 = vector.broadcast %cst_70 : f32 to vector<1x128xf32>
    %196 = arith.maximumf %194, %195 : vector<1x128xf32>
    %197 = arith.truncf %196 : vector<1x128xf32> to vector<1x128xbf16>
    %c0_71 = arith.constant 0 : index
    %c0_72 = arith.constant 0 : index
    %198 = vector.load %arg9[%c0_71, %c0_72] : memref<128x128xbf16, #tpu.memory_space<vmem>>, vector<128x128xbf16>
    %cst_73 = arith.constant dense<0.000000e+00> : vector<1x128xf32>
    %199 = tpu.matmul %197, %198, %cst_73 {dimension_numbers = #tpu.dot_dimension_numbers<[1], [0], [0], [1], [0, 0, 1, 1], [], []>} : vector<1x128xbf16>, vector<128x128xbf16>, vector<1x128xf32> -> vector<1x128xf32>
    %c0_74 = arith.constant 0 : index
    %c0_75 = arith.constant 0 : index
    %200 = vector.load %arg10[%c0_74, %c0_75] : memref<1x128xf32, #tpu.memory_space<vmem>>, vector<1x128xf32>
    %201 = arith.addf %199, %200 : vector<1x128xf32>
    %cst_76 = arith.constant 0.000000e+00 : f32
    %202 = vector.broadcast %cst_76 : f32 to vector<1x128xf32>
    %203 = arith.maximumf %201, %202 : vector<1x128xf32>
    %204 = arith.truncf %203 : vector<1x128xf32> to vector<1x128xbf16>
    %c0_77 = arith.constant 0 : index
    %c0_78 = arith.constant 0 : index
    %205 = vector.load %arg11[%c0_77, %c0_78] : memref<128x128xbf16, #tpu.memory_space<vmem>>, vector<128x128xbf16>
    %cst_79 = arith.constant dense<0.000000e+00> : vector<1x128xf32>
    %206 = tpu.matmul %204, %205, %cst_79 {dimension_numbers = #tpu.dot_dimension_numbers<[1], [0], [0], [1], [0, 0, 1, 1], [], []>} : vector<1x128xbf16>, vector<128x128xbf16>, vector<1x128xf32> -> vector<1x128xf32>
    %c0_80 = arith.constant 0 : index
    %c0_81 = arith.constant 0 : index
    %207 = vector.load %arg12[%c0_80, %c0_81] : memref<1x128xf32, #tpu.memory_space<vmem>>, vector<1x128xf32>
    %208 = arith.addf %206, %207 : vector<1x128xf32>
    %c0_82 = arith.constant 0 : index
    %c0_83 = arith.constant 0 : index
    %c0_84 = arith.constant 0 : index
    %209 = vector.load %arg13[%c0_82, %c0_83, %c0_84] : memref<1x1x128xf32, #tpu.memory_space<vmem>>, vector<1x1x128xf32>
    %210 = vector.shape_cast %209 : vector<1x1x128xf32> to vector<1x128xf32>
    %211 = vector.shape_cast %208 : vector<1x128xf32> to vector<1x1x128xf32>
    tpu.vector_store %arg13[%c0_82, %c0_83, %c0_84], %211 {strides = array<i32>} : memref<1x1x128xf32, #tpu.memory_space<vmem>>, vector<1x1x128xf32>,
    return
  }
  func.func @transform_0(%arg0: i32) -> (i32, i32, i32) {
    %c0_i32 = arith.constant 0 : i32
    %c0_i32_0 = arith.constant 0 : i32
    %c0_i32_1 = arith.constant 0 : i32
    return %arg0, %c0_i32, %c0_i32_0 : i32, i32, i32
  }
  func.func @transform_1(%arg0: i32) -> (i32, i32) {
    %c0_i32 = arith.constant 0 : i32
    %c0_i32_0 = arith.constant 0 : i32
    %c0_i32_1 = arith.constant 0 : i32
    return %c0_i32, %c0_i32_0 : i32, i32
  }
  func.func @transform_2(%arg0: i32) -> (i32, i32) {
    %c0_i32 = arith.constant 0 : i32
    %c0_i32_0 = arith.constant 0 : i32
    %c0_i32_1 = arith.constant 0 : i32
    return %c0_i32, %c0_i32_0 : i32, i32
  }
  func.func @transform_3(%arg0: i32) -> (i32, i32) {
    %c0_i32 = arith.constant 0 : i32
    %c0_i32_0 = arith.constant 0 : i32
    %c0_i32_1 = arith.constant 0 : i32
    return %c0_i32, %c0_i32_0 : i32, i32
  }
  func.func @transform_4(%arg0: i32) -> (i32, i32) {
    %c0_i32 = arith.constant 0 : i32
    %c0_i32_0 = arith.constant 0 : i32
    %c0_i32_1 = arith.constant 0 : i32
    return %c0_i32, %c0_i32_0 : i32, i32
  }
  func.func @transform_5(%arg0: i32) -> (i32, i32) {
    %c0_i32 = arith.constant 0 : i32
    %c0_i32_0 = arith.constant 0 : i32
    %c0_i32_1 = arith.constant 0 : i32
    return %c0_i32, %c0_i32_0 : i32, i32
  }
  func.func @transform_6(%arg0: i32) -> (i32, i32, i32) {
    %c0_i32 = arith.constant 0 : i32
    %c0_i32_0 = arith.constant 0 : i32
    %c0_i32_1 = arith.constant 0 : i32
    %c0_i32_2 = arith.constant 0 : i32
    return %c0_i32, %c0_i32_0, %c0_i32_1 : i32, i32, i32
  }
  func.func @transform_7(%arg0: i32) -> (i32, i32) {
    %c0_i32 = arith.constant 0 : i32
    %c0_i32_0 = arith.constant 0 : i32
    %c0_i32_1 = arith.constant 0 : i32
    return %c0_i32, %c0_i32_0 : i32, i32
  }
  func.func @transform_8(%arg0: i32) -> (i32, i32) {
    %c0_i32 = arith.constant 0 : i32
    %c0_i32_0 = arith.constant 0 : i32
    %c0_i32_1 = arith.constant 0 : i32
    return %c0_i32, %c0_i32_0 : i32, i32
  }
  func.func @transform_9(%arg0: i32) -> (i32, i32) {
    %c0_i32 = arith.constant 0 : i32
    %c0_i32_0 = arith.constant 0 : i32
    %c0_i32_1 = arith.constant 0 : i32
    return %c0_i32, %c0_i32_0 : i32, i32
  }
  func.func @transform_10(%arg0: i32) -> (i32, i32) {
    %c0_i32 = arith.constant 0 : i32
    %c0_i32_0 = arith.constant 0 : i32
    %c0_i32_1 = arith.constant 0 : i32
    return %c0_i32, %c0_i32_0 : i32, i32
  }
  func.func @transform_11(%arg0: i32) -> (i32, i32) {
    %c0_i32 = arith.constant 0 : i32
    %c0_i32_0 = arith.constant 0 : i32
    %c0_i32_1 = arith.constant 0 : i32
    return %c0_i32, %c0_i32_0 : i32, i32
  }
  func.func @transform_12(%arg0: i32) -> (i32, i32, i32) {
    %c0_i32 = arith.constant 0 : i32
    %c0_i32_0 = arith.constant 0 : i32
    %c0_i32_1 = arith.constant 0 : i32
    return %arg0, %c0_i32, %c0_i32_0 : i32, i32, i32
  }
}

</mosaic_0001>

<bundles_post_ra>
// kernel: net_forward.1
= control target key start
LH: loop header
LB: loop body
LE: loop exit
PB: predicated region body
PF: predicated region fallthrough
CT: control target
= control target key end

     0   :  { %s10520_s0 = inlined_call_operand.vmem [shape: f32[2,8,1280], index: 0, kind: input, shape index: {}]   ;;  %s10521_s1 = inlined_call_operand.vmem [shape: bf16[8,200], index: 1, kind: input, shape index: {}]   ;;  %s10522_s2 = inlined_call_operand.vmem [shape: f32[8,1], index: 2, kind: input, shape index: {}]   ;;  %s10523_s3 = inlined_call_operand.vmem [shape: bf16[16,200], index: 3, kind: input, shape index: {}]   ;;  %s10524_s4 = inlined_call_operand.vmem [shape: f32[16,1], index: 4, kind: input, shape index: {}]   ;;  %s10525_s5 = inlined_call_operand.vmem [shape: bf16[640,128], index: 5, kind: input, shape index: {}]   ;;  %s10526_s6 = inlined_call_operand.hbm [shape: bf16[16,128,128], index: 6, kind: input, shape index: {}]   ;;  %s10527_s7 = inlined_call_operand.vmem [shape: f32[1,128], index: 7, kind: input, shape index: {}]   ;;  %s10528_s8 = inlined_call_operand.vmem [shape: bf16[128,128], index: 8, kind: input, shape index: {}]   ;;  %s10529_s9 = inlined_call_operand.vmem [shape: f32[1,128], index: 9, kind: input, shape index: {}]   ;;  %s10530_s10 = inlined_call_operand.vmem [shape: bf16[128,128], index: 10, kind: input, shape index: {}]   ;;  %s10531_s11 = inlined_call_operand.vmem [shape: f32[1,128], index: 11, kind: input, shape index: {}]   ;;  %s10532_s12 = inlined_call_operand.hbm [shape: f32[2,1,128], index: 12, kind: output, shape index: {}]  }
   0x1   :  { %10663 = sst [smem:[#allocation31_spill]] %s10520_s0 }
   0x2   :  { %10664 = sst [smem:[#allocation32_spill]] %s10521_s1 }
   0x3   :  { %10665 = sst [smem:[#allocation33_spill]] %s10526_s6 }
   0x4   :  { %17 = vsyncpa [#allocation3], 0 }
   0x5   :  { %18 = vsyncpa [#allocation4], 0 }
   0x6   :  { %20 = vsyncpa [#allocation4 + $0x1], 0  ;;  %s7535_s21 = smov 0   ;;  %s7537_s22 = smov 0  }
   0x7   :  { %s7539_s23 = smov 0   ;;  %s7541_s24 = smov 0  }
   0x8 LB: > { %10666 = sst [smem:[#allocation8_spill]] %s7427_s21  ;;  %s7556_s25 = sadd.s32 4294967295, %s7439_s24   ;;  %s7439_s24 = sphi %s7541_s24, %s10909_s24   ;;  %s7435_s23 = sphi %s7539_s23, %s10911_s23   ;;  %s7431_s22 = sphi %s7537_s22, %s10913_s22   ;;  %s7427_s21 = sphi %s7535_s21, %s10912_s21  }
   0x9   : > { %10667 = sst [smem:[#allocation9_spill]] %s7435_s23  ;;  %s5191_s26 = sadd.s32 4294967294, %s7439_s24  }
   0xa   : > { %10668 = sst [smem:[#allocation10_spill]] %s7439_s24  ;;  %s7560_s27 = sadd.s32 1, %s7439_s24  }
   0xb   : > { %10669 = sst [smem:[#allocation11_spill]] %s7560_s27  ;;  %s290_s28 = sadd.s32 1, %s7435_s23 }
   0xc   : > { %s287_s29 = ssub.s32 %s7439_s24, %s7560_s27  ;;  %p300_p0 = scmp.ne.s32.totalorder %s7435_s23, %s7431_s22 }
   0xd   : > { %p288_p1 = scmp.eq.s32.totalorder %s287_s29, 0  ;;  %p301_p2 = scmp.eq.s32.totalorder %s7556_s25, 1 }
   0xe   : > { %p306_p3 = scmp.ne.s32.totalorder %s7431_s22, %s7427_s21  ;;  %p307_p4 = scmp.eq.s32.totalorder %s5191_s26, 1 }
   0xf   : > { %s7571_s30 = scalar_select %p288_p1, %s7435_s23, %s290_s28  }
  0x10   : > { %p7573_p5 = por %p301_p2, %p300_p0  ;;  %p7577_p6 = por %p307_p4, %p306_p3 }
  0x11   : > { %10670 = sst [smem:[#allocation12_spill]] %s7571_s30  ;;  %p5192_p7 = scmp.ge.s32.totalorder %s7439_s24, 1 }
  0x12   : > { %s10671_s13 = scalar_select %p7573_p5, 1, 0 }
  0x13   : > { %s10672_s14 = scalar_select %p7577_p6, 1, 0 }
  0x14   : > { %p314_p8 = scmp.lt.s32.totalorder %s7439_s24, 3  ;;  %p10534_p9 = scmp.eq.s32.totalorder %s7556_s25, 0 }
  0x15   : > { %10673 = sst [smem:[#allocation13_spill]] %s10672_s14  ;;  %s7441_s16 = smov [#allocation2]  }
  0x16   : > { %p7584_p10 = pnand %p5192_p7, %p314_p8  ;;  %s341_s17 = sshll.u32 %s7441_s16, 4  ;;  %s342_s17 = int_to_ptr.vmem [resolvable:$true] %s341_s17 }
  0x17   : > { %s10676_s6 = sld [smem:[#allocation33_spill]] }
  0x18   : > { %s10674_s15 = scalar_select %p7584_p10, 1, 0 }
  0x19   : > { %p6066_p11 = pneg %p7584_p10 }
  0x1b   : > { %p7592_p12 = pnand %p10534_p9, %p6066_p11 }
  0x1d   : > { %s7345_s26 = scalar_lea.hbm %s10676_s6, 16384  ;;  %p7347_p0 = pneg %p7592_p12 }
  0x1e   : > { %p7346_p13 = scmp.ne.s32.totalorder %s10676_s6, %s7345_s26  ;;  %p7352_p3 = scmp.lt.u32.totalorder %s7345_s26, %s10676_s6 }
  0x20   : > { %p7348_p1 = pnand %p7347_p0, %p7346_p13 }
  0x22   : > { %p7349_p2 = pneg %p7348_p1 }
  0x24   : > { %p7354_p4 = pnand %p7352_p3, %p7349_p2 }
  0x26   : > { %7357 = shalt.err (!%p7354_p4)
}
  0x27   : > { %s7358_s23 = scalar_lea.vmem %s342_s17, 16384  ;;  %p7366_p9 = scmp.lt.s32.totalorder %s342_s17, %s342_s17 }
  0x28   : > { %p7359_p7 = scmp.ne.s32.totalorder %s342_s17, %s7358_s23  ;;  %p7367_p6 = scmp.lt.s32.totalorder %s7358_s23, %s7358_s23 }
  0x2a   : > { %p7361_p8 = pnand %p7359_p7, %p7347_p0  ;;  %p7368_p5 = por %p7367_p6, %p7366_p9 }
  0x2c   : > { %p7362_p11 = pneg %p7361_p8 }
  0x2e   : > { %p7369_p10 = pnand %p7368_p5, %p7362_p11 }
  0x30   : > { %7372 = shalt.err (!%p7369_p10)
}
  0x31   : > { %s7442_s19 = smov 64   ;;  %s7443_s20 = smov 4  }
  0x32   : > { %6069 = dma.hbm_to_vmem [thread:$0]  (!%p7592_p12), %s10676_s6, 16384, %s342_s17, [#allocation3], %s7442_s19, %s7442_s19, %s7443_s20  }
  0x33   : > { %p10677_p13 = scmp.ne.s32.totalorder %s10674_s15, 0 }
  0x35   : > { %380 = sbr.rel (%p10677_p13) target bundleno = 3116 (0xc2c), region = 68 }
  0x3c   : > { %p10678_p1 = scmp.eq.s32.totalorder %s7556_s25, 0 }
  0x3e   : > { %7418 = dma.done.wait (%p10678_p1), [#allocation3], 16384   ;;  %p10679_p0 = pmov %p10678_p1 }
  0x3f   : > { %p421_p5 = scmp.lt.s32.totalorder %s7556_s25, 1  ;;  %s10680_s0 = sld [smem:[#allocation31_spill]]  ;;  %vm464_vm0 = vcmask 1039360   ;;  %vm499_vm1 = vcmask 1031168   ;;  %vm534_vm2 = vcmask 1022976   ;;  %vm604_vm3 = vcmask 785408  }
  0x40   : > { %7420 = vsyncadd (%p10679_p0), [#allocation3], 4294950912  ;;  %s10551_s15 = smov 126   ;;  %s10553_s17 = smov 127   ;;  %vm10638_vm4 = vcmask 777216   ;;  %vm10617_vm5 = vcmask 769024  }
  0x41   : > { %s422_s23 = scalar_select %p421_p5, %s7556_s25, 1  ;;  %vm569_vm6 = vcmask 1014784   ;;  %vm987_vm7 = vcmask 793600   ;;  %vm10591_vm8 = vcmask 760832   ;;  %vm744_vm9 = vcmask 752640  }
  0x42   : > { %s10563_s19 = smov 125   ;;  %s10559_s20 = smov 96   ;;  %vm10621_vm10 = vcmask 515072   ;;  %vm779_vm11 = vcmask 523264   ;;  %vm10565_vm12 = vcmask 506880   ;;  %vm1432_vm13 = vcmask 588800  }
  0x43   : > { %s6059_s30 = smul.u32 80, %s422_s23  ;;  %s10557_s28 = smov 97   ;;  %vm884_vm14 = vcmask 498688   ;;  %vm919_vm15 = vcmask 490496  }
  0x44   : > { %s10537_s29 = smov 95   ;;  %s10539_s23 = smov 94  }
  0x45   : > { %s7623_s16 = scalar_lea.vmem %s10680_s0, %s6059_s30  ;;  %s10541_s30 = smov 93  }
  0x46   : > { %v7626_v0 = vld [vmem:[%s7623_s16 + $0x8] sm:$0xff]  ;;  %v429_v1 = vld [vmem:[%s7623_s16 + $0x10] sm:$0xff]  ;;  %v7630_v2 = vld [vmem:[%s7623_s16] sm:$0xff]  ;;  %s10543_s26 = smov 124   ;;  %s10545_s18 = smov 92  }
  0x47   : > { %v6147_v3 = vpack.i.bf16 %v429_v1, %v7626_v0  ;;  %v430_v4 = vld [vmem:[%s7623_s16 + $0x18] sm:$0xff]  ;;  %v431_v6 = vld [vmem:[%s7623_s16 + $0x20] sm:$0xff]  ;;  %v7660_v9 = vld [vmem:[%s7623_s16 + $0x28] sm:$0xff]  ;;  %s10685_s1 = sld [smem:[#allocation32_spill]]  ;;  %s10694_s0 = smov 32  }
  0x48   : > { %v6152_v5 = vpack.i.bf16 %v7630_v2, %v430_v4  ;;  %v6182_v7 = vpack.i.bf16 %v431_v6, %v430_v4  ;;  %v6222_v8 = vpack.i.bf16 %v430_v4, %v7630_v2  ;;  %v6267_v10 = vpack.i.bf16 %v7660_v9, %v431_v6  ;;  %v7674_v11 = vld [vmem:[%s7623_s16 + $0x30] sm:$0xff]  ;;  %s10702_s6 = smov 31   ;;  %s10704_s27 = smov 96  }
  0x49   : > { %6148 = vrot.lane.b32.xlu1 %v6147_v3, %s10551_s15  ;;  %6138 = vrot.lane.b32.xlu0 %v6147_v3, %s10553_s17  ;;  %v6322_v12 = vpack.i.bf16 %v7674_v11, %v7660_v9  ;;  %s10705_s14 = smov 97   ;;  %s10712_s21 = smov 62  }
  0x4a   : > { %s10713_s24 = smov 60   ;;  %p10904_p9 = scmp.ne.s32.totalorder %s10671_s13, 0 }
  0x4d   : > { %6153 = vrot.lane.b32.xlu1 %v6152_v5, %s10551_s15  ;;  %6143 = vrot.lane.b32.xlu0 %v6152_v5, %s10553_s17 }
  0x51   : > { %6163 = vrot.lane.b32.xlu1 %v6152_v5, %s10563_s19  ;;  %6158 = vrot.lane.b32.xlu0 %v6147_v3, %s10563_s19 }
  0x55   : > { %6173 = vrot.lane.b32.xlu1 %v6152_v5, %s10559_s20  ;;  %6168 = vrot.lane.b32.xlu0 %v6147_v3, %s10559_s20 }
  0x59   : > { %6183 = vrot.lane.b32.xlu1 %v6182_v7, %s10557_s28  ;;  %6178 = vrot.lane.b32.xlu0 %v6147_v3, %s10557_s28 }
  0x5d   : > { %6193 = vrot.lane.b32.xlu1 %v6152_v5, %s10537_s29  ;;  %6188 = vrot.lane.b32.xlu0 %v6147_v3, %s10537_s29  ;;  %s10547_s29 = smov 63  }
  0x61   : > { %6203 = vrot.lane.b32.xlu1 %v6152_v5, %s10539_s23  ;;  %6198 = vrot.lane.b32.xlu0 %v6147_v3, %s10539_s23  ;;  %s10549_s23 = smov 64  }
  0x65   : > { %6213 = vrot.lane.b32.xlu1 %v6152_v5, %s10541_s30  ;;  %6208 = vrot.lane.b32.xlu0 %v6147_v3, %s10541_s30  ;;  %s10555_s30 = smov 61  }
  0x69   : > { %6223 = vrot.lane.b32.xlu1 %v6222_v8, %s10543_s26  ;;  %6218 = vrot.lane.b32.xlu0 %v6147_v3, %s10543_s26  ;;  %s10569_s26 = smov 62  }
  0x6d   : > { %6233 = vrot.lane.b32.xlu1 %v6222_v8, %s10545_s18  ;;  %6228 = vrot.lane.b32.xlu0 %v6147_v3, %s10545_s18  ;;  %s10576_s18 = smov 60  }
  0x71   : > { %6243 = vrot.lane.b32.xlu1 %v6147_v3, %s10547_s29  ;;  %6238 = vrot.lane.b32.xlu0 %v6147_v3, %s10549_s23 }
  0x75   : > { %6253 = vrot.lane.b32.xlu1 %v6222_v8, %s10547_s29  ;;  %6248 = vrot.lane.b32.xlu0 %v6222_v8, %s10549_s23  ;;  %s10567_s29 = smov 32   ;;  %s10561_s23 = smov 31  }
  0x79   : > { %6263 = vrot.lane.b32.xlu1 %v6147_v3, %s10555_s30  ;;  %6258 = vrot.lane.b32.xlu0 %v6147_v3, %s10569_s26 }
  0x7d   : > { %6273 = vrot.lane.b32.xlu1 %v6222_v8, %s10569_s26  ;;  %6268 = vrot.lane.b32.xlu0 %v6267_v10, %s10553_s17  ;;  %s10682_s17 = smov 95  }
  0x81   : > { %6283 = vrot.lane.b32.xlu1 %v6147_v3, %s10576_s18  ;;  %6278 = vrot.lane.b32.xlu0 %v6222_v8, %s10555_s30  ;;  %s10683_s30 = smov 93  }
  0x85   : > { %6293 = vrot.lane.b32.xlu1 %v6267_v10, %s10551_s15  ;;  %6288 = vrot.lane.b32.xlu0 %v6147_v3, %s10567_s29  ;;  %s10681_s15 = smov 94  }
  0x89   : > { %6303 = vrot.lane.b32.xlu1 %v6222_v8, %s10576_s18  ;;  %6298 = vrot.lane.b32.xlu0 %v6267_v10, %s10563_s19  ;;  %s10690_s19 = smov 63  }
  0x8d   : > { %6313 = vrot.lane.b32.xlu1 %v6147_v3, %s10561_s23  ;;  %6308 = vrot.lane.b32.xlu0 %v6222_v8, %s10567_s29  ;;  %s10691_s29 = smov 61  }
  0x91   : > { %6318 = vrot.lane.b32.xlu1 %v6267_v10, %s10559_s20  ;;  %6323 = vrot.lane.b32.xlu0 %v6322_v12, %s10557_s28  ;;  %s10686_s20 = smov 124   ;;  %s10687_s28 = smov 92  }
  0x95   : > { %6333 = vrot.lane.b32.xlu1 %v6267_v10, %s10681_s15  ;;  %6328 = vrot.lane.b32.xlu0 %v6267_v10, %s10682_s17 }
  0x99   : > { %6338 = vrot.lane.b32.xlu1 %v6267_v10, %s10683_s30 }
  0xbb   : > { %v6149_v13 = vpop.permute.xlu1 %6148  ;;  %v6139_v14 = vpop.permute.xlu0 %6138 }
  0xbc   : > { %v6141_v15 = vunpack.i.h.bf16 %v6139_v14  ;;  %v6140_v16 = vunpack.i.l.bf16 %v6139_v14  ;;  %v6151_v18 = vunpack.i.h.bf16 %v6149_v13  ;;  %v6150_v19 = vunpack.i.l.bf16 %v6149_v13 }
  0xbe   : > { %v466_v17 = vsel %vm464_vm0, %v6140_v16, %v6141_v15  ;;  %v501_v30 = vsel %vm499_vm1, %v6150_v19, %v6151_v18 }
  0xbf   : > { %v7688_v20 = vpop.permute.xlu1 %6153  ;;  %v7690_v21 = vpop.permute.xlu0 %6143  ;;  %v1317_v22 = vpack.c.bf16 %v466_v17, %v7626_v0 }
  0xc0   : > { %v6156_v23 = vunpack.i.h.bf16 %v7688_v20  ;;  %v6155_v24 = vunpack.i.l.bf16 %v7688_v20  ;;  %v6146_v25 = vunpack.i.h.bf16 %v7690_v21  ;;  %v6145_v45 = vunpack.i.l.bf16 %v7690_v21 }
  0xc1   : > { %1461 = vmatprep.subr.bf16.mxu0 %v1317_v22 }
  0xc2   : > { %v7697_v26 = vsel %vm464_vm0, %v6146_v25, %v6140_v16  ;;  %v7705_v31 = vsel %vm499_vm1, %v6156_v23, %v6150_v19  ;;  %v7710_v32 = vsel %vm499_vm1, %v6151_v18, %v6155_v24  ;;  %v7738_v51 = vsel %vm464_vm0, %v6141_v15, %v6145_v45  ;;  %v7338_v15 = vld [vmem:[%s7623_s16] sm:$0xff] }
  0xc3   : > { %v7699_v27 = vpop.permute.xlu1 %6163  ;;  %v6159_v28 = vpop.permute.xlu0 %6158  ;;  %v1316_v29 = vpack.c.bf16 %v7697_v26, %v7630_v2  ;;  %v6352_v54 = vpack.i.bf16 %v7738_v51, %v466_v17  ;;  %v6362_v2 = vpack.i.bf16 %v7710_v32, %v501_v30  ;;  %v6357_v16 = vpack.i.bf16 %v7697_v26, %v7338_v15 }
  0xc4   : > { %v6166_v33 = vunpack.i.h.bf16 %v7699_v27  ;;  %v6165_v34 = vunpack.i.l.bf16 %v7699_v27  ;;  %v6161_v35 = vunpack.i.h.bf16 %v6159_v28  ;;  %v6160_v36 = vunpack.i.l.bf16 %v6159_v28 }
  0xc5   : > { %1462 = vmatpush1.bf16.msra.mxu0 %v1316_v29 }
  0xc6   : > { %v7715_v37 = vsel %vm534_vm2, %v6160_v36, %v6161_v35  ;;  %v7718_v38 = vsel %vm534_vm2, %v6166_v33, %v6160_v36  ;;  %v7723_v39 = vsel %vm534_vm2, %v6161_v35, %v6165_v34 }
  0xc7   : > { %v7725_v40 = vpop.permute.xlu1 %6173  ;;  %v6169_v41 = vpop.permute.xlu0 %6168  ;;  %v1325_v42 = vpack.c.bf16 %v7715_v37, %v501_v30  ;;  %v1324_v43 = vpack.c.bf16 %v7718_v38, %v7705_v31  ;;  %v6372_v18 = vpack.i.bf16 %v7718_v38, %v7705_v31  ;;  %v6367_v19 = vpack.i.bf16 %v7723_v39, %v7715_v37 }
  0xc8   : > { %v6170_v48 = vunpack.i.l.bf16 %v6169_v41  ;;  %v6171_v55 = vunpack.i.h.bf16 %v6169_v41  ;;  %v6175_v58 = vunpack.i.l.bf16 %v7725_v40  ;;  %v6176_v1 = vunpack.i.h.bf16 %v7725_v40 }
  0xc9   : > { %1463 = vmatprep.subr.bf16.mxu0 %v1325_v42 }
  0xca   : > { %1464 = vmatpush1.bf16.msra.mxu0 %v1324_v43  ;;  %v606_v4 = vsel %vm604_vm3, %v6170_v48, %v6171_v55  ;;  %v7772_v13 = vsel %vm604_vm3, %v6171_v55, %v6175_v58  ;;  %v605_v28 = vsel %vm604_vm3, %v6176_v1, %v6170_v48 }
  0xcb   : > { %v7733_v46 = vpop.permute.xlu1 %6183  ;;  %v6179_v47 = vpop.permute.xlu0 %6178  ;;  %v6382_v25 = vpack.i.bf16 %v7772_v13, %v606_v4 }
  0xcc   : > { %v6180_v49 = vunpack.i.l.bf16 %v6179_v47  ;;  %v6185_v7 = vunpack.i.l.bf16 %v7733_v46  ;;  %v6181_v8 = vunpack.i.h.bf16 %v6179_v47 }
  0xce   : > { %v6342_v50 = vpack.i.bf16 %v6170_v48, %v6180_v49  ;;  %v988_v35 = vsel %vm987_vm7, %v6180_v49, %v6181_v8  ;;  %v989_v31 = vsel %vm987_vm7, %v6181_v8, %v6185_v7 }
  0xcf   : > { %v7740_v52 = vpop.permute.xlu1 %6193  ;;  %v6189_v53 = vpop.permute.xlu0 %6188 }
  0xd0   : > { %6343 = vrot.lane.b32.xlu0 %v6342_v50, %s10561_s23  ;;  %v6195_v56 = vunpack.i.l.bf16 %v7740_v52  ;;  %v6191_v57 = vunpack.i.h.bf16 %v6189_v53  ;;  %v7748_v61 = vunpack.i.l.bf16 %v6189_v53  ;;  %v6196_v29 = vunpack.i.h.bf16 %v7740_v52 }
  0xd2   : > { %v7764_v6 = vsel %vm10638_vm4, %v6191_v57, %v6195_v56  ;;  %v641_v43 = vsel %vm10638_vm4, %v7748_v61, %v6191_v57 }
  0xd3   : > { %v7746_v59 = vpop.permute.xlu1 %6203  ;;  %v6199_v60 = vpop.permute.xlu0 %6198 }
  0xd4   : > { %v6205_v62 = vunpack.i.l.bf16 %v7746_v59  ;;  %v6201_v63 = vunpack.i.h.bf16 %v6199_v60  ;;  %v6200_v0 = vunpack.i.l.bf16 %v6199_v60  ;;  %6353 = vrot.lane.b32.xlu0 %v6352_v54, %s10561_s23  ;;  %v6206_v17 = vunpack.i.h.bf16 %v7746_v59 }
  0xd6   : > { %v6347_v3 = vpack.i.bf16 %v6200_v0, %v7748_v61  ;;  %v7759_v5 = vsel %vm10617_vm5, %v6201_v63, %v6205_v62  ;;  %v676_v47 = vsel %vm10617_vm5, %v6200_v0, %v6201_v63  ;;  %v675_v48 = vsel %vm10617_vm5, %v6206_v17, %v6200_v0 }
  0xd7   : > { %v7767_v10 = vpop.permute.xlu1 %6213  ;;  %v6209_v12 = vpop.permute.xlu0 %6208  ;;  %v1341_v15 = vpack.c.bf16 %v676_v47, %v641_v43  ;;  %v640_v17 = vsel %vm10638_vm4, %v6196_v29, %v7748_v61 }
  0xd8   : > { %6348 = vrot.lane.b32.xlu1 %v6347_v3, %s10561_s23  ;;  %6363 = vrot.lane.b32.xlu0 %v6362_v2, %s10561_s23  ;;  %v6211_v22 = vunpack.i.h.bf16 %v6209_v12  ;;  %v7785_v23 = vunpack.i.l.bf16 %v6209_v12  ;;  %v10586_v30 = vunpack.i.l.bf16 %v7767_v10  ;;  %v6216_v42 = vunpack.i.h.bf16 %v7767_v10 }
  0xda   : > { %v711_v54 = vsel %vm10591_vm8, %v7785_v23, %v6211_v22  ;;  %v7822_v1 = vsel %vm10591_vm8, %v6211_v22, %v10586_v30 }
  0xdb   : > { %v7791_v26 = vpop.permute.xlu1 %6223  ;;  %v6219_v33 = vpop.permute.xlu0 %6218 }
  0xdc   : > { %v10575_v36 = vunpack.i.h.bf16 %v7791_v26  ;;  %v6225_v37 = vunpack.i.l.bf16 %v7791_v26  ;;  %v6221_v38 = vunpack.i.h.bf16 %v6219_v33  ;;  %v6220_v41 = vunpack.i.l.bf16 %v6219_v33  ;;  %6358 = vrot.lane.b32.xlu1 %v6357_v16, %s10561_s23  ;;  %6373 = vrot.lane.b32.xlu0 %v6372_v18, %s10561_s23 }
  0xdd   : > { %v6377_v16 = vpack.i.bf16 %v989_v31, %v988_v35  ;;  %v1340_v18 = vpack.c.bf16 %v675_v48, %v640_v17  ;;  %v6397_v35 = vpack.i.bf16 %v711_v54, %v7785_v23 }
  0xde   : > { %v7809_v49 = vsel %vm569_vm6, %v6221_v38, %v10575_v36  ;;  %v571_v50 = vsel %vm569_vm6, %v6220_v41, %v6221_v38  ;;  %v570_v53 = vsel %vm569_vm6, %v6225_v37, %v6220_v41 }
  0xdf   : > { %v7815_v55 = vpop.permute.xlu1 %6233  ;;  %v6229_v60 = vpop.permute.xlu0 %6228  ;;  %v1333_v63 = vpack.c.bf16 %v606_v4, %v571_v50  ;;  %v1332_v0 = vpack.c.bf16 %v605_v28, %v570_v53  ;;  %v6392_v4 = vpack.i.bf16 %v7759_v5, %v676_v47  ;;  %v710_v28 = vsel %vm10591_vm8, %v6216_v42, %v7785_v23 }
  0xe0   : > { %v10574_v2 = vunpack.i.h.bf16 %v7815_v55  ;;  %v6235_v3 = vunpack.i.l.bf16 %v7815_v55  ;;  %v6231_v8 = vunpack.i.h.bf16 %v6229_v60  ;;  %v6230_v12 = vunpack.i.l.bf16 %v6229_v60  ;;  %6368 = vrot.lane.b32.xlu1 %v6367_v19, %s10561_s23  ;;  %6383 = vrot.lane.b32.xlu0 %v6382_v25, %s10561_s23  ;;  %v7853_v60 = vld [vmem:[%s7623_s16 + $0x20] sm:$0xff] }
  0xe1   : > { %1465 = vmatprep.subr.bf16.mxu0 %v1333_v63  ;;  %v6387_v47 = vpack.i.bf16 %v7764_v6, %v641_v43  ;;  %10684 = vst [vmem:[#allocation14_spill] sm:$0xff] %v7853_v60  ;;  %v7857_v63 = vpack.i.bf16 %v7660_v9, %v7853_v60  ;;  %v7862_v43 = vld [vmem:[%s10685_s1] sm:$0xff]  ;;  %v7871_v9 = vld [vmem:[%s7623_s16 + $0x18] sm:$0xff]  ;;  %s10700_s1 = smov 125  }
  0xe2   : > { %1466 = vmatpush1.bf16.msra.mxu0 %v1332_v0  ;;  %v746_v22 = vsel %vm744_vm9, %v6230_v12, %v6231_v8  ;;  %v7837_v19 = vsel %vm744_vm9, %v6231_v8, %v10574_v2  ;;  %v745_v61 = vsel %vm744_vm9, %v6235_v3, %v6230_v12 }
  0xe3   : > { %v6244_v25 = vpop.permute.xlu1 %6243  ;;  %v6239_v33 = vpop.permute.xlu0 %6238  ;;  %1467 = vmatprep.subr.bf16.mxu0 %v1341_v15  ;;  %v1349_v31 = vpack.c.bf16 %v746_v22, %v711_v54  ;;  %v1348_v48 = vpack.c.bf16 %v745_v61, %v710_v28 }
  0xe4   : > { %v6246_v37 = vunpack.i.h.bf16 %v6244_v25  ;;  %v6245_v38 = vunpack.i.l.bf16 %v6244_v25  ;;  %v6241_v41 = vunpack.i.h.bf16 %v6239_v33  ;;  %v6240_v42 = vunpack.i.l.bf16 %v6239_v33  ;;  %6378 = vrot.lane.b32.xlu1 %v6377_v16, %s10561_s23  ;;  %6393 = vrot.lane.b32.xlu0 %v6392_v4, %s10561_s23 }
  0xe5   : > { %v6407_v16 = vpack.i.bf16 %v7871_v9, %v7822_v1  ;;  %v7877_v4 = vcombine.high %v7862_v43, %v7862_v43 }
  0xe6   : > { %1468 = vmatpush1.bf16.msra.mxu0 %v1340_v18  ;;  %v781_v23 = vsel %vm779_vm11, %v6240_v42, %v6241_v41  ;;  %v816_v50 = vsel %vm10621_vm10, %v6245_v38, %v6246_v37 }
  0xe7   : > { %v7848_v53 = vpop.permute.xlu1 %6253  ;;  %v7850_v54 = vpop.permute.xlu0 %6248  ;;  %1469 = vmatprep.subr.bf16.mxu0 %v1349_v31  ;;  %v1357_v0 = vpack.c.bf16 %v816_v50, %v781_v23  ;;  %5201 = vmatprep.mubr.msk.bf16.mxu0 %vm1432_vm13, %v7877_v4 }
  0xe8   : > { %v10573_v3 = vunpack.i.h.bf16 %v7848_v53  ;;  %v6255_v8 = vunpack.i.l.bf16 %v7848_v53  ;;  %v10572_v12 = vunpack.i.h.bf16 %v7850_v54  ;;  %v6250_v15 = vunpack.i.l.bf16 %v7850_v54  ;;  %6388 = vrot.lane.b32.xlu1 %v6387_v47, %s10561_s23  ;;  %6398 = vrot.lane.b32.xlu0 %v6397_v35, %s10561_s23 }
  0xea   : > { %v7882_v17 = vsel %vm10621_vm10, %v6246_v37, %v10573_v3  ;;  %v7887_v18 = vsel %vm779_vm11, %v6241_v41, %v10572_v12  ;;  %1470 = vmatpush1.bf16.msra.mxu0 %v1348_v48  ;;  %v780_v22 = vsel %vm779_vm11, %v6250_v15, %v6240_v42  ;;  %v815_v28 = vsel %vm10621_vm10, %v6255_v8, %v6245_v38  ;;  %v7911_v15 = vld [vmem:[%s7623_s16 + $0x38] sm:$0xff] }
  0xeb   : > { %v6264_v25 = vpop.permute.xlu1 %6263  ;;  %v6259_v33 = vpop.permute.xlu0 %6258  ;;  %1471 = vmatprep.subr.bf16.mxu0 %v1357_v0  ;;  %v1356_v35 = vpack.c.bf16 %v815_v28, %v780_v22  ;;  %10689 = vst [vmem:[#allocation15_spill] sm:$0xff] %v7911_v15 }
  0xec   : > { %v6266_v61 = vunpack.i.h.bf16 %v6264_v25  ;;  %v6265_v37 = vunpack.i.l.bf16 %v6264_v25  ;;  %v6261_v41 = vunpack.i.h.bf16 %v6259_v33  ;;  %v6260_v47 = vunpack.i.l.bf16 %v6259_v33  ;;  %6408 = vrot.lane.b32.xlu1 %v6407_v16, %s10561_s23  ;;  %6403 = vrot.lane.b32.xlu0 %v7857_v63, %s10686_s20  ;;  %s10688_s23 = smov 64  }
  0xed   : > { %v7922_v25 = vpack.i.bf16 %v7911_v15, %v7674_v11 }
  0xee   : > { %1472 = vmatpush1.bf16.msra.mxu0 %v1356_v35  ;;  %v851_v38 = vsel %vm10565_vm12, %v6260_v47, %v6261_v41  ;;  %v886_v42 = vsel %vm884_vm14, %v6265_v37, %v6266_v61 }
  0xef   : > { %v7900_v48 = vpop.permute.xlu1 %6273  ;;  %v7902_v23 = vpop.permute.xlu0 %6268  ;;  %v1365_v50 = vpack.c.bf16 %v886_v42, %v851_v38 }
  0xf0   : > { %v10566_v0 = vunpack.i.h.bf16 %v7900_v48  ;;  %v6275_v8 = vunpack.i.l.bf16 %v7900_v48  ;;  %6413 = vrot.lane.b32.xlu1 %v7857_v63, %s10687_s28  ;;  %6418 = vrot.lane.b32.xlu0 %v7857_v63, %s10688_s23  ;;  %v10581_v31 = vunpack.i.h.bf16 %v7902_v23 }
  0xf1   : > { %1473 = vmatprep.subr.bf16.mxu0 %v1365_v50 }
  0xf2   : > { %v7916_v16 = vsel %vm10565_vm12, %v6261_v41, %v10566_v0  ;;  %v850_v33 = vsel %vm10565_vm12, %v6275_v8, %v6260_v47  ;;  %vm954_vm12 = vcmask 261120  }
  0xf3   : > { %v6284_v22 = vpop.permute.xlu1 %6283  ;;  %v7918_v28 = vpop.permute.xlu0 %6278 }
  0xf4   : > { %v6286_v35 = vunpack.i.h.bf16 %v6284_v22  ;;  %v6285_v38 = vunpack.i.l.bf16 %v6284_v22  ;;  %v10571_v42 = vunpack.i.h.bf16 %v7918_v28  ;;  %v6280_v50 = vunpack.i.l.bf16 %v7918_v28  ;;  %6423 = vrot.lane.b32.xlu1 %v7857_v63, %s10690_s19  ;;  %6428 = vrot.lane.b32.xlu0 %v7857_v63, %s10569_s26  ;;  %s10692_s26 = smov 127  }
  0xf6   : > { %v7934_v11 = vsel %vm884_vm14, %v6266_v61, %v10571_v42  ;;  %v885_v41 = vsel %vm884_vm14, %v6280_v50, %v6265_v37  ;;  %v7946_v61 = vld [vmem:[%s7623_s16 + $0x28] sm:$0xff]  ;;  %v921_v50 = vsel %vm919_vm15, %v6285_v38, %v6286_v35  ;;  %v6270_v42 = vunpack.i.l.bf16 %v7902_v23 }
  0xf7   : > { %v7937_v47 = vpop.permute.xlu1 %6293  ;;  %v6289_v8 = vpop.permute.xlu0 %6288  ;;  %v1364_v22 = vpack.c.bf16 %v885_v41, %v850_v33  ;;  %10693 = vst [vmem:[#allocation16_spill] sm:$0xff] %v7946_v61  ;;  %v6447_v37 = vpack.i.bf16 %v7946_v61, %v7853_v60 }
  0xf8   : > { %v6291_v0 = vunpack.i.h.bf16 %v6289_v8  ;;  %v6290_v29 = vunpack.i.l.bf16 %v6289_v8  ;;  %6433 = vrot.lane.b32.xlu1 %v7857_v63, %s10691_s29  ;;  %6438 = vrot.lane.b32.xlu0 %v7922_v25, %s10692_s26  ;;  %v10580_v33 = vunpack.i.h.bf16 %v7937_v47  ;;  %v6295_v41 = vunpack.i.l.bf16 %v7937_v47 }
  0xf9   : > { %1474 = vmatpush1.bf16.msra.mxu0 %v1364_v22  ;;  %v7999_v27 = vsel %vm464_vm0, %v6270_v42, %v10581_v31 }
  0xfa   : > { %v956_v8 = vsel %vm954_vm12, %v6290_v29, %v6291_v0  ;;  %v7970_v36 = vsel %vm499_vm1, %v6155_v24, %v6295_v41  ;;  %v7994_v24 = vsel %vm464_vm0, %v6145_v45, %v6270_v42  ;;  %10697 = vst [vmem:[#allocation19_spill] sm:$0xff] %v7999_v27 }
  0xfb   : > { %v7956_v12 = vpop.permute.xlu1 %6303  ;;  %v7958_v14 = vpop.permute.xlu0 %6298  ;;  %v1373_v3 = vpack.c.bf16 %v956_v8, %v921_v50  ;;  %v7975_v50 = vsel %vm499_vm1, %v6295_v41, %v10580_v33 }
  0xfc   : > { %v10578_v2 = vunpack.i.h.bf16 %v7956_v12  ;;  %v6305_v57 = vunpack.i.l.bf16 %v7956_v12  ;;  %v10579_v22 = vunpack.i.h.bf16 %v7958_v14  ;;  %v6300_v44 = vunpack.i.l.bf16 %v7958_v14  ;;  %6443 = vrot.lane.b32.xlu1 %v7857_v63, %s10576_s18  ;;  %6448 = vrot.lane.b32.xlu0 %v6447_v37, %s10694_s0  ;;  %10695 = vst [vmem:[#allocation17_spill] sm:$0xff] %v7975_v50  ;;  %s10699_s18 = smov 126  }
  0xfd   : > { %1475 = vmatprep.subr.bf16.mxu0 %v1373_v3 }
  0xfe   : > { %v7980_v8 = vsel %vm534_vm2, %v6165_v34, %v6300_v44  ;;  %v7985_v63 = vsel %vm534_vm2, %v6300_v44, %v10579_v22  ;;  %v8008_v37 = vsel %vm919_vm15, %v6286_v35, %v10578_v2  ;;  %v920_v42 = vsel %vm919_vm15, %v6305_v57, %v6285_v38 }
  0xff   : > { %10696 = vst [vmem:[#allocation18_spill] sm:$0xff] %v7985_v63  ;;  %v7987_v3 = vpop.permute.xlu1 %6313  ;;  %v7989_v20 = vpop.permute.xlu0 %6308  ;;  %10698 = vst [vmem:[#allocation20_spill] sm:$0xff] %v8008_v37  ;;  %v6462_v35 = vpack.i.bf16 %v7994_v24, %v7853_v60  ;;  %v6467_v34 = vpack.i.bf16 %v7970_v36, %v7999_v27  ;;  %v6186_v22 = vunpack.i.h.bf16 %v7733_v46  ;;  %v6477_v46 = vpack.i.bf16 %v7980_v8, %v7975_v50 }
 0x100   : > { %v10582_v21 = vunpack.i.h.bf16 %v7989_v20  ;;  %v6310_v45 = vunpack.i.l.bf16 %v7989_v20  ;;  %6453 = vrot.lane.b32.xlu1 %v7922_v25, %s10699_s18  ;;  %6458 = vrot.lane.b32.xlu0 %v7922_v25, %s10700_s1 }
 0x102   : > { %v8020_v41 = vsel %vm954_vm12, %v6291_v0, %v10582_v21  ;;  %v955_v2 = vsel %vm954_vm12, %v6310_v45, %v6290_v29  ;;  %v990_v29 = vsel %vm987_vm7, %v6185_v7, %v6186_v22 }
 0x103   : > { %10701 = vst [vmem:[#allocation21_spill] sm:$0xff] %v8020_v41  ;;  %v8028_v33 = vpop.permute.xlu1 %6318  ;;  %v8030_v31 = vpop.permute.xlu0 %6323  ;;  %v1372_v57 = vpack.c.bf16 %v955_v2, %v920_v42  ;;  %v6482_v7 = vpack.i.bf16 %v990_v29, %v7985_v63 }
 0x104   : > { %6463 = vrot.lane.b32.xlu1 %v6462_v35, %s10702_s6  ;;  %6468 = vrot.lane.b32.xlu0 %v6467_v34, %s10702_s6  ;;  %v10593_v34 = vunpack.i.h.bf16 %v8028_v33  ;;  %v6320_v52 = vunpack.i.l.bf16 %v8028_v33 }
 0x105   : > { %1476 = vmatpush1.bf16.msra.mxu0 %v1372_v57 }
 0x106   : > { %v8086_v59 = vsel %vm604_vm3, %v6175_v58, %v6320_v52 }
 0x107   : > { %v8036_v0 = vpop.permute.xlu1 %6333  ;;  %v8038_v21 = vpop.permute.xlu0 %6328 }
 0x108   : > { %10703 = vst [vmem:[#allocation22_spill] sm:$0xff] %v8036_v0  ;;  %v10587_v45 = vunpack.i.h.bf16 %v8036_v0  ;;  %v6335_v2 = vunpack.i.l.bf16 %v8036_v0  ;;  %v10588_v42 = vunpack.i.h.bf16 %v8038_v21  ;;  %v6330_v38 = vunpack.i.l.bf16 %v8038_v21  ;;  %6473 = vrot.lane.b32.xlu1 %v7922_v25, %s10704_s27  ;;  %983 = vrot.lane.b32.xlu0 %v7911_v15, %s10705_s14 }
 0x10a   : > { %v8058_v35 = vsel %vm10638_vm4, %v6195_v56, %v6330_v38  ;;  %v8063_v57 = vsel %vm10638_vm4, %v6330_v38, %v10588_v42  ;;  %v8068_v44 = vsel %vm10617_vm5, %v6205_v62, %v6335_v2  ;;  %v8073_v30 = vsel %vm10617_vm5, %v6335_v2, %v10587_v45 }
 0x10b   : > { %10706 = vst [vmem:[#allocation23_spill] sm:$0xff] %v8063_v57  ;;  %10707 = vst [vmem:[#allocation24_spill] sm:$0xff] %v8073_v30  ;;  %v10594_v56 = vunpack.i.l.bf16 %v8030_v31  ;;  %v8094_v2 = vsel %vm604_vm3, %v6320_v52, %v10593_v34  ;;  %v8096_v29 = vpop.permute.xlu1 %6338  ;;  %v10711_v45 = vunpack.i.l.bf16 %v7767_v10  ;;  %v8147_v10 = vld [vmem:[%s7623_s16 + $0x40] sm:$0xff]  ;;  %vm1436_vm5 = vcmask 1043456  }
 0x10c   : > { %6478 = vrot.lane.b32.xlu1 %v6477_v46, %s10702_s6  ;;  %6483 = vrot.lane.b32.xlu0 %v6482_v7, %s10702_s6  ;;  %10708 = vst [vmem:[#allocation25_spill] sm:$0xff] %v8094_v2  ;;  %10709 = vst [vmem:[#allocation26_spill] sm:$0xff] %v8096_v29  ;;  %v10592_v40 = vunpack.i.h.bf16 %v8096_v29  ;;  %v6340_v46 = vunpack.i.l.bf16 %v8096_v29  ;;  %v8110_v7 = vld [vmem:[%s7623_s16 + $0x30] sm:$0xff] }
 0x10d   : > { %v991_v62 = vsel %vm987_vm7, %v6186_v22, %v10594_v56  ;;  %v6502_v22 = vpack.i.bf16 %v8058_v35, %v8094_v2  ;;  %v6507_v52 = vpack.i.bf16 %v7911_v15, %v8110_v7 }
 0x10e   : > { %v6497_v58 = vpack.i.bf16 %v8086_v59, %v991_v62  ;;  %v6512_v62 = vpack.i.bf16 %v8068_v44, %v8063_v57 }
 0x110   : > { %6488 = vrot.lane.b32.xlu1 %v7922_v25, %s10682_s17  ;;  %6493 = vrot.lane.b32.xlu0 %v7922_v25, %s10681_s15  ;;  %v8117_v25 = vsel %vm10591_vm8, %v6340_v46, %v10592_v40 }
 0x111   : > { %10710 = vst [vmem:[#allocation27_spill] sm:$0xff] %v8117_v25 }
 0x114   : > { %6498 = vrot.lane.b32.xlu1 %v6497_v58, %s10702_s6  ;;  %6503 = vrot.lane.b32.xlu0 %v6502_v22, %s10702_s6  ;;  %v8124_v58 = vsel %vm10591_vm8, %v10711_v45, %v6340_v46  ;;  %v6522_v22 = vpack.i.bf16 %v7946_v61, %v8117_v25  ;;  %v6315_v46 = vunpack.i.l.bf16 %v7987_v3  ;;  %vm1170_vm8 = vcmask 252928  }
 0x115   : > { %v6517_v42 = vpack.i.bf16 %v8124_v58, %v8073_v30 }
 0x118   : > { %6508 = vrot.lane.b32.xlu1 %v6507_v52, %s10683_s30  ;;  %6513 = vrot.lane.b32.xlu0 %v6512_v62, %s10702_s6 }
 0x11c   : > { %6518 = vrot.lane.b32.xlu1 %v6517_v42, %s10702_s6  ;;  %6523 = vrot.lane.b32.xlu0 %v6522_v22, %s10702_s6  ;;  %v10603_v42 = vunpack.i.h.bf16 %v7987_v3 }
 0x11e   : > { %v1172_v40 = vsel %vm1170_vm8, %v6315_v46, %v10603_v42 }
 0x120   : > { %563 = vrot.lane.b32.xlu1 %v8110_v7, %s10686_s20  ;;  %738 = vrot.lane.b32.xlu0 %v8110_v7, %s10687_s28 }
 0x124   : > { %773 = vrot.lane.b32.xlu1 %v8110_v7, %s10688_s23  ;;  %808 = vrot.lane.b32.xlu0 %v8110_v7, %s10690_s19 }
 0x128   : > { %843 = vrot.lane.b32.xlu1 %v8110_v7, %s10712_s21  ;;  %878 = vrot.lane.b32.xlu0 %v8110_v7, %s10691_s29 }
 0x12c   : > { %462 = vrot.lane.b32.xlu1 %v8147_v10, %s10692_s26  ;;  %913 = vrot.lane.b32.xlu0 %v8110_v7, %s10713_s24 }
 0x130   : > { %948 = vrot.lane.b32.xlu1 %v8110_v7, %s10694_s0  ;;  %497 = vrot.lane.b32.xlu0 %v8147_v10, %s10699_s18 }
 0x134   : > { %532 = vrot.lane.b32.xlu1 %v8147_v10, %s10700_s1 }
 0x142   : > { %v6344_v45 = vpop.permute.xlu0 %6343 }
 0x146   : > { %v8161_v52 = vpop.permute.xlu0 %6353 }
 0x147   : > { %v10606_v62 = vunpack.i.h.bf16 %v8161_v52  ;;  %v6355_v22 = vunpack.i.l.bf16 %v8161_v52 }
 0x149   : > { %v1180_v34 = vsel %vm1170_vm8, %v6355_v22, %v10606_v62 }
 0x14a   : > { %v6349_v56 = vpop.permute.xlu1 %6348  ;;  %v8171_v38 = vpop.permute.xlu0 %6363  ;;  %v1381_v25 = vpack.c.bf16 %v1180_v34, %v1172_v40 }
 0x14b   : > { %10714 = vst [vmem:[#allocation28_spill] sm:$0xff] %v8171_v38  ;;  %v10610_v63 = vunpack.i.h.bf16 %v8171_v38  ;;  %v6365_v27 = vunpack.i.l.bf16 %v8171_v38  ;;  %v6346_v38 = vunpack.i.h.bf16 %v6344_v45 }
 0x14c   : > { %1477 = vmatprep.subr.bf16.mxu0 %v1381_v25 }
 0x14e   : > { %v6359_v57 = vpop.permute.xlu1 %6358  ;;  %v6374_v30 = vpop.permute.xlu0 %6373 }
 0x14f   : > { %v6361_v2 = vunpack.i.h.bf16 %v6359_v57  ;;  %v6360_v50 = vunpack.i.l.bf16 %v6359_v57  ;;  %v6375_v60 = vunpack.i.l.bf16 %v6374_v30  ;;  %v6376_v34 = vunpack.i.h.bf16 %v6374_v30 }
 0x150   : > { %v1188_v57 = vsel %vm1170_vm8, %v6365_v27, %v10610_v63  ;;  %v6345_v63 = vunpack.i.l.bf16 %v6344_v45 }
 0x151   : > { %v1171_v42 = vsel %vm1170_vm8, %v6360_v50, %v6315_v46  ;;  %v1179_v61 = vsel %vm1170_vm8, %v6361_v2, %v6355_v22  ;;  %v1187_v0 = vsel %vm1170_vm8, %v6375_v60, %v6365_v27 }
 0x152   : > { %v8177_v15 = vpop.permute.xlu1 %6368  ;;  %v8179_v62 = vpop.permute.xlu0 %6383  ;;  %v1380_v29 = vpack.c.bf16 %v1179_v61, %v1171_v42 }
 0x153   : > { %10715 = vst [vmem:[#allocation29_spill] sm:$0xff] %v8177_v15  ;;  %v10612_v40 = vunpack.i.h.bf16 %v8177_v15  ;;  %v6370_v25 = vunpack.i.l.bf16 %v8177_v15  ;;  %v6385_v2 = vunpack.i.l.bf16 %v8179_v62 }
 0x154   : > { %1478 = vmatpush1.bf16.msra.mxu0 %v1380_v29 }
 0x155   : > { %v1196_v61 = vsel %vm1170_vm8, %v6370_v25, %v10612_v40  ;;  %v1195_v30 = vsel %vm1170_vm8, %v6376_v34, %v6370_v25  ;;  %v10717_v25 = vunpack.i.h.bf16 %v8179_v62 }
 0x156   : > { %v8193_v42 = vpop.permute.xlu1 %6378  ;;  %v8195_v46 = vpop.permute.xlu0 %6393  ;;  %v1389_v29 = vpack.c.bf16 %v1196_v61, %v1188_v57  ;;  %v1388_v22 = vpack.c.bf16 %v1195_v30, %v1187_v0  ;;  %v1211_v57 = vsel %vm1170_vm8, %v6346_v38, %v6385_v2  ;;  %v6351_v61 = vunpack.i.h.bf16 %v6349_v56 }
 0x157   : > { %10716 = vst [vmem:[#allocation30_spill] sm:$0xff] %v8193_v42  ;;  %v10615_v60 = vunpack.i.h.bf16 %v8193_v42  ;;  %v6380_v27 = vunpack.i.l.bf16 %v8193_v42  ;;  %v6395_v15 = vunpack.i.l.bf16 %v8195_v46  ;;  %v1212_v0 = vsel %vm1170_vm8, %v6385_v2, %v10717_v25 }
 0x158   : > { %1479 = vmatprep.subr.bf16.mxu0 %v1389_v29  ;;  %v6350_v30 = vunpack.i.l.bf16 %v6349_v56  ;;  %v10718_v25 = vunpack.i.h.bf16 %v8195_v46 }
 0x159   : > { %1480 = vmatpush1.bf16.msra.mxu0 %v1388_v22  ;;  %v1204_v34 = vsel %vm1170_vm8, %v6380_v27, %v10615_v60  ;;  %v1203_v45 = vsel %vm1170_vm8, %v6345_v63, %v6380_v27  ;;  %v1227_v2 = vsel %vm1170_vm8, %v6351_v61, %v6395_v15 }
 0x15a   : > { %v8209_v40 = vpop.permute.xlu1 %6388  ;;  %v6399_v50 = vpop.permute.xlu0 %6398  ;;  %v1397_v37 = vpack.c.bf16 %v1212_v0, %v1204_v34  ;;  %v1396_v29 = vpack.c.bf16 %v1211_v57, %v1203_v45  ;;  %v1228_v63 = vsel %vm1170_vm8, %v6395_v15, %v10718_v25  ;;  %v8240_v25 = vcombine.low %v7862_v43, %v7862_v43 }
 0x15b   : > { %v6391_v22 = vunpack.i.h.bf16 %v8209_v40  ;;  %v6390_v42 = vunpack.i.l.bf16 %v8209_v40  ;;  %v6401_v60 = vunpack.i.h.bf16 %v6399_v50  ;;  %v6400_v41 = vunpack.i.l.bf16 %v6399_v50 }
 0x15c   : > { %1481 = vmatprep.subr.bf16.mxu0 %v1397_v37  ;;  %v10719_v43 = vunpack.i.h.bf16 %v7791_v26  ;;  %v10721_v26 = vpack.c.bf16 %v7723_v39, %v7710_v32  ;;  %v10723_v39 = vpack.c.bf16 %v7772_v13, %v7809_v49 }
 0x15d   : > { %1482 = vmatpush1.bf16.msra.mxu0 %v1396_v29  ;;  %v1220_v56 = vsel %vm1170_vm8, %v6390_v42, %v6391_v22  ;;  %v1219_v38 = vsel %vm1170_vm8, %v6350_v30, %v6390_v42  ;;  %v1235_v27 = vsel %vm1170_vm8, %v6400_v41, %v6401_v60  ;;  %v1319_v29 = vpack.c.bf16 %v7994_v24, %v7871_v9 }
 0x15e   : > { %v8222_v34 = vpop.permute.xlu1 %6408  ;;  %v8224_v0 = vpop.permute.xlu0 %6403  ;;  %v1405_v37 = vpack.c.bf16 %v1228_v63, %v1220_v56  ;;  %v1404_v50 = vpack.c.bf16 %v1227_v2, %v1219_v38  ;;  %v1412_v45 = vpack.c.bf16 %v1235_v27, %v1235_v27  ;;  %v7343_v38 = vld [vmem:[%s7623_s16 + $0x10] sm:$0xff] }
 0x15f   : > { %v6410_v57 = vunpack.i.l.bf16 %v8222_v34  ;;  %v10635_v63 = vunpack.i.l.bf16 %v8224_v0  ;;  %v1318_v2 = vpack.c.bf16 %v7738_v51, %v7343_v38 }
 0x160   : > { %1483 = vmatprep.subr.bf16.mxu0 %v1405_v37  ;;  %v1438_v30 = vsel %vm1436_vm5, %v1412_v45, 0  ;;  %v10720_v37 = vpack.c.bf16 %v7980_v8, %v7970_v36  ;;  %v436_v36 = vld [vmem:[%s7623_s16 + $0x48] sm:$0xff] }
 0x161   : > { %1484 = vmatpush1.bf16.msra.mxu0 %v1404_v50  ;;  %v1236_v42 = vsel %vm1170_vm8, %v6401_v60, %v6410_v57  ;;  %v573_v9 = vsel %vm569_vm6, %v10719_v43, %v10635_v63  ;;  %v8286_v32 = vpack.i.bf16 %v436_v36, %v8147_v10 }
 0x162   : > { %v8230_v15 = vpop.permute.xlu1 %6413  ;;  %v8232_v41 = vpop.permute.xlu0 %6418  ;;  %v1413_v61 = vpack.c.bf16 %v1236_v42, %v1236_v42  ;;  %v1335_v50 = vpack.c.bf16 %v8086_v59, %v573_v9  ;;  %v10722_v42 = vunpack.i.h.bf16 %v7902_v23  ;;  %v10724_v23 = vunpack.i.h.bf16 %v7815_v55 }
 0x163   : > { %v10619_v45 = vunpack.i.l.bf16 %v8230_v15  ;;  %v10620_v43 = vunpack.i.l.bf16 %v8232_v41 }
 0x164   : > { %5200 = vmatprep.subr.msk.bf16.mxu0 %vm1436_vm5, %v1413_v61 }
 0x165   : > { %1486 = vmatpush1.bf16.msra.mxu0 %v1438_v30 }
 0x166   : > { %v8243_v60 = vpop.permute.xlu1 %6423  ;;  %v8245_v56 = vpop.permute.xlu0 %6428  ;;  %1502 = vmatprep.subr.bf16.mxu0 %v1319_v29 }
 0x167   : > { %v10618_v29 = vunpack.i.l.bf16 %v8243_v60 }
 0x168   : > { %1494 = vmatmul.mubr.bf16.vlgmr.msra.gmra.mrb[0].mxu0 %v8240_v25 }
 0x169   : > { %1503 = vmatpush1.bf16.msra.mxu0 %v1318_v2  ;;  %5203 = vmatprep.mubr.msk.bf16.mxu0 %vm1432_vm13, %v7877_v4  ;;  %v748_v2 = vsel %vm744_vm9, %v10724_v23, %v10619_v45  ;;  %v10728_v23 = vunpack.i.h.bf16 %v7937_v47  ;;  %v10732_v45 = vunpack.i.h.bf16 %v7918_v28 }
 0x16a   : > { %v8255_v24 = vpop.permute.xlu1 %6433  ;;  %v8257_v27 = vpop.permute.xlu0 %6438  ;;  %1504 = vmatprep.subr.bf16.mxu0 %v10720_v37  ;;  %v1351_v36 = vpack.c.bf16 %v748_v2, %v8124_v58 }
 0x16b   : > { %v6440_v51 = vunpack.i.l.bf16 %v8257_v27  ;;  %v10640_v38 = vunpack.i.h.bf16 %v8257_v27 }
 0x16d   : > { %1505 = vmatpush1.bf16.msra.mxu0 %v10721_v26  ;;  %v8273_v61 = vsel %vm464_vm0, %v10722_v42, %v6440_v51  ;;  %v10631_v42 = vunpack.i.l.bf16 %v8255_v24 }
 0x16e   : > { %v8276_v8 = vpop.permute.xlu1 %6443  ;;  %v8278_v30 = vpop.permute.xlu0 %6448  ;;  %1506 = vmatprep.subr.bf16.mxu0 %v1335_v50  ;;  %v6527_v59 = vpack.i.bf16 %v8273_v61, %v8110_v7  ;;  %v10725_v50 = vpack.c.bf16 %v8068_v44, %v8058_v35  ;;  %v8315_v44 = vsel %vm464_vm0, %v6440_v51, %v10640_v38  ;;  %v10726_v35 = vunpack.i.h.bf16 %v7848_v53 }
 0x16f   : > { %v10729_v51 = vunpack.i.h.bf16 %v7958_v14  ;;  %v10731_v14 = vpack.c.bf16 %v7837_v19, %v7822_v1  ;;  %v10735_v19 = vunpack.i.l.bf16 %v8030_v31 }
 0x170   : > { %6528 = vrot.lane.b32.xlu0 %v6527_v59, %s10702_s6  ;;  %v818_v59 = vsel %vm10621_vm10, %v10726_v35, %v10618_v29  ;;  %v6326_v35 = vunpack.i.h.bf16 %v8030_v31  ;;  %vm10734_vm10 = vcmask 506880   ;;  %v10737_v31 = vunpack.i.h.bf16 %v7989_v20 }
 0x171   : > { %1507 = vmatpush1.bf16.msra.mxu0 %v10723_v39  ;;  %v10727_v39 = vpack.c.bf16 %v7759_v5, %v7764_v6  ;;  %v6411_v20 = vunpack.i.h.bf16 %v8222_v34 }
 0x172   : > { %v8297_v9 = vpop.permute.xlu1 %6453  ;;  %v8299_v37 = vpop.permute.xlu0 %6458  ;;  %1508 = vmatprep.subr.bf16.mxu0 %v10725_v50 }
 0x173   : > { %v10634_v26 = vunpack.i.h.bf16 %v8297_v9  ;;  %v6455_v13 = vunpack.i.l.bf16 %v8297_v9  ;;  %v10633_v49 = vunpack.i.h.bf16 %v8299_v37  ;;  %v6460_v55 = vunpack.i.l.bf16 %v8299_v37 }
 0x174   : > { %6538 = vrot.lane.b32.xlu0 %v8286_v32, %s10704_s27 }
 0x175   : > { %1509 = vmatpush1.bf16.msra.mxu0 %v10727_v39  ;;  %v8328_v50 = vsel %vm499_vm1, %v10728_v23, %v6455_v13  ;;  %v8333_v58 = vsel %vm499_vm1, %v6455_v13, %v10634_v26  ;;  %v8338_v53 = vsel %vm534_vm2, %v10729_v51, %v6460_v55  ;;  %v8343_v5 = vsel %vm534_vm2, %v6460_v55, %v10633_v49  ;;  %v10750_v49 = vld [vmem:[#allocation29_spill] sm:$0xff] }
 0x176   : > { %v8345_v6 = vpop.permute.xlu1 %6463  ;;  %v8347_v47 = vpop.permute.xlu0 %6468  ;;  %1510 = vmatprep.subr.bf16.mxu0 %v1351_v36  ;;  %v6532_v2 = vpack.i.bf16 %v8328_v50, %v8315_v44  ;;  %v6542_v13 = vpack.i.bf16 %v8338_v53, %v8333_v58  ;;  %v10632_v39 = vunpack.i.l.bf16 %v8245_v56  ;;  %v10730_v55 = vunpack.i.h.bf16 %v7850_v54 }
 0x177   : > { %v10623_v36 = vunpack.i.l.bf16 %v8276_v8  ;;  %v10622_v51 = vunpack.i.l.bf16 %v8278_v30  ;;  %v888_v54 = vsel %vm884_vm14, %v10732_v45, %v10631_v42  ;;  %v6466_v28 = vunpack.i.h.bf16 %v8345_v6 }
 0x178   : > { %v783_v23 = vsel %vm779_vm11, %v10730_v55, %v10620_v43  ;;  %6533 = vrot.lane.b32.xlu1 %v6532_v2, %s10702_s6  ;;  %6543 = vrot.lane.b32.xlu0 %v6542_v13, %s10702_s6  ;;  %v992_v13 = vsel %vm987_vm7, %v10735_v19, %v6326_v35  ;;  %v10738_v19 = vunpack.i.h.bf16 %v8028_v33 }
 0x179   : > { %v1359_v29 = vpack.c.bf16 %v818_v59, %v783_v23  ;;  %1511 = vmatpush1.bf16.msra.mxu0 %v10731_v14  ;;  %v10733_v59 = vunpack.i.h.bf16 %v7900_v48  ;;  %v958_v14 = vsel %vm954_vm12, %v10737_v31, %v10622_v51  ;;  %v10624_v23 = vunpack.i.l.bf16 %v8345_v6 }
 0x17a   : > { %v8374_v55 = vpop.permute.xlu1 %6473  ;;  %v8376_v43 = vpop.permute.xlu0 %983  ;;  %v6547_v33 = vpack.i.bf16 %v992_v13, %v8343_v5 }
 0x17b   : > { %1512 = vmatprep.subr.bf16.mxu0 %v1359_v29  ;;  %v6475_v2 = vunpack.i.l.bf16 %v8374_v55  ;;  %v853_v1 = vsel %vm10734_vm10, %v10733_v59, %v10632_v39  ;;  %v10736_v29 = vunpack.i.h.bf16 %v7956_v12  ;;  %v10625_v59 = vunpack.i.l.bf16 %v8347_v47 }
 0x17c   : > { %985 = vrot.lane.b32.xlu1 %v8147_v10, %s10705_s14  ;;  %6553 = vrot.lane.b32.xlu0 %v8286_v32, %s10682_s17  ;;  %v1367_v45 = vpack.c.bf16 %v888_v54, %v853_v1  ;;  %v993_v12 = vsel %vm987_vm7, %v6326_v35, %v8376_v43  ;;  %v10739_v1 = vpack.c.bf16 %v7882_v17, %v7887_v18  ;;  %vm10744_vm10 = vcmask 769024   ;;  %s7464_s14 = smov 66  }
 0x17d   : > { %v923_v48 = vsel %vm919_vm15, %v10736_v29, %v10623_v36  ;;  %v8407_v54 = vsel %vm604_vm3, %v10738_v19, %v6475_v2  ;;  %v10627_v19 = vunpack.i.h.bf16 %v8374_v55  ;;  %v1174_v13 = vsel %vm1170_vm8, %v6411_v20, %v10624_v23 }
 0x17e   : > { %1513 = vmatpush1.bf16.msra.mxu0 %v10739_v1  ;;  %v6562_v29 = vpack.i.bf16 %v8407_v54, %v993_v12  ;;  %v8416_v31 = vpop.permute.xlu1 %6478  ;;  %v8418_v51 = vpop.permute.xlu0 %6483  ;;  %v1375_v17 = vpack.c.bf16 %v958_v14, %v923_v48  ;;  %v10740_v12 = vpack.c.bf16 %v7934_v11, %v7916_v16  ;;  %v10741_v1 = vunpack.i.h.bf16 %v7987_v3 }
 0x17f   : > { %1514 = vmatprep.subr.bf16.mxu0 %v1367_v45  ;;  %v10626_v36 = vunpack.i.l.bf16 %v8416_v31  ;;  %v6481_v18 = vunpack.i.h.bf16 %v8416_v31  ;;  %v10630_v35 = vunpack.i.l.bf16 %v8418_v51  ;;  %v1182_v45 = vsel %vm1170_vm8, %v6466_v28, %v10625_v59 }
 0x180   : > { %6548 = vrot.lane.b32.xlu1 %v6547_v33, %s10702_s6  ;;  %6563 = vrot.lane.b32.xlu0 %v6562_v29, %s10702_s6  ;;  %v1173_v48 = vsel %vm1170_vm8, %v10741_v1, %v6411_v20  ;;  %v10742_v14 = vunpack.i.h.bf16 %v8161_v52  ;;  %v6471_v33 = vunpack.i.h.bf16 %v8347_v47  ;;  %v8454_v52 = vsel %vm604_vm3, %v6475_v2, %v10627_v19 }
 0x181   : > { %v10743_v1 = vunpack.i.h.bf16 %v8038_v21  ;;  %v1198_v21 = vsel %vm1170_vm8, %v6481_v18, %v10630_v35 }
 0x182   : > { %1515 = vmatpush1.bf16.msra.mxu0 %v10740_v12  ;;  %v1181_v29 = vsel %vm1170_vm8, %v10742_v14, %v6466_v28  ;;  %v8443_v16 = vpop.permute.xlu1 %6488  ;;  %v8445_v11 = vpop.permute.xlu0 %6493  ;;  %v7461_v12 = vmov 0   ;;  %v1383_v28 = vpack.c.bf16 %v1182_v45, %v1174_v13  ;;  %v10746_v13 = vld [vmem:[#allocation20_spill] sm:$0xff] }
 0x183   : > { %1516 = vmatprep.subr.bf16.mxu0 %v1375_v17  ;;  %6672 = vset.pattern.permute.xlu1 %v7461_v12  ;;  %v10629_v23 = vunpack.i.h.bf16 %v8443_v16  ;;  %v6490_v59 = vunpack.i.l.bf16 %v8443_v16  ;;  %v10628_v3 = vunpack.i.h.bf16 %v8445_v11  ;;  %v6495_v20 = vunpack.i.l.bf16 %v8445_v11 }
 0x184   : > { %7058 = vset.pattern.permute.xlu0 %v7461_v12  ;;  %6558 = vrot.lane.b32.xlu1 %v8286_v32, %s10681_s15  ;;  %v1190_v17 = vsel %vm1170_vm8, %v6471_v33, %v10626_v36  ;;  %s7466_s15 = smov 120  }
 0x185   : > { %6573 = vrot.lane.b32.xlu0 %v8286_v32, %s10683_s30  ;;  %v8466_v14 = vsel %vm10638_vm4, %v10743_v1, %v6490_v59  ;;  %v8471_v2 = vsel %vm10638_vm4, %v6490_v59, %v10629_v23  ;;  %v8476_v12 = vsel %vm10744_vm10, %v6495_v20, %v10628_v3  ;;  %v10745_v32 = vld [vmem:[#allocation21_spill] sm:$0xff]  ;;  %v6486_v1 = vunpack.i.h.bf16 %v8418_v51  ;;  %s419_s30 = sand.u32 1, %s7431_s22  }
 0x186   : > { %v10747_v45 = vpack.c.bf16 %v10745_v32, %v10746_v13  ;;  %v8485_v36 = vpop.permute.xlu1 %6498  ;;  %v8487_v19 = vpop.permute.xlu0 %6503  ;;  %v6567_v59 = vpack.i.bf16 %v8466_v14, %v8454_v52  ;;  %v1382_v3 = vpack.c.bf16 %v1181_v29, %v1173_v48  ;;  %v10748_v32 = vld [vmem:[#allocation22_spill] sm:$0xff]  ;;  %v1391_v48 = vpack.c.bf16 %v1198_v21, %v1190_v17 }
 0x187   : > { %v10749_v13 = vunpack.i.h.bf16 %v10748_v32  ;;  %v6501_v35 = vunpack.i.h.bf16 %v8485_v36  ;;  %v10637_v42 = vunpack.i.l.bf16 %v8485_v36  ;;  %v10636_v39 = vunpack.i.l.bf16 %v8487_v19  ;;  %v10752_v32 = vld [vmem:[#allocation28_spill] sm:$0xff] }
 0x188   : > { %1517 = vmatpush1.bf16.msra.mxu0 %v10747_v45  ;;  %6568 = vrot.lane.b32.xlu1 %v6567_v59, %s10702_s6  ;;  %v10754_v59 = vunpack.i.h.bf16 %v8179_v62  ;;  %v10759_v62 = vld [vmem:[#allocation30_spill] sm:$0xff] }
 0x189   : > { %1518 = vmatprep.subr.bf16.mxu0 %v1383_v28  ;;  %v8496_v45 = vsel %vm10744_vm10, %v10749_v13, %v6495_v20  ;;  %v10751_v28 = vunpack.i.h.bf16 %v10750_v49  ;;  %v1206_v29 = vsel %vm1170_vm8, %v6486_v1, %v10637_v42  ;;  %v1214_v20 = vsel %vm1170_vm8, %v6501_v35, %v10636_v39 }
 0x18a   : > { %v10753_v13 = vunpack.i.h.bf16 %v10752_v32  ;;  %v8514_v63 = vpop.permute.xlu1 %6508  ;;  %v8516_v49 = vpop.permute.xlu0 %6513  ;;  %v10755_v32 = vld [vmem:[#allocation26_spill] sm:$0xff]  ;;  %vm10757_vm10 = vcmask 760832  }
 0x18b   : > { %v1197_v26 = vsel %vm1170_vm8, %v10751_v28, %v6481_v18  ;;  %v6577_v18 = vpack.i.bf16 %v8496_v45, %v8471_v2  ;;  %v6510_v17 = vunpack.i.l.bf16 %v8514_v63  ;;  %v1213_v28 = vsel %vm1170_vm8, %v10754_v59, %v6501_v35  ;;  %vm10758_vm4 = vmmov %vm10757_vm10 }
 0x18c   : > { %1519 = vmatpush1.bf16.msra.mxu0 %v1382_v3  ;;  %v1189_v23 = vsel %vm1170_vm8, %v10753_v13, %v6471_v33  ;;  %v10639_v3 = vunpack.i.h.bf16 %v8514_v63  ;;  %v1399_v33 = vpack.c.bf16 %v1214_v20, %v1206_v29  ;;  %v10756_v13 = vunpack.i.h.bf16 %v10755_v32 }
 0x18d   : > { %1520 = vmatprep.subr.bf16.mxu0 %v1391_v48  ;;  %v1390_v21 = vpack.c.bf16 %v1197_v26, %v1189_v23  ;;  %6578 = vrot.lane.b32.xlu1 %v6577_v18, %s10702_s6  ;;  %v6516_v48 = vunpack.i.h.bf16 %v8516_v49  ;;  %v6515_v42 = vunpack.i.l.bf16 %v8516_v49  ;;  %v10760_v23 = vunpack.i.h.bf16 %v10759_v62 }
 0x18e   : > { %v8529_v39 = vsel %vm10757_vm10, %v10756_v13, %v6510_v17  ;;  %v8536_v26 = vsel %vm10758_vm4, %v6510_v17, %v10639_v3  ;;  %v6506_v29 = vunpack.i.h.bf16 %v8487_v19  ;;  %v8542_v20 = vpop.permute.xlu1 %6518  ;;  %v8544_v18 = vpop.permute.xlu0 %6523  ;;  %vm10783_vm10 = vcmask 506880  }
 0x18f   : > { %v1205_v35 = vsel %vm1170_vm8, %v10760_v23, %v6486_v1  ;;  %v6582_v59 = vpack.i.bf16 %v8529_v39, %v8476_v12  ;;  %v6520_v32 = vunpack.i.l.bf16 %v8542_v20  ;;  %v6525_v17 = vunpack.i.l.bf16 %v8544_v18  ;;  %v10761_v1 = vld [vmem:[#allocation15_spill] sm:$0xff] }
 0x190   : > { %1521 = vmatpush1.bf16.msra.mxu0 %v1390_v21  ;;  %v6521_v21 = vunpack.i.h.bf16 %v8542_v20  ;;  %v1398_v13 = vpack.c.bf16 %v1213_v28, %v1205_v35  ;;  %v6592_v62 = vpack.i.bf16 %v8147_v10, %v10761_v1  ;;  %v1222_v3 = vsel %vm1170_vm8, %v6506_v29, %v6515_v42 }
 0x191   : > { %1522 = vmatprep.subr.bf16.mxu0 %v1399_v33  ;;  %1164 = vrot.lane.b32.xlu1 %v8536_v26, %s10702_s6  ;;  %v10762_v33 = vunpack.i.h.bf16 %v8195_v46  ;;  %v1230_v28 = vsel %vm1170_vm8, %v6516_v48, %v6520_v32 }
 0x192   : > { %6583 = vrot.lane.b32.xlu0 %v6582_v59, %s10702_s6  ;;  %v8565_v35 = vpop.permute.xlu1 %563  ;;  %v8567_v38 = vpop.permute.xlu0 %738  ;;  %v1407_v59 = vpack.c.bf16 %v1230_v28, %v1222_v3  ;;  %v1238_v10 = vsel %vm1170_vm8, %v6521_v21, %v6525_v17  ;;  %v1237_v46 = vsel %vm1170_vm8, %v6410_v57, %v6521_v21  ;;  %v10764_v21 = vld [vmem:[#allocation14_spill] sm:$0xff] }
 0x193   : > { %v1229_v23 = vsel %vm1170_vm8, %v10762_v33, %v6516_v48  ;;  %v1415_v1 = vpack.c.bf16 %v1238_v10, %v1238_v10  ;;  %v1414_v3 = vpack.c.bf16 %v1237_v46, %v1237_v46  ;;  %v6406_v10 = vunpack.i.h.bf16 %v8224_v0 }
 0x194   : > { %1523 = vmatpush1.bf16.msra.mxu0 %v1398_v13  ;;  %v1221_v13 = vsel %vm1170_vm8, %v6391_v22, %v6506_v29  ;;  %v10763_v22 = vld [vmem:[#allocation16_spill] sm:$0xff] }
 0x195   : > { %6593 = vrot.lane.b32.xlu1 %v6592_v62, %s10687_s28  ;;  %v1406_v48 = vpack.c.bf16 %v1229_v23, %v1221_v13  ;;  %1524 = vmatprep.subr.bf16.mxu0 %v1407_v59  ;;  %v1444_v40 = vsel %vm1436_vm5, %v1414_v3, 0  ;;  %v1321_v34 = vpack.c.bf16 %v8273_v61, %v10763_v22  ;;  %v10765_v23 = vld [vmem:[#allocation19_spill] sm:$0xff]  ;;  %v1329_v61 = vpack.c.bf16 %v8338_v53, %v8328_v50  ;;  %s5400_s28 = sshll.u32 %s7556_s25, 4 }
 0x196   : > { %6588 = vrot.lane.b32.xlu0 %v6592_v62, %s10686_s20  ;;  %v8580_v33 = vpop.permute.xlu1 %773  ;;  %v8582_v28 = vpop.permute.xlu0 %808  ;;  %v1320_v59 = vpack.c.bf16 %v10765_v23, %v10764_v21  ;;  %v575_v46 = vsel %vm569_vm6, %v6406_v10, %v8565_v35  ;;  %v10767_v50 = vunpack.i.l.bf16 %v8224_v0  ;;  %v10769_v21 = vld [vmem:[#allocation17_spill] sm:$0xff]  ;;  %v6416_v0 = vunpack.i.h.bf16 %v8230_v15 }
 0x198   : > { %1525 = vmatpush1.bf16.msra.mxu0 %v1406_v48  ;;  %v574_v53 = vsel %vm569_vm6, %v10767_v50, %v6406_v10 }
 0x199   : > { %5202 = vmatprep.subr.msk.bf16.mxu0 %vm1436_vm5, %v1415_v1  ;;  %6603 = vrot.lane.b32.xlu1 %v6592_v62, %s10690_s19  ;;  %v10766_v1 = vunpack.i.h.bf16 %v8257_v27 }
 0x19a   : > { %6598 = vrot.lane.b32.xlu0 %v6592_v62, %s10688_s23  ;;  %v8590_v57 = vpop.permute.xlu1 %843  ;;  %v8592_v29 = vpop.permute.xlu0 %878 }
 0x19c   : > { %1527 = vmatpush1.bf16.msra.mxu0 %v1444_v40  ;;  %v1337_v40 = vpack.c.bf16 %v8407_v54, %v575_v46  ;;  %v10772_v54 = vld [vmem:[#allocation25_spill] sm:$0xff]  ;;  %v1345_v46 = vpack.c.bf16 %v8496_v45, %v8466_v14  ;;  %v10774_v45 = vunpack.i.l.bf16 %v8230_v15  ;;  %v6436_v15 = vunpack.i.h.bf16 %v8255_v24 }
 0x19d   : > { %1543 = vmatprep.subr.bf16.mxu0 %v1321_v34  ;;  %6613 = vrot.lane.b32.xlu1 %v6592_v62, %s10691_s29  ;;  %v10768_v34 = vld [vmem:[#allocation18_spill] sm:$0xff]  ;;  %v1336_v10 = vpack.c.bf16 %v10772_v54, %v574_v53  ;;  %v6426_v53 = vunpack.i.h.bf16 %v8243_v60  ;;  %v10777_v54 = vld [vmem:[#allocation23_spill] sm:$0xff] }
 0x19e   : > { %6608 = vrot.lane.b32.xlu0 %v6592_v62, %s10712_s21  ;;  %v463_v13 = vpop.permute.xlu1 %462  ;;  %v8604_v48 = vpop.permute.xlu0 %913  ;;  %v10770_v23 = vpack.c.bf16 %v10768_v34, %v10769_v21  ;;  %v749_v21 = vsel %vm744_vm9, %v10774_v45, %v6416_v0 }
 0x19f   : > { %1535 = vmatmul.mubr.bf16.vlgmr.msra.gmra.mrb[4].mxu0 %v8240_v25  ;;  %v8611_v3 = vsel %vm464_vm0, %v10766_v1, %v463_v13 }
 0x1a0   : > { %1544 = vmatpush1.bf16.msra.mxu0 %v1320_v59  ;;  %5205 = vmatprep.mubr.msk.bf16.mxu0 %vm1432_vm13, %v7877_v4  ;;  %v6632_v22 = vpack.i.bf16 %v463_v13, %v8611_v3  ;;  %v750_v13 = vsel %vm744_vm9, %v6416_v0, %v8567_v38  ;;  %v10779_v0 = vld [vmem:[#allocation27_spill] sm:$0xff] }
 0x1a1   : > { %1545 = vmatprep.subr.bf16.mxu0 %v1329_v61  ;;  %6623 = vrot.lane.b32.xlu1 %v6592_v62, %s10694_s0  ;;  %v10771_v61 = vunpack.i.h.bf16 %v8297_v9  ;;  %s420_s0 = scalar_lea.vmem [#allocation5], %s419_s30 }
 0x1a2   : > { %6618 = vrot.lane.b32.xlu0 %v6592_v62, %s10713_s24  ;;  %v8623_v27 = vpop.permute.xlu1 %948  ;;  %v498_v59 = vpop.permute.xlu0 %497  ;;  %s5124_s1 = sshll.u32 %s420_s0, 4  ;;  %s10480_s1 = int_to_ptr.vmem [resolvable:$true] %s5124_s1 }
 0x1a3   : > { %v8628_v1 = vsel %vm499_vm1, %v10771_v61, %v498_v59  ;;  %v10776_v61 = vld [vmem:[#allocation24_spill] sm:$0xff]  ;;  %s7373_s25 = scalar_lea.vmem %s10480_s1, 16 }
 0x1a4   : > { %1546 = vmatpush1.bf16.msra.mxu0 %v10770_v23  ;;  %v6637_v9 = vpack.i.bf16 %v498_v59, %v8628_v1  ;;  %p7374_p6 = scmp.ne.s32.totalorder %s10480_s1, %s7373_s25 }
 0x1a5   : > { %1547 = vmatprep.subr.bf16.mxu0 %v1337_v40  ;;  %6633 = vrot.lane.b32.xlu1 %v6632_v22, %s10702_s6  ;;  %v10773_v40 = vunpack.i.h.bf16 %v8299_v37  ;;  %v1353_v37 = vpack.c.bf16 %v750_v13, %v8529_v39  ;;  %v10780_v39 = vunpack.i.l.bf16 %v8232_v41 }
 0x1a6   : > { %6628 = vrot.lane.b32.xlu0 %v6592_v62, %s10702_s6  ;;  %v533_v50 = vpop.permute.xlu1 %532  ;;  %v6421_v62 = vunpack.i.h.bf16 %v8232_v41  ;;  %v10784_v41 = vunpack.i.l.bf16 %v8245_v56  ;;  %p7375_p10 = pnand %p7374_p6, %p10904_p9 }
 0x1a7   : > { %v8642_v34 = vsel %vm534_vm2, %v10773_v40, %v533_v50  ;;  %vm10775_vm2 = vcmask 515072  }
 0x1a8   : > { %1548 = vmatpush1.bf16.msra.mxu0 %v1336_v10  ;;  %v6642_v22 = vpack.i.bf16 %v533_v50, %v8642_v34  ;;  %v1331_v14 = vpack.c.bf16 %v8642_v34, %v8628_v1  ;;  %v785_v23 = vsel %vm779_vm11, %v6421_v62, %v8580_v33  ;;  %v820_v59 = vsel %vm10775_vm2, %v6426_v53, %v8582_v28  ;;  %vm10782_vm4 = vmmov %vm10775_vm2  ;;  %p7376_p12 = pneg %p7375_p10 }
 0x1a9   : > { %1549 = vmatprep.subr.bf16.mxu0 %v1345_v46  ;;  %v10778_v10 = vpack.c.bf16 %v10776_v61, %v10777_v54  ;;  %v6431_v46 = vunpack.i.h.bf16 %v8245_v56  ;;  %v784_v13 = vsel %vm779_vm11, %v10780_v39, %v6421_v62  ;;  %v10781_v50 = vunpack.i.l.bf16 %v8243_v60  ;;  %vm10785_vm2 = vmmov %vm10783_vm10 }
 0x1aa   : > { %6638 = vrot.lane.b32.xlu0 %v6637_v9, %s10702_s6  ;;  %6643 = vrot.lane.b32.xlu1 %v6642_v22, %s10702_s6  ;;  %v1352_v9 = vpack.c.bf16 %v749_v21, %v10779_v0  ;;  %v1361_v45 = vpack.c.bf16 %v820_v59, %v785_v23  ;;  %v890_v22 = vsel %vm884_vm14, %v6436_v15, %v8592_v29  ;;  %v10786_v60 = vunpack.i.l.bf16 %v8255_v24 }
 0x1ab   : > { %v819_v40 = vsel %vm10782_vm4, %v10781_v50, %v6426_v53  ;;  %v855_v61 = vsel %vm10783_vm10, %v6431_v46, %v8590_v57  ;;  %v854_v62 = vsel %vm10785_vm2, %v10784_v41, %v6431_v46  ;;  %v6446_v23 = vunpack.i.h.bf16 %v8276_v8 }
 0x1ac   : > { %1550 = vmatpush1.bf16.msra.mxu0 %v10778_v10  ;;  %v1360_v21 = vpack.c.bf16 %v819_v40, %v784_v13  ;;  %v889_v53 = vsel %vm884_vm14, %v10786_v60, %v6436_v15  ;;  %v1369_v59 = vpack.c.bf16 %v890_v22, %v855_v61  ;;  %v10787_v56 = vunpack.i.l.bf16 %v8276_v8 }
 0x1ad   : > { %1551 = vmatprep.subr.bf16.mxu0 %v1353_v37  ;;  %v6451_v37 = vunpack.i.h.bf16 %v8278_v30  ;;  %v925_v10 = vsel %vm919_vm15, %v6446_v23, %v8604_v48  ;;  %v1368_v0 = vpack.c.bf16 %v889_v53, %v854_v62  ;;  %v10788_v24 = vunpack.i.l.bf16 %v8278_v30 }
 0x1ae   : > { %v924_v46 = vsel %vm919_vm15, %v10787_v56, %v6446_v23  ;;  %v6526_v8 = vunpack.i.h.bf16 %v8544_v18  ;;  %v10789_v30 = vunpack.i.h.bf16 %v8374_v55  ;;  %v10790_v53 = vunpack.i.l.bf16 %v8347_v47 }
 0x1af   : > { %v960_v54 = vsel %vm954_vm12, %v6451_v37, %v8623_v27  ;;  %v959_v15 = vsel %vm954_vm12, %v10788_v24, %v6451_v37  ;;  %v10791_v55 = vunpack.i.l.bf16 %v8345_v6  ;;  %vm10793_vm4 = vcmask 777216  }
 0x1b0   : > { %1552 = vmatpush1.bf16.msra.mxu0 %v1352_v9  ;;  %v1377_v9 = vpack.c.bf16 %v960_v54, %v925_v10  ;;  %v1376_v39 = vpack.c.bf16 %v959_v15, %v924_v46  ;;  %vm10794_vm10 = vmmov %vm10793_vm4 }
 0x1b1   : > { %1553 = vmatprep.subr.bf16.mxu0 %v1361_v45  ;;  %v1175_v54 = vsel %vm1170_vm8, %v10791_v55, %v6526_v8 }
 0x1b4   : > { %1554 = vmatpush1.bf16.msra.mxu0 %v1360_v21 }
 0x1b5   : > { %1555 = vmatprep.subr.bf16.mxu0 %v1369_v59 }
 0x1b8   : > { %1556 = vmatpush1.bf16.msra.mxu0 %v1368_v0 }
 0x1b9   : > { %1557 = vmatprep.subr.bf16.mxu0 %v1377_v9 }
 0x1bc   : > { %1558 = vmatpush1.bf16.msra.mxu0 %v1376_v39 }
 0x1e2   : > { %v8693_v13 = vpop.permute.xlu0 %6528 }
 0x1e3   : > { %v6531_v40 = vunpack.i.h.bf16 %v8693_v13  ;;  %v6530_v22 = vunpack.i.l.bf16 %v8693_v13  ;;  %v10807_v13 = vpack.c.bf16 %v8476_v12, %v8471_v2 }
 0x1e5   : > { %v1183_v23 = vsel %vm1170_vm8, %v10790_v53, %v6531_v40  ;;  %v1176_v10 = vsel %vm1170_vm8, %v6526_v8, %v6530_v22  ;;  %v10792_v8 = vunpack.i.h.bf16 %v8443_v16 }
 0x1e6   : > { %v6539_v50 = vpop.permute.xlu0 %6538  ;;  %v1384_v15 = vpack.c.bf16 %v1183_v23, %v1175_v54  ;;  %v10796_v23 = vunpack.i.l.bf16 %v8418_v51 }
 0x1e7   : > { %v6541_v45 = vunpack.i.h.bf16 %v6539_v50  ;;  %v6540_v61 = vunpack.i.l.bf16 %v6539_v50 }
 0x1e9   : > { %v8701_v37 = vsel %vm604_vm3, %v10789_v30, %v6540_v61  ;;  %v998_v21 = vsel %vm604_vm3, %v6540_v61, %v6541_v45 }
 0x1ea   : > { %v8704_v41 = vpop.permute.xlu1 %6533  ;;  %v8706_v62 = vpop.permute.xlu0 %6543  ;;  %v6652_v60 = vpack.i.bf16 %v998_v21, %v8701_v37 }
 0x1eb   : > { %v6535_v59 = vunpack.i.l.bf16 %v8704_v41  ;;  %v6536_v47 = vunpack.i.h.bf16 %v8704_v41  ;;  %v6546_v9 = vunpack.i.h.bf16 %v8706_v62  ;;  %v6545_v61 = vunpack.i.l.bf16 %v8706_v62 }
 0x1ec   : > { %6653 = vrot.lane.b32.xlu1 %v6652_v60, %s10702_s6 }
 0x1ed   : > { %v1184_v0 = vsel %vm1170_vm8, %v6531_v40, %v6535_v59  ;;  %v1199_v16 = vsel %vm1170_vm8, %v10796_v23, %v6546_v9 }
 0x1ee   : > { %v986_v56 = vpop.permute.xlu1 %985  ;;  %v6554_v46 = vpop.permute.xlu0 %6553  ;;  %v1385_v24 = vpack.c.bf16 %v1184_v0, %v1176_v10  ;;  %v1192_v10 = vsel %vm1170_vm8, %v6536_v47, %v6545_v61 }
 0x1ef   : > { %v994_v6 = vsel %vm987_vm7, %v8376_v43, %v986_v56  ;;  %v6556_v39 = vunpack.i.h.bf16 %v6554_v46  ;;  %v6555_v50 = vunpack.i.l.bf16 %v6554_v46  ;;  %v10795_v43 = vunpack.i.l.bf16 %v8416_v31 }
 0x1f0   : > { %v6647_v45 = vpack.i.bf16 %v986_v56, %v994_v6  ;;  %1559 = vmatprep.subr.bf16.mxu0 %v1385_v24  ;;  %vm10798_vm7 = vcmask 769024  }
 0x1f1   : > { %v8731_v40 = vsel %vm10793_vm4, %v10792_v8, %v6555_v50  ;;  %v1001_v30 = vsel %vm10794_vm10, %v6555_v50, %v6556_v39  ;;  %1560 = vmatpush1.bf16.msra.mxu0 %v1384_v15  ;;  %v1191_v53 = vsel %vm1170_vm8, %v10795_v43, %v6536_v47  ;;  %v10797_v8 = vunpack.i.h.bf16 %v8445_v11  ;;  %vm10799_vm2 = vmmov %vm10798_vm7 }
 0x1f2   : > { %v8734_v21 = vpop.permute.xlu1 %6548  ;;  %6648 = vrot.lane.b32.xlu0 %v6647_v45, %s10702_s6  ;;  %v8737_v60 = vpop.permute.xlu0 %6563  ;;  %v6657_v54 = vpack.i.bf16 %v1001_v30, %v8731_v40  ;;  %v1392_v51 = vpack.c.bf16 %v1199_v16, %v1191_v53  ;;  %v10800_v43 = vunpack.i.h.bf16 %v8514_v63  ;;  %vm10801_vm4 = vcmask 760832  }
 0x1f3   : > { %v6550_v55 = vunpack.i.l.bf16 %v8734_v21  ;;  %v6551_v50 = vunpack.i.h.bf16 %v8734_v21  ;;  %v6566_v45 = vunpack.i.h.bf16 %v8737_v60  ;;  %v6565_v47 = vunpack.i.l.bf16 %v8737_v60  ;;  %vm10802_vm10 = vmmov %vm10801_vm4 }
 0x1f4   : > { %v10804_v63 = vunpack.i.l.bf16 %v8487_v19 }
 0x1f5   : > { %v1200_v0 = vsel %vm1170_vm8, %v6546_v9, %v6550_v55 }
 0x1f6   : > { %v6559_v56 = vpop.permute.xlu1 %6558  ;;  %6658 = vrot.lane.b32.xlu0 %v6657_v54, %s10702_s6  ;;  %v1393_v46 = vpack.c.bf16 %v1200_v0, %v1192_v10  ;;  %v10803_v0 = vunpack.i.l.bf16 %v8485_v36 }
 0x1f7   : > { %v6574_v31 = vpop.permute.xlu0 %6573  ;;  %v6561_v24 = vunpack.i.h.bf16 %v6559_v56  ;;  %v6560_v15 = vunpack.i.l.bf16 %v6559_v56 }
 0x1f8   : > { %v6576_v6 = vunpack.i.h.bf16 %v6574_v31  ;;  %v6575_v39 = vunpack.i.l.bf16 %v6574_v31  ;;  %1561 = vmatprep.subr.bf16.mxu0 %v1393_v46  ;;  %v1207_v56 = vsel %vm1170_vm8, %v10803_v0, %v6551_v50  ;;  %v1215_v31 = vsel %vm1170_vm8, %v10804_v63, %v6566_v45  ;;  %v1420_v46 = vld [vmem:[%s10522_s2] sm:$0xff] }
 0x1f9   : > { %v8760_v9 = vsel %vm10798_vm7, %v10797_v8, %v6560_v15  ;;  %v1004_v30 = vsel %vm10799_vm2, %v6560_v15, %v6561_v24  ;;  %1562 = vmatpush1.bf16.msra.mxu0 %v1392_v51  ;;  %v1208_v51 = vsel %vm1170_vm8, %v6551_v50, %v6565_v47  ;;  %v1400_v15 = vpack.c.bf16 %v1215_v31, %v1207_v56 }
 0x1fa   : > { %v8766_v53 = vsel %vm10801_vm4, %v10800_v43, %v6575_v39  ;;  %v1007_v23 = vsel %vm10802_vm10, %v6575_v39, %v6576_v6  ;;  %v8769_v16 = vpop.permute.xlu1 %6568  ;;  %v6662_v10 = vpack.i.bf16 %v1004_v30, %v8760_v9  ;;  %vm10806_vm7 = vcmask 515072  }
 0x1fb   : > { %v6667_v54 = vpack.i.bf16 %v1007_v23, %v8766_v53  ;;  %v6570_v11 = vunpack.i.l.bf16 %v8769_v16  ;;  %v6571_v8 = vunpack.i.h.bf16 %v8769_v16  ;;  %vm10809_vm2 = vmmov %vm10806_vm7 }
 0x1fc   : > { %6663 = vrot.lane.b32.xlu1 %v6662_v10, %s10702_s6 }
 0x1fd   : > { %6668 = vrot.lane.b32.xlu0 %v6667_v54, %s10702_s6  ;;  %v1216_v36 = vsel %vm1170_vm8, %v6566_v45, %v6570_v11  ;;  %v1223_v20 = vsel %vm1170_vm8, %v6515_v42, %v6571_v8  ;;  %s7463_s6 = smov 122  }
 0x1fe   : > { %v1401_v19 = vpack.c.bf16 %v1216_v36, %v1208_v51 }
 0x1ff   : > { %v8791_v24 = vpop.permute.xlu1 %6578 }
 0x200   : > { %v6581_v6 = vunpack.i.h.bf16 %v8791_v24  ;;  %1423 = vperm.xlu1 %6672, %v1420_v46   ;;  %1563 = vmatprep.subr.bf16.mxu0 %v1401_v19  ;;  %v6580_v39 = vunpack.i.l.bf16 %v8791_v24 }
 0x201   : > { %1564 = vmatpush1.bf16.msra.mxu0 %v1400_v15 }
 0x202   : > { %v1231_v23 = vsel %vm1170_vm8, %v6520_v32, %v6581_v6  ;;  %v1224_v54 = vsel %vm1170_vm8, %v6571_v8, %v6580_v39 }
 0x203   : > { %v8796_v30 = vpop.permute.xlu1 %1164  ;;  %v1408_v46 = vpack.c.bf16 %v1231_v23, %v1223_v20  ;;  %v1322_v23 = vpack.c.bf16 %v8315_v44, %v8110_v7  ;;  %v10805_v20 = vpack.c.bf16 %v8343_v5, %v8333_v58 }
 0x204   : > { %v8798_v50 = vpop.permute.xlu0 %6583 }
 0x205   : > { %v6586_v43 = vunpack.i.h.bf16 %v8798_v50  ;;  %v6585_v45 = vunpack.i.l.bf16 %v8798_v50 }
 0x207   : > { %v1232_v10 = vsel %vm1170_vm8, %v6581_v6, %v6585_v45  ;;  %v1240_v0 = vsel %vm1170_vm8, %v6586_v43, %v8796_v30  ;;  %v1239_v56 = vsel %vm1170_vm8, %v6525_v17, %v6586_v43  ;;  %v6594_v32 = vpop.permute.xlu1 %6593  ;;  %v7344_v6 = vld [vmem:[%s7623_s16 + $0x38] sm:$0xff]  ;;  %s7465_s16 = smov 58  }
 0x208   : > { %v6589_v63 = vpop.permute.xlu0 %6588  ;;  %v1409_v31 = vpack.c.bf16 %v1232_v10, %v1224_v54  ;;  %v1417_v51 = vpack.c.bf16 %v1240_v0, %v1240_v0  ;;  %v1416_v36 = vpack.c.bf16 %v1239_v56, %v1239_v56  ;;  %v1323_v17 = vpack.c.bf16 %v8611_v3, %v7344_v6 }
 0x209   : > { %v6591_v49 = vunpack.i.h.bf16 %v6589_v63  ;;  %v6590_v43 = vunpack.i.l.bf16 %v6589_v63  ;;  %v6596_v7 = vunpack.i.h.bf16 %v6594_v32  ;;  %v6595_v44 = vunpack.i.l.bf16 %v6594_v32 }
 0x20a   : > { %1565 = vmatprep.subr.bf16.mxu0 %v1409_v31  ;;  %v1450_v18 = vsel %vm1436_vm5, %v1416_v36, 0 }
 0x20b   : > { %1566 = vmatpush1.bf16.msra.mxu0 %v1408_v46  ;;  %v6604_v19 = vpop.permute.xlu1 %6603  ;;  %v577_v54 = vsel %vm569_vm6, %v6590_v43, %v6591_v49  ;;  %v576_v3 = vsel %vm569_vm6, %v8565_v35, %v6590_v43  ;;  %v1347_v35 = vpack.c.bf16 %v8760_v9, %v8731_v40  ;;  %v752_v32 = vsel %vm744_vm9, %v6595_v44, %v6596_v7 }
 0x20c   : > { %v6599_v15 = vpop.permute.xlu0 %6598  ;;  %5204 = vmatprep.subr.msk.bf16.mxu0 %vm1436_vm5, %v1417_v51  ;;  %v1339_v56 = vpack.c.bf16 %v8701_v37, %v577_v54  ;;  %v1338_v1 = vpack.c.bf16 %v8454_v52, %v576_v3  ;;  %v6606_v34 = vunpack.i.h.bf16 %v6604_v19  ;;  %v6605_v51 = vunpack.i.l.bf16 %v6604_v19 }
 0x20d   : > { %v6600_v37 = vunpack.i.l.bf16 %v6599_v15  ;;  %v751_v52 = vsel %vm744_vm9, %v8567_v38, %v6595_v44  ;;  %v1355_v41 = vpack.c.bf16 %v752_v32, %v8766_v53  ;;  %vm10808_vm9 = vcmask 506880  }
 0x20e   : > { %v822_v19 = vsel %vm10806_vm7, %v6605_v51, %v6606_v34  ;;  %v821_v53 = vsel %vm10809_vm2, %v8582_v28, %v6605_v51  ;;  %vm10810_vm4 = vmmov %vm10808_vm9 }
 0x20f   : > { %1568 = vmatpush1.bf16.msra.mxu0 %v1450_v18  ;;  %v6614_v42 = vpop.permute.xlu1 %6613 }
 0x210   : > { %v6609_v8 = vpop.permute.xlu0 %6608  ;;  %1584 = vmatprep.subr.bf16.mxu0 %v1323_v17  ;;  %v6616_v18 = vunpack.i.h.bf16 %v6614_v42 }
 0x211   : > { %v6611_v40 = vunpack.i.h.bf16 %v6609_v8 }
 0x212   : > { %1576 = vmatmul.mubr.bf16.vlgmr.msra.gmra.mrb[8].mxu0 %v8240_v25 }
 0x213   : > { %1585 = vmatpush1.bf16.msra.mxu0 %v1322_v23  ;;  %v8827_v10 = vpop.permute.xlu1 %6623  ;;  %5207 = vmatprep.mubr.msk.bf16.mxu0 %vm1432_vm13, %v7877_v4 }
 0x214   : > { %v8829_v0 = vpop.permute.xlu0 %6618  ;;  %1586 = vmatprep.subr.bf16.mxu0 %v1331_v14  ;;  %v6601_v14 = vunpack.i.h.bf16 %v6599_v15  ;;  %v6615_v15 = vunpack.i.l.bf16 %v6614_v42  ;;  %v6626_v6 = vunpack.i.h.bf16 %v8827_v10  ;;  %v786_v42 = vsel %vm779_vm11, %v8580_v33, %v6600_v37 }
 0x215   : > { %v6621_v17 = vunpack.i.h.bf16 %v8829_v0  ;;  %v6625_v2 = vunpack.i.l.bf16 %v8827_v10  ;;  %v6620_v12 = vunpack.i.l.bf16 %v8829_v0 }
 0x216   : > { %v787_v9 = vsel %vm779_vm11, %v6600_v37, %v6601_v14  ;;  %v892_v43 = vsel %vm884_vm14, %v6615_v15, %v6616_v18  ;;  %v891_v3 = vsel %vm884_vm14, %v8592_v29, %v6615_v15 }
 0x217   : > { %1587 = vmatpush1.bf16.msra.mxu0 %v10805_v20  ;;  %v6634_v63 = vpop.permute.xlu1 %6633  ;;  %v1363_v38 = vpack.c.bf16 %v822_v19, %v787_v9  ;;  %v927_v23 = vsel %vm919_vm15, %v6620_v12, %v6621_v17  ;;  %v962_v54 = vsel %vm954_vm12, %v6625_v2, %v6626_v6  ;;  %v926_v20 = vsel %vm919_vm15, %v8604_v48, %v6620_v12 }
 0x218   : > { %v6629_v31 = vpop.permute.xlu0 %6628  ;;  %1588 = vmatprep.subr.bf16.mxu0 %v1339_v56  ;;  %v6635_v46 = vunpack.i.l.bf16 %v6634_v63  ;;  %v6636_v7 = vunpack.i.h.bf16 %v6634_v63  ;;  %v1379_v0 = vpack.c.bf16 %v962_v54, %v927_v23  ;;  %v961_v56 = vsel %vm954_vm12, %v8623_v27, %v6625_v2 }
 0x219   : > { %v6630_v4 = vunpack.i.l.bf16 %v6629_v31  ;;  %v6631_v33 = vunpack.i.h.bf16 %v6629_v31 }
 0x21a   : > { %v1185_v58 = vsel %vm1170_vm8, %v6535_v59, %v6635_v46  ;;  %v6610_v59 = vunpack.i.l.bf16 %v6609_v8  ;;  %v1362_v8 = vpack.c.bf16 %v821_v53, %v786_v42 }
 0x21b   : > { %v1177_v5 = vsel %vm1170_vm8, %v6530_v22, %v6630_v4  ;;  %1589 = vmatpush1.bf16.msra.mxu0 %v1338_v1  ;;  %v1354_v22 = vpack.c.bf16 %v751_v52, %v8536_v26  ;;  %v1178_v29 = vsel %vm1170_vm8, %v6630_v4, %v6631_v33 }
 0x21c   : > { %1590 = vmatprep.subr.bf16.mxu0 %v1347_v35  ;;  %v1386_v36 = vpack.c.bf16 %v1185_v58, %v1177_v5  ;;  %v857_v49 = vsel %vm10808_vm9, %v6610_v59, %v6611_v40  ;;  %v856_v28 = vsel %vm10810_vm4, %v8590_v57, %v6610_v59  ;;  %v6644_v10 = vpop.permute.xlu1 %6643  ;;  %v6639_v1 = vpop.permute.xlu0 %6638  ;;  %v1186_v57 = vsel %vm1170_vm8, %v6635_v46, %v6636_v7 }
 0x21d   : > { %v1371_v26 = vpack.c.bf16 %v892_v43, %v857_v49  ;;  %v1370_v44 = vpack.c.bf16 %v891_v3, %v856_v28  ;;  %v6646_v34 = vunpack.i.h.bf16 %v6644_v10  ;;  %v6645_v14 = vunpack.i.l.bf16 %v6644_v10 }
 0x21e   : > { %v6641_v63 = vunpack.i.h.bf16 %v6639_v1  ;;  %v6640_v31 = vunpack.i.l.bf16 %v6639_v1  ;;  %v1378_v35 = vpack.c.bf16 %v961_v56, %v926_v20  ;;  %v1387_v32 = vpack.c.bf16 %v1186_v57, %v1178_v29 }
 0x21f   : > { %1591 = vmatpush1.bf16.msra.mxu0 %v10807_v13  ;;  %v1202_v51 = vsel %vm1170_vm8, %v6645_v14, %v6646_v34  ;;  %v1201_v48 = vsel %vm1170_vm8, %v6550_v55, %v6645_v14  ;;  %vm1841_vm4 = vcmask 998400  }
 0x220   : > { %1592 = vmatprep.subr.bf16.mxu0 %v1355_v41  ;;  %v1194_v27 = vsel %vm1170_vm8, %v6640_v31, %v6641_v63  ;;  %v1193_v46 = vsel %vm1170_vm8, %v6545_v61, %v6640_v31 }
 0x221   : > { %v1395_v37 = vpack.c.bf16 %v1202_v51, %v1194_v27  ;;  %v1394_v4 = vpack.c.bf16 %v1201_v48, %v1193_v46  ;;  %v10647_v48 = vmov 0.0  }
 0x222   : > { %5638 = vmatprep.subr.bf16.mxu1 %v10647_v48 }
 0x223   : > { %1593 = vmatpush1.bf16.msra.mxu0 %v1354_v22 }
 0x224   : > { %1594 = vmatprep.subr.bf16.mxu0 %v1363_v38 }
 0x227   : > { %1595 = vmatpush1.bf16.msra.mxu0 %v1362_v8 }
 0x228   : > { %1596 = vmatprep.subr.bf16.mxu0 %v1371_v26 }
 0x22b   : > { %1597 = vmatpush1.bf16.msra.mxu0 %v1370_v44 }
 0x22c   : > { %1598 = vmatprep.subr.bf16.mxu0 %v1379_v0 }
 0x22f   : > { %1599 = vmatpush1.bf16.msra.mxu0 %v1378_v35 }
 0x230   : > { %1600 = vmatprep.subr.bf16.mxu0 %v1387_v32 }
 0x233   : > { %1601 = vmatpush1.bf16.msra.mxu0 %v1386_v36 }
 0x234   : > { %1602 = vmatprep.subr.bf16.mxu0 %v1395_v37 }
 0x237   : > { %1603 = vmatpush1.bf16.msra.mxu0 %v1394_v4 }
 0x23b   : > { %v1495_v58 = vpop.f32.mrb[0].mxu0 }
 0x23c   : > { %v1497_v5 = vpop.f32.mrb[1].mxu0 }
 0x23d   : > { %v1499_v52 = vpop.f32.mrb[2].mxu0 }
 0x23e   : > { %v1500_v18 = vpop.f32.mrb[3].mxu0 }
 0x25e   : > { %v6654_v40 = vpop.permute.xlu1 %6653 }
 0x25f   : > { %v6656_v9 = vunpack.i.h.bf16 %v6654_v40  ;;  %v6655_v19 = vunpack.i.l.bf16 %v6654_v40 }
 0x261   : > { %v1217_v55 = vsel %vm1170_vm8, %v6570_v11, %v6655_v19  ;;  %v1218_v36 = vsel %vm1170_vm8, %v6655_v19, %v6656_v9 }
 0x264   : > { %v6649_v41 = vpop.permute.xlu0 %6648 }
 0x265   : > { %v6651_v21 = vunpack.i.h.bf16 %v6649_v41  ;;  %v6650_v15 = vunpack.i.l.bf16 %v6649_v41 }
 0x267   : > { %v1209_v62 = vsel %vm1170_vm8, %v6565_v47, %v6650_v15  ;;  %v1210_v61 = vsel %vm1170_vm8, %v6650_v15, %v6651_v21 }
 0x268   : > { %v1403_v59 = vpack.c.bf16 %v1218_v36, %v1210_v61  ;;  %v1402_v13 = vpack.c.bf16 %v1217_v55, %v1209_v62  ;;  %v6659_v22 = vpop.permute.xlu0 %6658 }
 0x269   : > { %v6661_v38 = vunpack.i.h.bf16 %v6659_v22  ;;  %v6660_v6 = vunpack.i.l.bf16 %v6659_v22 }
 0x26a   : > { %1604 = vmatprep.subr.bf16.mxu0 %v1403_v59 }
 0x26b   : > { %1605 = vmatpush1.bf16.msra.mxu0 %v1402_v13  ;;  %v1225_v60 = vsel %vm1170_vm8, %v6580_v39, %v6660_v6  ;;  %v1226_v47 = vsel %vm1170_vm8, %v6660_v6, %v6661_v38 }
 0x26e   : > { %v6664_v49 = vpop.permute.xlu1 %6663 }
 0x26f   : > { %v6669_v17 = vpop.permute.xlu0 %6668  ;;  %v6666_v11 = vunpack.i.h.bf16 %v6664_v49  ;;  %v6665_v53 = vunpack.i.l.bf16 %v6664_v49 }
 0x270   : > { %v6671_v16 = vunpack.i.h.bf16 %v6669_v17  ;;  %v6670_v43 = vunpack.i.l.bf16 %v6669_v17 }
 0x271   : > { %v1233_v2 = vsel %vm1170_vm8, %v6585_v45, %v6665_v53  ;;  %v1234_v12 = vsel %vm1170_vm8, %v6665_v53, %v6666_v11 }
 0x272   : > { %v1536_v42 = vpop.f32.mrb[4].mxu0  ;;  %v1242_v26 = vsel %vm1170_vm8, %v6670_v43, %v6671_v16  ;;  %v1241_v8 = vsel %vm1170_vm8, %v8796_v30, %v6670_v43  ;;  %v1411_v54 = vpack.c.bf16 %v1234_v12, %v1226_v47  ;;  %v1410_v3 = vpack.c.bf16 %v1233_v2, %v1225_v60 }
 0x273   : > { %v1538_v23 = vpop.f32.mrb[5].mxu0  ;;  %v1419_v39 = vpack.c.bf16 %v1242_v26, %v1242_v26  ;;  %v1418_v7 = vpack.c.bf16 %v1241_v8, %v1241_v8  ;;  %vm10811_vm8 = vcmask 777216  }
 0x274   : > { %v1540_v24 = vpop.f32.mrb[6].mxu0  ;;  %1606 = vmatprep.subr.bf16.mxu0 %v1411_v54  ;;  %vm10812_vm12 = vmmov %vm10811_vm8 }
 0x275   : > { %v1541_v28 = vpop.f32.mrb[7].mxu0  ;;  %1607 = vmatpush1.bf16.msra.mxu0 %v1410_v3  ;;  %v1456_v50 = vsel %vm1436_vm5, %v1418_v7, 0  ;;  %vm10813_vm14 = vmmov %vm10811_vm8 }
 0x276   : > { %5206 = vmatprep.subr.msk.bf16.mxu0 %vm1436_vm5, %v1419_v39  ;;  %vm10814_vm10 = vmmov %vm10811_vm8 }
 0x277   : > { %vm10815_vm7 = vmmov %vm10811_vm8 }
 0x278   : > { %vm10816_vm9 = vmmov %vm10815_vm7 }
 0x279   : > { %1609 = vmatpush1.bf16.msra.mxu0 %v1456_v50  ;;  %vm10818_vm2 = vmmov %vm10815_vm7 }
 0x27c   : > { %1617 = vmatmul.mubr.bf16.vlgmr.msra.gmra.mrb[12].mxu0 %v8240_v25 }
 0x27f   : > { %v1424_v45 = vpop.permute.xlu1 %1423 }
 0x280   : > { %v8913_v33 = vadd.f32 %v1497_v5, %v1424_v45  ;;  %v1537_v30 = vadd.f32 %v1536_v42, %v1424_v45  ;;  %v8915_v10 = vadd.f32 %v1538_v23, %v1424_v45  ;;  %v8917_v0 = vadd.f32 %v1495_v58, %v1424_v45 }
 0x282   : > { %v1626_v44 = vmax.f32 %v8913_v33, 0.0  ;;  %v1627_v56 = vmax.f32 %v1537_v30, 0.0  ;;  %v1628_v20 = vmax.f32 %v8915_v10, 0.0  ;;  %v1625_v1 = vmax.f32 %v8917_v0, 0.0 }
 0x284   : > { %v6673_v34 = vpack.i.bf16 %v1625_v1, %v1626_v44  ;;  %v6683_v25 = vpack.i.bf16 %v1628_v20, %v1627_v56 }
 0x286   : > { %6674 = vrot.lane.b32.xlu0 %v6673_v34, %s10692_s26  ;;  %6679 = vrot.lane.b32.xlu1 %v6673_v34, %s10704_s27 }
 0x28a   : > { %6684 = vrot.lane.b32.xlu0 %v6683_v25, %s10692_s26  ;;  %6689 = vrot.lane.b32.xlu1 %v6683_v25, %s10704_s27 }
 0x28e   : > { %6694 = vrot.lane.b32.xlu0 %v6683_v25, %s10682_s17 }
 0x2e5   : > { %v1577_v14 = vpop.f32.mrb[8].mxu0 }
 0x2e6   : > { %v1578_v29 = vadd.f32 %v1577_v14, %v1424_v45  ;;  %v1579_v57 = vpop.f32.mrb[9].mxu0 }
 0x2e7   : > { %v8931_v63 = vadd.f32 %v1579_v57, %v1424_v45  ;;  %v1581_v31 = vpop.f32.mrb[10].mxu0 }
 0x2e8   : > { %v1629_v35 = vmax.f32 %v1578_v29, 0.0  ;;  %v1582_v32 = vpop.f32.mrb[11].mxu0 }
 0x2e9   : > { %v1630_v51 = vmax.f32 %v8931_v63, 0.0 }
 0x2eb   : > { %v6698_v27 = vpack.i.bf16 %v1630_v51, %v1629_v35 }
 0x2ed   : > { %6699 = vrot.lane.b32.xlu1 %v6698_v27, %s10692_s26  ;;  %6704 = vrot.lane.b32.xlu0 %v6698_v27, %s10704_s27 }
 0x2f1   : > { %6709 = vrot.lane.b32.xlu1 %v6698_v27, %s10682_s17  ;;  %6714 = vrot.lane.b32.xlu0 %v6673_v34, %s10682_s17 }
 0x2f8   : > { %v8941_v37 = vpop.permute.xlu0 %6674  ;;  %v8943_v4 = vpop.permute.xlu1 %6679 }
 0x2f9   : > { %v6676_v13 = vunpack.i.l.bf16 %v8941_v37  ;;  %v6681_v38 = vunpack.i.l.bf16 %v8943_v4 }
 0x2fc   : > { %v6685_v19 = vpop.permute.xlu0 %6684  ;;  %v6690_v62 = vpop.permute.xlu1 %6689 }
 0x2fd   : > { %v6687_v15 = vunpack.i.h.bf16 %v6685_v19  ;;  %v6686_v55 = vunpack.i.l.bf16 %v6685_v19  ;;  %v6692_v61 = vunpack.i.h.bf16 %v6690_v62  ;;  %v6691_v36 = vunpack.i.l.bf16 %v6690_v62 }
 0x2ff   : > { %v1662_v22 = vsel %vm464_vm0, %v6686_v55, %v6687_v15  ;;  %v1661_v6 = vsel %vm464_vm0, %v6676_v13, %v6686_v55  ;;  %v1704_v49 = vsel %vm604_vm3, %v6691_v36, %v6692_v61  ;;  %v1703_v26 = vsel %vm604_vm3, %v6681_v38, %v6691_v36 }
 0x300   : > { %v6695_v59 = vpop.permute.xlu0 %6694  ;;  %v1678_v17 = vmax.f32 %v1627_v56, %v1662_v22  ;;  %v1677_v12 = vmax.f32 %v1626_v44, %v1661_v6 }
 0x301   : > { %v6697_v16 = vunpack.i.h.bf16 %v6695_v59  ;;  %v6696_v43 = vunpack.i.l.bf16 %v6695_v59 }
 0x302   : > { %v1720_v24 = vmax.f32 %v1678_v17, %v1704_v49  ;;  %v1719_v56 = vmax.f32 %v1677_v12, %v1703_v26 }
 0x34f   : > { %v1618_v46 = vpop.f32.mrb[12].mxu0 }
 0x350   : > { %v8945_v58 = vadd.f32 %v1618_v46, %v1424_v45  ;;  %v1620_v5 = vpop.f32.mrb[13].mxu0  ;;  %v6677_v46 = vunpack.i.h.bf16 %v8941_v37 }
 0x351   : > { %v8947_v52 = vadd.f32 %v1620_v5, %v1424_v45  ;;  %v1622_v18 = vpop.f32.mrb[14].mxu0  ;;  %v1746_v45 = vsel %vm10811_vm8, %v6696_v43, %v6697_v16  ;;  %vm2057_vm8 = vcmask 539648  }
 0x352   : > { %v1631_v40 = vmax.f32 %v8945_v58, 0.0  ;;  %v1623_v9 = vpop.f32.mrb[15].mxu0  ;;  %v8986_v31 = vmax.f32 %v1720_v24, %v1746_v45  ;;  %v1660_v5 = vsel %vm464_vm0, %v6677_v46, %v6676_v13  ;;  %v6682_v18 = vunpack.i.h.bf16 %v8943_v4 }
 0x353   : > { %v1632_v41 = vmax.f32 %v8947_v52, 0.0  ;;  %v1676_v19 = vmax.f32 %v1625_v1, %v1660_v5 }
 0x355   : > { %v6718_v21 = vpack.i.bf16 %v1632_v41, %v1631_v40 }
 0x357   : > { %6719 = vrot.lane.b32.xlu1 %v6718_v21, %s10692_s26  ;;  %6724 = vrot.lane.b32.xlu0 %v6718_v21, %s10704_s27 }
 0x35b   : > { %6729 = vrot.lane.b32.xlu1 %v6718_v21, %s10682_s17  ;;  %v1702_v21 = vsel %vm604_vm3, %v6682_v18, %v6681_v38 }
 0x35f   : > { %v8963_v11 = vpop.permute.xlu1 %6699  ;;  %v8965_v53 = vpop.permute.xlu0 %6704 }
 0x360   : > { %v6702_v60 = vunpack.i.h.bf16 %v8963_v11  ;;  %v6701_v47 = vunpack.i.l.bf16 %v8963_v11  ;;  %v6707_v42 = vunpack.i.h.bf16 %v8965_v53  ;;  %v6706_v2 = vunpack.i.l.bf16 %v8965_v53 }
 0x362   : > { %v1663_v8 = vsel %vm464_vm0, %v6687_v15, %v6701_v47  ;;  %v1664_v23 = vsel %vm464_vm0, %v6701_v47, %v6702_v60  ;;  %v1705_v54 = vsel %vm604_vm3, %v6692_v61, %v6706_v2  ;;  %v1706_v3 = vsel %vm604_vm3, %v6706_v2, %v6707_v42 }
 0x363   : > { %v1679_v28 = vmax.f32 %v1628_v20, %v1663_v8  ;;  %v1680_v39 = vmax.f32 %v1629_v35, %v1664_v23  ;;  %v6710_v7 = vpop.permute.xlu1 %6709  ;;  %v6715_v50 = vpop.permute.xlu0 %6714  ;;  %v1718_v15 = vmax.f32 %v1676_v19, %v1702_v21 }
 0x364   : > { %v6712_v33 = vunpack.i.h.bf16 %v6710_v7  ;;  %v6711_v30 = vunpack.i.l.bf16 %v6710_v7  ;;  %v6716_v44 = vunpack.i.l.bf16 %v6715_v50  ;;  %v6717_v9 = vunpack.i.h.bf16 %v6715_v50 }
 0x365   : > { %v1721_v34 = vmax.f32 %v1679_v28, %v1705_v54  ;;  %v1722_v25 = vmax.f32 %v1680_v39, %v1706_v3 }
 0x366   : > { %v1747_v14 = vsel %vm10812_vm12, %v6697_v16, %v6711_v30  ;;  %v1748_v29 = vsel %vm10813_vm14, %v6711_v30, %v6712_v33  ;;  %v1745_v57 = vsel %vm10814_vm10, %v6716_v44, %v6696_v43  ;;  %v1744_v37 = vsel %vm10815_vm7, %v6717_v9, %v6716_v44 }
 0x367   : > { %v8988_v10 = vmax.f32 %v1721_v34, %v1747_v14  ;;  %v8990_v20 = vmax.f32 %v1722_v25, %v1748_v29  ;;  %v8992_v35 = vmax.f32 %v1719_v56, %v1745_v57  ;;  %v9019_v55 = vmax.f32 %v1718_v15, %v1744_v37 }
 0x368   : > { %vm10819_vm12 = vcmask 506880   ;;  %vm1973_vm7 = vcmask 474112  }
 0x369   : > { %v6733_v32 = vpack.i.bf16 %v8988_v10, %v8986_v31  ;;  %v6773_v27 = vpack.i.bf16 %v8992_v35, %v8990_v20  ;;  %v6818_v0 = vpack.i.bf16 %v8988_v10, %v9019_v55  ;;  %v6813_v43 = vpack.i.bf16 %v8986_v31, %v8992_v35  ;;  %vm10820_vm14 = vmmov %vm10819_vm12 }
 0x36a   : > { %vm10821_vm10 = vmmov %vm10819_vm12 }
 0x36b   : > { %6734 = vrot.lane.b32.xlu0 %v6733_v32, %s10699_s18  ;;  %6774 = vrot.lane.b32.xlu1 %v6773_v27, %s10699_s18 }
 0x36f   : > { %6739 = vrot.lane.b32.xlu0 %v6733_v32, %s10686_s20  ;;  %6779 = vrot.lane.b32.xlu1 %v6773_v27, %s10686_s20 }
 0x373   : > { %6744 = vrot.lane.b32.xlu0 %v6733_v32, %s7463_s6  ;;  %6784 = vrot.lane.b32.xlu1 %v6773_v27, %s7463_s6 }
 0x377   : > { %6749 = vrot.lane.b32.xlu0 %v6733_v32, %s10688_s23  ;;  %6789 = vrot.lane.b32.xlu1 %v6773_v27, %s10688_s23 }
 0x37b   : > { %6754 = vrot.lane.b32.xlu0 %v6733_v32, %s7464_s14  ;;  %6794 = vrot.lane.b32.xlu1 %v6773_v27, %s10712_s21 }
 0x37f   : > { %6759 = vrot.lane.b32.xlu0 %v6733_v32, %s10712_s21  ;;  %6799 = vrot.lane.b32.xlu1 %v6773_v27, %s10713_s24 }
 0x383   : > { %6764 = vrot.lane.b32.xlu0 %v6733_v32, %s10713_s24  ;;  %6804 = vrot.lane.b32.xlu1 %v6773_v27, %s7465_s16 }
 0x387   : > { %6769 = vrot.lane.b32.xlu0 %v6733_v32, %s7465_s16 }
 0x38b   : > { %6819 = vrot.lane.b32.xlu0 %v6818_v0, %s7466_s15 }
 0x38f   : > { %1658 = vrot.lane.b32.xlu0 %v10647_v48, %s10692_s26 }
 0x393   : > { %1742 = vrot.lane.b32.xlu0 %v10647_v48, %s10682_s17 }
 0x3c9   : > { %v9029_v1 = vpop.permute.xlu1 %6719  ;;  %v9031_v4 = vpop.permute.xlu0 %6724 }
 0x3ca   : > { %v6721_v62 = vunpack.i.l.bf16 %v9029_v1  ;;  %v6726_v61 = vunpack.i.l.bf16 %v9031_v4  ;;  %v6727_v53 = vunpack.i.h.bf16 %v9031_v4  ;;  %v9319_v4 = vld [vmem:[%s10523_s3 + $0x4] ss:$8 sps:$4 sm:$0xff]  }
 0x3cb   : > { %5211 = vmatprep.mubr.msk.bf16.mxu0 %vm1432_vm13, %v9319_v4 }
 0x3cc   : > { %v1665_v36 = vsel %vm464_vm0, %v6702_v60, %v6721_v62  ;;  %v1707_v22 = vsel %vm604_vm3, %v6707_v42, %v6726_v61  ;;  %v1708_v58 = vsel %vm604_vm3, %v6726_v61, %v6727_v53 }
 0x3cd   : > { %v1681_v59 = vmax.f32 %v1630_v51, %v1665_v36  ;;  %v9040_v13 = vpop.permute.xlu1 %6729  ;;  %v6722_v51 = vunpack.i.h.bf16 %v9029_v1 }
 0x3ce   : > { %v6731_v38 = vunpack.i.l.bf16 %v9040_v13  ;;  %v6732_v2 = vunpack.i.h.bf16 %v9040_v13 }
 0x3cf   : > { %v1723_v6 = vmax.f32 %v1681_v59, %v1707_v22  ;;  %v1666_v11 = vsel %vm464_vm0, %v6721_v62, %v6722_v51 }
 0x3d0   : > { %v1749_v17 = vsel %vm10816_vm9, %v6712_v33, %v6731_v38  ;;  %v1682_v60 = vmax.f32 %v1631_v40, %v1666_v11  ;;  %v1750_v24 = vsel %vm10818_vm2, %v6731_v38, %v6732_v2  ;;  %vm2000_vm9 = vcmask 457728  }
 0x3d1   : > { %v9047_v49 = vmax.f32 %v1723_v6, %v1749_v17 }
 0x3d2   : > { %v1724_v8 = vmax.f32 %v1682_v60, %v1708_v58 }
 0x3d3   : > { %10817 = vst [vmem:[#allocation21_spill] sm:$0xff] %v9047_v49  ;;  %v9051_v16 = vpack.i.bf16 %v9047_v49, %v9019_v55  ;;  %v9055_v63 = vpack.i.bf16 %v9047_v49, %v8990_v20 }
 0x3d4   : > { %v9106_v50 = vmax.f32 %v1724_v8, %v1750_v24 }
 0x3d5   : > { %6829 = vrot.lane.b32.xlu0 %v9051_v16, %s10699_s18  ;;  %6809 = vrot.lane.b32.xlu1 %v9055_v63, %s7464_s14 }
 0x3d6   : > { %v9176_v17 = vpack.i.bf16 %v9106_v50, %v9047_v49 }
 0x3d9   : > { %6839 = vrot.lane.b32.xlu0 %v9051_v16, %s7463_s6  ;;  %6814 = vrot.lane.b32.xlu1 %v6813_v43, %s7466_s15 }
 0x3dd   : > { %v9073_v47 = vpop.permute.xlu0 %6734  ;;  %v9075_v42 = vpop.permute.xlu1 %6774  ;;  %6849 = vrot.lane.b32.xlu0 %v9051_v16, %s10713_s24  ;;  %1700 = vrot.lane.b32.xlu1 %v10647_v48, %s10704_s27  ;;  %s7467_s27 = smov 56  }
 0x3de   : > { %v6736_v12 = vunpack.i.l.bf16 %v9073_v47  ;;  %v6777_v26 = vunpack.i.h.bf16 %v9075_v42  ;;  %v6737_v0 = vunpack.i.h.bf16 %v9073_v47 }
 0x3e0   : > { %v9090_v40 = vsel %vm499_vm1, %v6777_v26, %v6736_v12  ;;  %v9172_v38 = vsel %vm499_vm1, %v6736_v12, %v6737_v0 }
 0x3e1   : > { %v6740_v23 = vpop.permute.xlu0 %6739  ;;  %v9092_v54 = vpop.permute.xlu1 %6779  ;;  %v9096_v3 = vpack.c.bf16 %v9090_v40, %v8992_v35  ;;  %6854 = vrot.lane.b32.xlu0 %v9051_v16, %s7465_s16  ;;  %6824 = vrot.lane.b32.xlu1 %v6813_v43, %s7467_s27 }
 0x3e2   : > { %v6742_v28 = vunpack.i.h.bf16 %v6740_v23  ;;  %v6741_v39 = vunpack.i.l.bf16 %v6740_v23  ;;  %v6782_v7 = vunpack.i.h.bf16 %v9092_v54  ;;  %v6781_v45 = vunpack.i.l.bf16 %v9092_v54 }
 0x3e3   : > { %2401 = vmatprep.subr.bf16.mxu0 %v9096_v3  ;;  %v6858_v23 = vpack.i.bf16 %v9172_v38, %v9019_v55 }
 0x3e4   : > { %v1817_v14 = vsel %vm569_vm6, %v6741_v39, %v6742_v28  ;;  %v1816_v29 = vsel %vm569_vm6, %v6782_v7, %v6741_v39  ;;  %v1818_v9 = vsel %vm569_vm6, %v6742_v28, %v6781_v45 }
 0x3e5   : > { %v6745_v33 = vpop.permute.xlu0 %6744  ;;  %v9109_v30 = vpop.permute.xlu1 %6784  ;;  %1787 = vrot.lane.b32.xlu0 %v9106_v50, %s10699_s18  ;;  %1986 = vrot.lane.b32.xlu1 %v9019_v55, %s7467_s27 }
 0x3e6   : > { %v6747_v44 = vunpack.i.h.bf16 %v6745_v33  ;;  %v6746_v56 = vunpack.i.l.bf16 %v6745_v33  ;;  %v6787_v34 = vunpack.i.h.bf16 %v9109_v30  ;;  %v6786_v25 = vunpack.i.l.bf16 %v9109_v30 }
 0x3e8   : > { %v9122_v57 = vsel %vm1841_vm4, %v6746_v56, %v6747_v44  ;;  %v1843_v35 = vsel %vm1841_vm4, %v6787_v34, %v6746_v56  ;;  %v9130_v32 = vsel %vm1841_vm4, %v6747_v44, %v6786_v25 }
 0x3e9   : > { %v6750_v27 = vpop.permute.xlu0 %6749  ;;  %v9132_v46 = vpop.permute.xlu1 %6789  ;;  %v9134_v5 = vpack.c.bf16 %v1843_v35, %v1816_v29  ;;  %v9137_v18 = vpack.c.bf16 %v9122_v57, %v1817_v14  ;;  %1839 = vrot.lane.b32.xlu0 %v9106_v50, %s7463_s6  ;;  %6834 = vrot.lane.b32.xlu1 %v9051_v16, %s10686_s20  ;;  %v9148_v37 = vpack.c.bf16 %v9130_v32, %v1818_v9 }
 0x3ea   : > { %v6751_v19 = vunpack.i.l.bf16 %v6750_v27  ;;  %v6792_v21 = vunpack.i.h.bf16 %v9132_v46  ;;  %v6868_v24 = vpack.i.bf16 %v1843_v35, %v1816_v29  ;;  %v10642_v29 = vunpack.i.l.bf16 %v9132_v46 }
 0x3eb   : > { %v6888_v35 = vpack.i.bf16 %v1818_v9, %v1817_v14 }
 0x3ec   : > { %v9153_v15 = vsel %vm779_vm11, %v6792_v21, %v6751_v19 }
 0x3ed   : > { %v9156_v62 = vpop.permute.xlu0 %6754  ;;  %v9158_v61 = vpop.permute.xlu1 %6794  ;;  %1893 = vrot.lane.b32.xlu0 %v9106_v50, %s10688_s23  ;;  %6844 = vrot.lane.b32.xlu1 %v9051_v16, %s10688_s23 }
 0x3ee   : > { %v6757_v36 = vunpack.i.h.bf16 %v9156_v62  ;;  %v6756_v59 = vunpack.i.l.bf16 %v9156_v62  ;;  %v10643_v43 = vunpack.i.h.bf16 %v9158_v61  ;;  %v10641_v11 = vunpack.i.l.bf16 %v9158_v61 }
 0x3f0   : > { %v9169_v22 = vsel %vm2057_vm8, %v6756_v59, %v6757_v36  ;;  %v6873_v56 = vpack.i.bf16 %v6751_v19, %v6756_v59 }
 0x3f1   : > { %v6760_v6 = vpop.permute.xlu0 %6759  ;;  %v9180_v16 = vpop.permute.xlu1 %6799  ;;  %6864 = vrot.lane.b32.xlu0 %v9176_v17, %s10712_s21  ;;  %1813 = vrot.lane.b32.xlu1 %v9106_v50, %s10686_s20 }
 0x3f2   : > { %v6762_v60 = vunpack.i.h.bf16 %v6760_v6  ;;  %v6761_v47 = vunpack.i.l.bf16 %v6760_v6  ;;  %v10645_v39 = vunpack.i.h.bf16 %v9180_v16 }
 0x3f4   : > { %v9187_v12 = vsel %vm10819_vm12, %v6761_v47, %v6762_v60  ;;  %v9192_v58 = vsel %vm10820_vm14, %v6762_v60, %v10641_v11  ;;  %v9197_v8 = vsel %vm10821_vm10, %v10643_v43, %v6761_v47  ;;  %v6752_v60 = vunpack.i.h.bf16 %v6750_v27 }
 0x3f5   : > { %v6765_v28 = vpop.permute.xlu0 %6764  ;;  %6859 = vrot.lane.b32.xlu1 %v6858_v23, %s10712_s21  ;;  %6869 = vrot.lane.b32.xlu0 %v6868_v24, %s10712_s21  ;;  %v10644_v27 = vunpack.i.l.bf16 %v9180_v16 }
 0x3f6   : > { %v6766_v33 = vunpack.i.l.bf16 %v6765_v28  ;;  %v9216_v23 = vsel %vm779_vm11, %v6751_v19, %v6752_v60  ;;  %v9221_v24 = vsel %vm779_vm11, %v6752_v60, %v10642_v29  ;;  %v6767_v59 = vunpack.i.h.bf16 %v6765_v28 }
 0x3f7   : > { %v6903_v14 = vpack.i.bf16 %v9221_v24, %v9216_v23 }
 0x3f8   : > { %v9207_v44 = vsel %vm919_vm15, %v10645_v39, %v6766_v33  ;;  %v9231_v9 = vsel %vm919_vm15, %v6766_v33, %v6767_v59  ;;  %v9236_v19 = vsel %vm919_vm15, %v6767_v59, %v10644_v27 }
 0x3f9   : > { %2051 = vrot.lane.b32.xlu1 %v9106_v50, %s7464_s14  ;;  %6874 = vrot.lane.b32.xlu0 %v6873_v56, %s10712_s21  ;;  %v6770_v11 = vpop.permute.xlu0 %6769  ;;  %v10646_v56 = vunpack.i.l.bf16 %v9075_v42  ;;  %v6913_v29 = vpack.i.bf16 %v9236_v19, %v9231_v9 }
 0x3fa   : > { %v6772_v28 = vunpack.i.h.bf16 %v6770_v11  ;;  %v9238_v60 = vunpack.i.l.bf16 %v6770_v11 }
 0x3fb   : > { %v9248_v43 = vsel %vm499_vm1, %v6737_v0, %v10646_v56  ;;  %v6893_v0 = vpack.i.bf16 %v9130_v32, %v9122_v57 }
 0x3fc   : > { %v9252_v59 = vsel %vm1973_vm7, %v9238_v60, %v6772_v28  ;;  %v6883_v11 = vpack.i.bf16 %v9090_v40, %v9248_v43 }
 0x3fd   : > { %1945 = vrot.lane.b32.xlu1 %v9106_v50, %s10713_s24  ;;  %6889 = vrot.lane.b32.xlu0 %v6888_v35, %s10712_s21  ;;  %v6878_v35 = vpack.i.bf16 %v6766_v33, %v6761_v47  ;;  %v6918_v47 = vpack.i.bf16 %v9252_v59, %v9238_v60  ;;  %v9267_v33 = vpop.permute.xlu0 %6819 }
 0x401   : > { %1971 = vrot.lane.b32.xlu1 %v9106_v50, %s7465_s16  ;;  %6904 = vrot.lane.b32.xlu0 %v6903_v14, %s10712_s21  ;;  %v9269_v14 = vpop.permute.xlu1 %6804 }
 0x405   : > { %6879 = vrot.lane.b32.xlu1 %v6878_v35, %s10712_s21  ;;  %6914 = vrot.lane.b32.xlu0 %v6913_v29, %s10712_s21  ;;  %v1659_v29 = vpop.permute.xlu0 %1658 }
 0x406   : > { %v1667_v56 = vsel %vm464_vm0, %v6722_v51, %v1659_v29  ;;  %v10649_v51 = vunpack.i.l.bf16 %v9269_v14  ;;  %vm10822_vm0 = vmmov %vm10818_vm2 }
 0x407   : > { %vm10830_vm2 = vmmov %vm10821_vm10 }
 0x408   : > { %vm10833_vm12 = vmmov %vm10830_vm2 }
 0x409   : > { %6919 = vrot.lane.b32.xlu0 %v6918_v47, %s10712_s21  ;;  %6884 = vrot.lane.b32.xlu1 %v6883_v11, %s10712_s21  ;;  %v1743_v40 = vpop.permute.xlu0 %1742  ;;  %vm10834_vm14 = vmmov %vm10830_vm2 }
 0x40a   : > { %v1751_v52 = vsel %vm10822_vm0, %v6732_v2, %v1743_v40  ;;  %vm10838_vm10 = vmmov %vm10830_vm2 }
 0x40b   : > { %vm10839_vm0 = vmmov %vm10830_vm2 }
 0x40d   : > { %6924 = vrot.lane.b32.xlu0 %v9055_v63, %s7466_s15  ;;  %6894 = vrot.lane.b32.xlu1 %v6893_v0, %s10712_s21 }
 0x447   : > { %v9271_v35 = vpop.permute.xlu0 %6829  ;;  %v9273_v27 = vpop.permute.xlu1 %6809 }
 0x448   : > { %v6831_v11 = vunpack.i.l.bf16 %v9271_v35  ;;  %v10651_v47 = vunpack.i.l.bf16 %v9273_v27 }
 0x44a   : > { %v1789_v63 = vsel %vm499_vm1, %v6831_v11, %v6777_v26  ;;  %v2059_v57 = vsel %vm2057_vm8, %v6757_v36, %v10651_v47  ;;  %v1683_v26 = vmax.f32 %v1632_v41, %v1667_v56  ;;  %v6908_v36 = vpack.i.bf16 %v9192_v58, %v9187_v12 }
 0x44b   : > { %v2296_v32 = vpack.c.bf16 %v1789_v63, %v9019_v55  ;;  %v6898_v0 = vpack.i.bf16 %v2059_v57, %v9169_v22  ;;  %v9287_v39 = vpop.permute.xlu0 %6839  ;;  %v9289_v6 = vpop.permute.xlu1 %6814  ;;  %v6928_v11 = vpack.i.bf16 %v8990_v20, %v8988_v10 }
 0x44c   : > { %v6816_v63 = vunpack.i.l.bf16 %v9289_v6  ;;  %v6842_v57 = vunpack.i.h.bf16 %v9287_v39 }
 0x44d   : > { %2402 = vmatpush1.bf16.msra.mxu0 %v2296_v32  ;;  %6899 = vrot.lane.b32.xlu1 %v6898_v0, %s10712_s21  ;;  %v6841_v32 = vunpack.i.l.bf16 %v9287_v39 }
 0x44e   : > { %2403 = vmatprep.subr.bf16.mxu0 %v9134_v5  ;;  %v1846_v39 = vsel %vm1841_vm4, %v6786_v25, %v6842_v57 }
 0x44f   : > { %v9298_v62 = vpop.permute.xlu0 %6849  ;;  %v1701_v55 = vpop.permute.xlu1 %1700 }
 0x450   : > { %v1709_v1 = vsel %vm604_vm3, %v6727_v53, %v1701_v55  ;;  %v9324_v53 = vsel %vm1973_vm7, %v6772_v28, %v10649_v51  ;;  %v10650_v28 = vunpack.i.h.bf16 %v9289_v6  ;;  %vm1868_vm3 = vcmask 982016  }
 0x451   : > { %v1725_v22 = vmax.f32 %v1683_v26, %v1709_v1  ;;  %6909 = vrot.lane.b32.xlu1 %v6908_v36, %s10712_s21 }
 0x452   : > { %v1870_v1 = vsel %vm1868_vm3, %v6816_v63, %v10650_v28 }
 0x453   : > { %v9310_v41 = vmax.f32 %v1725_v22, %v1751_v52  ;;  %v9312_v56 = vpop.permute.xlu0 %6854  ;;  %v9314_v29 = vpop.permute.xlu1 %6824  ;;  %v1842_v22 = vsel %vm1841_vm4, %v6841_v32, %v6787_v34  ;;  %v6821_v34 = vunpack.i.l.bf16 %v9267_v33  ;;  %v9368_v30 = vpack.c.bf16 %v9153_v15, %v1870_v1 }
 0x454   : > { %v10654_v25 = vunpack.i.h.bf16 %v9314_v29  ;;  %v6826_v1 = vunpack.i.l.bf16 %v9314_v29 }
 0x455   : > { %2187 = vrot.lane.b32.xlu1 %v9324_v53, %s10712_s21  ;;  %v6933_v13 = vpack.i.bf16 %v10647_v48, %v9310_v41  ;;  %v1869_v54 = vsel %vm1868_vm3, %v6821_v34, %v6816_v63  ;;  %v6851_v34 = vunpack.i.l.bf16 %v9298_v62 }
 0x457   : > { %v9332_v2 = vpop.permute.xlu0 %1787  ;;  %v9334_v40 = vpop.permute.xlu1 %1986  ;;  %6934 = vrot.lane.b32.xlu0 %v6933_v13, %s10699_s18 }
 0x459   : > { %6929 = vrot.lane.b32.xlu1 %v6928_v11, %s7467_s27 }
 0x45b   : > { %v6835_v0 = vpop.permute.xlu1 %6834  ;;  %6944 = vrot.lane.b32.xlu0 %v6933_v13, %s7463_s6  ;;  %v9345_v36 = vpop.permute.xlu0 %1839 }
 0x45c   : > { %v6837_v26 = vunpack.i.h.bf16 %v6835_v0  ;;  %v6836_v55 = vunpack.i.l.bf16 %v6835_v0 }
 0x45d   : > { %6939 = vrot.lane.b32.xlu1 %v6933_v13, %s10686_s20 }
 0x45e   : > { %v1815_v52 = vsel %vm569_vm6, %v6836_v55, %v6782_v7  ;;  %v1819_v11 = vsel %vm569_vm6, %v6781_v45, %v6837_v26  ;;  %v6832_v7 = vunpack.i.h.bf16 %v9271_v35 }
 0x45f   : > { %v2302_v0 = vpack.c.bf16 %v1842_v22, %v1815_v52  ;;  %v6845_v48 = vpop.permute.xlu1 %6844  ;;  %6949 = vrot.lane.b32.xlu0 %v6933_v13, %s10688_s23  ;;  %v9364_v51 = vpack.c.bf16 %v1846_v39, %v1819_v11  ;;  %v9378_v55 = vpop.permute.xlu0 %1893  ;;  %v6812_v52 = vunpack.i.h.bf16 %v9273_v27 }
 0x460   : > { %v6846_v32 = vunpack.i.l.bf16 %v6845_v48  ;;  %v9386_v35 = vsel %vm499_vm1, %v6832_v7, %v9332_v2  ;;  %v6847_v28 = vunpack.i.h.bf16 %v6845_v48 }
 0x461   : > { %2404 = vmatpush1.bf16.msra.mxu0 %v2302_v0  ;;  %6954 = vrot.lane.b32.xlu1 %v6933_v13, %s7464_s14  ;;  %10823 = vst [vmem:[#allocation20_spill] sm:$0xff] %v9386_v35 }
 0x462   : > { %v1895_v45 = vsel %vm779_vm11, %v6846_v32, %v6792_v21  ;;  %2405 = vmatprep.subr.bf16.mxu0 %v9368_v30  ;;  %v1847_v21 = vsel %vm1841_vm4, %v6842_v57, %v9345_v36  ;;  %v10825_v32 = vunpack.i.l.bf16 %v9075_v42  ;;  %v10826_v57 = vpack.c.bf16 %v9207_v44, %v9197_v8 }
 0x463   : > { %v2308_v22 = vpack.c.bf16 %v1895_v45, %v1869_v54  ;;  %v9380_v15 = vpop.permute.xlu1 %1813  ;;  %6959 = vrot.lane.b32.xlu0 %v6933_v13, %s10712_s21  ;;  %v2002_v42 = vsel %vm2000_vm9, %v6826_v1, %v10654_v25  ;;  %v9416_v44 = vpop.permute.xlu0 %6864  ;;  %v6856_v25 = vunpack.i.l.bf16 %v9312_v56 }
 0x464   : > { %v1820_v63 = vsel %vm569_vm6, %v6837_v26, %v9380_v15  ;;  %v9400_v54 = vsel %vm499_vm1, %v10825_v32, %v6832_v7  ;;  %v6807_v26 = vunpack.i.h.bf16 %v9269_v14  ;;  %v6852_v7 = vunpack.i.h.bf16 %v9298_v62 }
 0x465   : > { %v9393_v0 = vpack.c.bf16 %v1847_v21, %v1820_v63  ;;  %2406 = vmatpush1.bf16.msra.mxu0 %v2308_v22  ;;  %6964 = vrot.lane.b32.xlu1 %v6933_v13, %s10713_s24  ;;  %v6973_v45 = vpack.i.bf16 %v9386_v35, %v9400_v54  ;;  %v6978_v32 = vpack.i.bf16 %v1820_v63, %v1819_v11  ;;  %v10829_v11 = vunpack.i.h.bf16 %v9158_v61 }
 0x466   : > { %2407 = vmatprep.subr.bf16.mxu0 %v10826_v57  ;;  %v10827_v57 = vunpack.i.l.bf16 %v9273_v27  ;;  %v2001_v62 = vsel %vm2000_vm9, %v9334_v40, %v6826_v1  ;;  %v9435_v27 = vsel %vm779_vm11, %v6847_v28, %v9378_v55  ;;  %v10659_v40 = vunpack.i.h.bf16 %v9416_v44 }
 0x467   : > { %10824 = vst [vmem:[#allocation22_spill] sm:$0xff] %v9393_v0  ;;  %v9408_v22 = vpop.permute.xlu1 %6859  ;;  %6969 = vrot.lane.b32.xlu0 %v6933_v13, %s7465_s16  ;;  %v1975_v13 = vsel %vm1973_vm7, %v6807_v26, %v9238_v60  ;;  %v10828_v0 = vunpack.i.h.bf16 %v9180_v16 }
 0x468   : > { %v6861_v47 = vunpack.i.l.bf16 %v9408_v22  ;;  %v2060_v48 = vsel %vm2057_vm8, %v10827_v57, %v6812_v52 }
 0x469   : > { %6974 = vrot.lane.b32.xlu1 %v6973_v45, %s10712_s21  ;;  %v1947_v35 = vsel %vm919_vm15, %v6851_v34, %v10828_v0  ;;  %v6983_v45 = vpack.i.bf16 %v1847_v21, %v1846_v39  ;;  %v2321_v0 = vpack.c.bf16 %v2002_v42, %v1975_v13  ;;  %v10831_v34 = vunpack.i.l.bf16 %v9132_v46 }
 0x46a   : > { %v1921_v63 = vsel %vm10830_vm2, %v6861_v47, %v10829_v11  ;;  %v6866_v47 = vunpack.i.l.bf16 %v9416_v44  ;;  %vm10840_vm2 = vmmov %vm10839_vm0 }
 0x46b   : > { %v2314_v57 = vpack.c.bf16 %v1947_v35, %v1921_v63  ;;  %v9437_v60 = vpop.permute.xlu1 %2051  ;;  %6979 = vrot.lane.b32.xlu0 %v6978_v32, %s10712_s21  ;;  %v9443_v49 = vsel %vm779_vm11, %v10831_v34, %v6847_v28  ;;  %v1974_v35 = vsel %vm1973_vm7, %v6856_v25, %v6807_v26  ;;  %v6870_v28 = vpop.permute.xlu0 %6869  ;;  %v9458_v32 = vpack.c.bf16 %v9172_v38, %v8986_v31 }
 0x46c   : > { %v2061_v39 = vsel %vm2057_vm8, %v6812_v52, %v9437_v60  ;;  %v2320_v21 = vpack.c.bf16 %v2001_v62, %v1974_v35  ;;  %v6993_v46 = vpack.i.bf16 %v9435_v27, %v9443_v49  ;;  %v10832_v52 = vunpack.i.l.bf16 %v9158_v61 }
 0x46d   : > { %v6988_v1 = vpack.i.bf16 %v2061_v39, %v2060_v48  ;;  %2408 = vmatpush1.bf16.msra.mxu0 %v2314_v57  ;;  %6984 = vrot.lane.b32.xlu1 %v6983_v45, %s10712_s21  ;;  %v9468_v25 = vsel %vm10834_vm14, %v6866_v47, %v10659_v40  ;;  %v10835_v26 = vunpack.i.l.bf16 %v9180_v16  ;;  %v6857_v61 = vunpack.i.h.bf16 %v9312_v56  ;;  %vm10842_vm14 = vmmov %vm10839_vm0 }
 0x46e   : > { %2409 = vmatprep.subr.bf16.mxu0 %v2321_v0  ;;  %v9463_v48 = vsel %vm10833_vm12, %v10832_v52, %v6866_v47  ;;  %v10660_v38 = vunpack.i.h.bf16 %v9267_v33  ;;  %v10836_v56 = vunpack.i.h.bf16 %v9289_v6  ;;  %v10837_v57 = vunpack.i.l.bf16 %v9269_v14  ;;  %vm10841_vm12 = vmmov %vm10839_vm0 }
 0x46f   : > { %v9453_v42 = vpop.permute.xlu1 %1945  ;;  %6989 = vrot.lane.b32.xlu0 %v6988_v1, %s10712_s21  ;;  %v9473_v13 = vsel %vm919_vm15, %v10835_v26, %v6852_v7  ;;  %v6998_v16 = vpack.i.bf16 %v9468_v25, %v9463_v48  ;;  %v6875_v63 = vpop.permute.xlu0 %6874  ;;  %v6862_v39 = vunpack.i.h.bf16 %v9408_v22  ;;  %v6871_v26 = vunpack.i.l.bf16 %v6870_v28 }
 0x470   : > { %v9477_v62 = vsel %vm919_vm15, %v6852_v7, %v9453_v42  ;;  %v1871_v45 = vsel %vm1868_vm3, %v10836_v56, %v10660_v38  ;;  %v9504_v0 = vsel %vm1973_vm7, %v10837_v57, %v6857_v61 }
 0x471   : > { %v7003_v31 = vpack.i.bf16 %v9477_v62, %v9473_v13  ;;  %2410 = vmatpush1.bf16.msra.mxu0 %v2320_v21  ;;  %6994 = vrot.lane.b32.xlu1 %v6993_v46, %s10712_s21 }
 0x472   : > { %2411 = vmatprep.subr.bf16.mxu0 %v9458_v32 }
 0x473   : > { %v9487_v11 = vpop.permute.xlu1 %1971  ;;  %7004 = vrot.lane.b32.xlu0 %v7003_v31, %s10712_s21  ;;  %v9519_v6 = vpop.permute.xlu0 %6889 }
 0x474   : > { %v9492_v7 = vsel %vm1973_vm7, %v6857_v61, %v9487_v11  ;;  %v6891_v35 = vunpack.i.l.bf16 %v9519_v6 }
 0x475   : > { %2412 = vmatpush1.bf16.msra.mxu0 %v9096_v3  ;;  %6999 = vrot.lane.b32.xlu1 %v6998_v16, %s10712_s21  ;;  %v7008_v34 = vpack.i.bf16 %v9492_v7, %v9504_v0  ;;  %v9514_v3 = vpack.c.bf16 %v9216_v23, %v1871_v45 }
 0x476   : > { %2413 = vmatprep.subr.bf16.mxu0 %v9137_v18  ;;  %v2203_v61 = vsel %vm10840_vm2, %v6871_v26, %v6891_v35  ;;  %vm10844_vm2 = vmmov %vm10839_vm0 }
 0x477   : > { %v9509_v47 = vpop.permute.xlu1 %6879  ;;  %1866 = vrot.lane.b32.xlu0 %v9106_v50, %s7466_s15  ;;  %v9551_v57 = vpop.permute.xlu0 %6904 }
 0x479   : > { %2414 = vmatpush1.bf16.msra.mxu0 %v9134_v5  ;;  %7009 = vrot.lane.b32.xlu1 %v7008_v34, %s10712_s21  ;;  %v10656_v5 = vunpack.i.h.bf16 %v9519_v6 }
 0x47a   : > { %2415 = vmatprep.subr.bf16.mxu0 %v9514_v3 }
 0x47b   : > { %2026 = vrot.lane.b32.xlu0 %v9310_v41, %s7466_s15  ;;  %v9523_v14 = vpop.permute.xlu1 %6884  ;;  %v9553_v34 = vpop.permute.xlu0 %6914 }
 0x47c   : > { %v6887_v1 = vunpack.i.h.bf16 %v9523_v14  ;;  %v10658_v23 = vunpack.i.l.bf16 %v9523_v14 }
 0x47d   : > { %2416 = vmatpush1.bf16.msra.mxu0 %v9368_v30  ;;  %7014 = vrot.lane.b32.xlu1 %v9176_v17, %s7467_s27  ;;  %v6872_v30 = vunpack.i.h.bf16 %v6870_v28 }
 0x47e   : > { %v2197_v21 = vsel %vm10838_vm10, %v6887_v1, %v6862_v39  ;;  %v2198_v41 = vsel %vm10839_vm0, %v6862_v39, %v10658_v23  ;;  %vm10843_vm10 = vmmov %vm10839_vm0  ;;  %v6906_v39 = vunpack.i.l.bf16 %v9551_v57  ;;  %v10661_v1 = vunpack.i.h.bf16 %v9551_v57 }
 0x47f   : > { %v2329_v22 = vpack.c.bf16 %v2197_v21, %v9197_v8  ;;  %v9538_v46 = vpop.permute.xlu1 %6894  ;;  %v2330_v52 = vpack.c.bf16 %v2198_v41, %v9187_v12  ;;  %v2204_v8 = vsel %vm10842_vm14, %v6891_v35, %v10656_v5  ;;  %v6877_v21 = vunpack.i.h.bf16 %v6875_v63  ;;  %v6920_v41 = vpop.permute.xlu0 %6919  ;;  %vm10846_vm14 = vmmov %vm10839_vm0 }
 0x480   : > { %v10657_v17 = vunpack.i.h.bf16 %v9538_v46  ;;  %v6896_v31 = vunpack.i.l.bf16 %v9538_v46  ;;  %v6876_v35 = vunpack.i.l.bf16 %v6875_v63  ;;  %v6881_v23 = vunpack.i.l.bf16 %v9509_v47 }
 0x481   : > { %2417 = vmatprep.subr.bf16.mxu0 %v2330_v52  ;;  %v2221_v52 = vsel %vm10839_vm0, %v6877_v21, %v6906_v39 }
 0x482   : > { %v2209_v16 = vsel %vm10841_vm12, %v6872_v30, %v6896_v31  ;;  %2418 = vmatpush1.bf16.msra.mxu0 %v2329_v22  ;;  %v2210_v56 = vsel %vm10843_vm10, %v6896_v31, %v10657_v17  ;;  %v6882_v31 = vunpack.i.h.bf16 %v9509_v47  ;;  %vm10845_vm12 = vmmov %vm10839_vm0 }
 0x483   : > { %v2335_v45 = vpack.c.bf16 %v2209_v16, %v2203_v61  ;;  %v2336_v28 = vpack.c.bf16 %v2210_v56, %v2204_v8  ;;  %v6917_v61 = vunpack.i.h.bf16 %v9553_v34  ;;  %v6916_v16 = vunpack.i.l.bf16 %v9553_v34  ;;  %vm10847_vm10 = vmmov %vm10839_vm0 }
 0x484   : > { %v2222_v8 = vsel %vm10844_vm2, %v6906_v39, %v10661_v1  ;;  %v6922_v56 = vunpack.i.h.bf16 %v6920_v41  ;;  %v9578_v1 = vpop.permute.xlu0 %6924  ;;  %vm10848_vm2 = vmmov %vm10839_vm0 }
 0x485   : > { %2419 = vmatprep.subr.bf16.mxu0 %v2336_v28  ;;  %v2233_v39 = vsel %vm10847_vm10, %v6882_v31, %v6916_v16  ;;  %vm10851_vm10 = vmmov %vm10839_vm0 }
 0x486   : > { %2420 = vmatpush1.bf16.msra.mxu0 %v2335_v45  ;;  %v6921_v45 = vunpack.i.l.bf16 %v6920_v41 }
 0x4bf   : > { %v9557_v22 = vpop.permute.xlu1 %6899 }
 0x4c0   : > { %v10662_v30 = vunpack.i.h.bf16 %v9557_v22  ;;  %v6901_v26 = vunpack.i.l.bf16 %v9557_v22 }
 0x4c2   : > { %v2215_v63 = vsel %vm10845_vm12, %v6876_v35, %v6901_v26  ;;  %v2216_v28 = vsel %vm10846_vm14, %v6901_v26, %v10662_v30  ;;  %vm10849_vm12 = vmmov %vm10839_vm0 }
 0x4c3   : > { %v2341_v21 = vpack.c.bf16 %v2221_v52, %v2215_v63  ;;  %v9572_v5 = vpop.permute.xlu1 %6909  ;;  %v2342_v17 = vpack.c.bf16 %v2222_v8, %v2216_v28  ;;  %v2234_v47 = vsel %vm10849_vm12, %v6916_v16, %v6917_v61  ;;  %vm10850_vm14 = vmmov %vm10839_vm0 }
 0x4c4   : > { %v6912_v40 = vunpack.i.h.bf16 %v9572_v5  ;;  %v6911_v38 = vunpack.i.l.bf16 %v9572_v5  ;;  %v2239_v52 = vsel %vm10850_vm14, %v6921_v45, %v6922_v56  ;;  %vm10863_vm12 = vmmov %vm10839_vm0  ;;  %v10877_v5 = vld [vmem:[#allocation20_spill] sm:$0xff] }
 0x4c5   : > { %2421 = vmatprep.subr.bf16.mxu0 %v2342_v17  ;;  %v2353_v28 = vpack.c.bf16 %v2239_v52, %v2239_v52  ;;  %v9610_v52 = vld [vmem:[%s10523_s3] ss:$8 sps:$4 sm:$0xff]   ;;  %vm10865_vm14 = vmmov %vm10839_vm0 }
 0x4c6   : > { %v2227_v41 = vsel %vm10839_vm0, %v6881_v23, %v6911_v38  ;;  %2422 = vmatpush1.bf16.msra.mxu0 %v2341_v21  ;;  %v2228_v35 = vsel %vm10848_vm2, %v6911_v38, %v6912_v40  ;;  %vm10862_vm2 = vmmov %vm10839_vm0 }
 0x4c7   : > { %v2347_v26 = vpack.c.bf16 %v2233_v39, %v2227_v41  ;;  %v9588_v8 = vpop.permute.xlu1 %2187  ;;  %v2348_v31 = vpack.c.bf16 %v2234_v47, %v2228_v35  ;;  %v6926_v39 = vunpack.i.l.bf16 %v9578_v1  ;;  %v2384_v35 = vsel %vm1436_vm5, %v2353_v28, 0 }
 0x4c8   : > { %v2240_v17 = vsel %vm10851_vm10, %v6922_v56, %v9588_v8  ;;  %v9605_v47 = vpack.c.bf16 %v9248_v43, %v8988_v10  ;;  %v10852_v28 = vunpack.i.h.bf16 %v9267_v33  ;;  %vm10866_vm10 = vmmov %vm10839_vm0 }
 0x4c9   : > { %v2354_v63 = vpack.c.bf16 %v2240_v17, %v2240_v17  ;;  %v6935_v23 = vpop.permute.xlu0 %6934  ;;  %2423 = vmatprep.subr.bf16.mxu0 %v2348_v31 }
 0x4ca   : > { %v6937_v21 = vunpack.i.h.bf16 %v6935_v23  ;;  %v6936_v30 = vunpack.i.l.bf16 %v6935_v23  ;;  %2424 = vmatpush1.bf16.msra.mxu0 %v2347_v26 }
 0x4cb   : > { %v9592_v38 = vpop.permute.xlu1 %6929  ;;  %5210 = vmatprep.subr.msk.bf16.mxu0 %vm1436_vm5, %v2354_v63 }
 0x4cc   : > { %v9597_v16 = vsel %vm499_vm1, %v9332_v2, %v6936_v30  ;;  %v2036_v45 = vsel %vm499_vm1, %v6936_v30, %v6937_v21  ;;  %v1872_v21 = vsel %vm1868_vm3, %v10852_v28, %v6926_v39 }
 0x4cd   : > { %v7018_v56 = vpack.i.bf16 %v2036_v45, %v9597_v16  ;;  %v6945_v41 = vpop.permute.xlu0 %6944 }
 0x4ce   : > { %v6947_v2 = vunpack.i.h.bf16 %v6945_v41  ;;  %v6946_v26 = vunpack.i.l.bf16 %v6945_v41  ;;  %2426 = vmatpush1.bf16.msra.mxu0 %v2384_v35 }
 0x4cf   : > { %7019 = vrot.lane.b32.xlu1 %v7018_v56, %s10712_s21  ;;  %v6940_v30 = vpop.permute.xlu1 %6939  ;;  %2444 = vmatprep.subr.bf16.mxu0 %v9605_v47 }
 0x4d0   : > { %v9616_v31 = vsel %vm1841_vm4, %v9345_v36, %v6946_v26  ;;  %v2042_v10 = vsel %vm1841_vm4, %v6946_v26, %v6947_v2  ;;  %v6942_v43 = vunpack.i.h.bf16 %v6940_v30  ;;  %v6941_v17 = vunpack.i.l.bf16 %v6940_v30  ;;  %vm10855_vm4 = vmmov %vm10839_vm0 }
 0x4d1   : > { %v7028_v63 = vpack.i.bf16 %v2042_v10, %v9616_v31  ;;  %v6950_v23 = vpop.permute.xlu0 %6949  ;;  %2434 = vmatmul.mubr.bf16.vlgmr.msra.gmra.mrb[16].mxu0 %v9610_v52  ;;  %v6932_v10 = vunpack.i.h.bf16 %v9592_v38 }
 0x4d2   : > { %v9628_v45 = vsel %vm569_vm6, %v9380_v15, %v6941_v17  ;;  %v2039_v36 = vsel %vm569_vm6, %v6941_v17, %v6942_v43  ;;  %v6952_v56 = vunpack.i.h.bf16 %v6950_v23  ;;  %v6951_v41 = vunpack.i.l.bf16 %v6950_v23  ;;  %2445 = vmatpush1.bf16.msra.mxu0 %v9458_v32  ;;  %5213 = vmatprep.mubr.msk.bf16.mxu0 %vm1432_vm13, %v9319_v4  ;;  %vm10854_vm6 = vmmov %vm10839_vm0 }
 0x4d3   : > { %v7023_v35 = vpack.i.bf16 %v2039_v36, %v9628_v45  ;;  %7029 = vrot.lane.b32.xlu1 %v7028_v63, %s10712_s21  ;;  %v6955_v33 = vpop.permute.xlu1 %6954  ;;  %2446 = vmatprep.subr.bf16.mxu0 %v9148_v37  ;;  %v2327_v15 = vpack.c.bf16 %v9616_v31, %v9628_v45  ;;  %v6931_v43 = vunpack.i.l.bf16 %v9592_v38  ;;  %v9649_v23 = vpack.c.bf16 %v9221_v24, %v1872_v21 }
 0x4d4   : > { %v9641_v2 = vsel %vm779_vm11, %v9378_v55, %v6951_v41  ;;  %v2066_v26 = vsel %vm779_vm11, %v6951_v41, %v6952_v56  ;;  %v6957_v32 = vunpack.i.h.bf16 %v6955_v33  ;;  %v6956_v30 = vunpack.i.l.bf16 %v6955_v33 }
 0x4d5   : > { %v7038_v17 = vpack.i.bf16 %v2066_v26, %v9641_v2  ;;  %v6960_v63 = vpop.permute.xlu0 %6959  ;;  %7024 = vrot.lane.b32.xlu0 %v7023_v35, %s10712_s21  ;;  %v10853_v35 = vunpack.i.h.bf16 %v9416_v44 }
 0x4d6   : > { %v2062_v55 = vsel %vm2057_vm8, %v9437_v60, %v6956_v30  ;;  %v2063_v28 = vsel %vm2057_vm8, %v6956_v30, %v6957_v32  ;;  %v6962_v36 = vunpack.i.h.bf16 %v6960_v63  ;;  %v6961_v56 = vunpack.i.l.bf16 %v6960_v63  ;;  %2447 = vmatpush1.bf16.msra.mxu0 %v9137_v18  ;;  %vm10859_vm8 = vmmov %vm10839_vm0 }
 0x4d7   : > { %v7033_v41 = vpack.i.bf16 %v2063_v28, %v2062_v55  ;;  %7039 = vrot.lane.b32.xlu1 %v7038_v17, %s10712_s21  ;;  %v6965_v33 = vpop.permute.xlu1 %6964  ;;  %2448 = vmatprep.subr.bf16.mxu0 %v9649_v23  ;;  %v2317_v18 = vpack.c.bf16 %v9236_v19, %v9192_v58  ;;  %v2004_v30 = vsel %vm2000_vm9, %v6931_v43, %v6932_v10 }
 0x4d8   : > { %v9660_v24 = vsel %vm10854_vm6, %v10853_v35, %v6961_v56  ;;  %v2072_v21 = vsel %vm10855_vm4, %v6961_v56, %v6962_v36  ;;  %v6967_v60 = vunpack.i.h.bf16 %v6965_v33  ;;  %v6966_v26 = vunpack.i.l.bf16 %v6965_v33  ;;  %vm10868_vm6 = vmmov %vm10839_vm0 }
 0x4d9   : > { %v6970_v32 = vpop.permute.xlu0 %6969  ;;  %7034 = vrot.lane.b32.xlu0 %v7033_v41, %s10712_s21  ;;  %v7043_v28 = vpack.i.bf16 %v2072_v21, %v9660_v24  ;;  %v2316_v19 = vpack.c.bf16 %v9231_v9, %v9187_v12  ;;  %v10856_v33 = vunpack.i.h.bf16 %v9314_v29  ;;  %v2359_v12 = vld [vmem:[%s10524_s4] sm:$0xff]  ;;  %v9696_v29 = vpack.c.bf16 %v9400_v54, %v8990_v20  ;;  %vm10869_vm4 = vmmov %vm10839_vm0 }
 0x4da   : > { %v2077_v44 = vsel %vm919_vm15, %v9453_v42, %v6966_v26  ;;  %v2078_v17 = vsel %vm919_vm15, %v6966_v26, %v6967_v60  ;;  %v6972_v63 = vunpack.i.h.bf16 %v6970_v32  ;;  %v6971_v55 = vunpack.i.l.bf16 %v6970_v32  ;;  %2449 = vmatpush1.bf16.msra.mxu0 %v9514_v3  ;;  %vm10857_vm15 = vmmov %vm10839_vm0 }
 0x4db   : > { %v7048_v36 = vpack.i.bf16 %v2078_v17, %v2077_v44  ;;  %v9674_v56 = vpop.permute.xlu1 %6974  ;;  %2450 = vmatprep.subr.bf16.mxu0 %v2317_v18  ;;  %v2003_v35 = vsel %vm2000_vm9, %v10856_v33, %v6931_v43  ;;  %v2323_v3 = vpack.c.bf16 %v2004_v30, %v9324_v53  ;;  %v6927_v53 = vunpack.i.h.bf16 %v9578_v1  ;;  %v2360_v43 = vld [vmem:[%s10524_s4 + $0x8] sm:$0xff] }
 0x4dc   : > { %v2083_v41 = vsel %vm1973_vm7, %v9487_v11, %v6971_v55  ;;  %v2084_v42 = vsel %vm1973_vm7, %v6971_v55, %v6972_v63  ;;  %v2322_v11 = vpack.c.bf16 %v2003_v35, %v9252_v59  ;;  %v6977_v59 = vunpack.i.h.bf16 %v9674_v56  ;;  %vm10860_vm7 = vmmov %vm10839_vm0 }
 0x4dd   : > { %7049 = vrot.lane.b32.xlu1 %v7048_v36, %s10712_s21  ;;  %7044 = vrot.lane.b32.xlu0 %v7043_v28, %s10712_s21  ;;  %v7053_v9 = vpack.i.bf16 %v2084_v42, %v2083_v41  ;;  %v9703_v60 = vpop.permute.xlu0 %6979  ;;  %v6976_v26 = vunpack.i.l.bf16 %v9674_v56  ;;  %v1873_v20 = vsel %vm1868_vm3, %v6926_v39, %v6927_v53  ;;  %v10861_v35 = vunpack.i.h.bf16 %v9538_v46 }
 0x4de   : > { %2451 = vmatpush1.bf16.msra.mxu0 %v2316_v19  ;;  %v9717_v32 = vpack.c.bf16 %v9443_v49, %v1873_v20  ;;  %v6982_v39 = vunpack.i.h.bf16 %v9703_v60  ;;  %v6981_v17 = vunpack.i.l.bf16 %v9703_v60  ;;  %v10858_v49 = vunpack.i.l.bf16 %v9523_v14 }
 0x4df   : > { %2452 = vmatprep.subr.bf16.mxu0 %v2323_v3  ;;  %v9691_v21 = vpop.permute.xlu1 %6984  ;;  %v2319_v1 = vpack.c.bf16 %v9477_v62, %v9468_v25  ;;  %v2326_v62 = vpack.c.bf16 %v9597_v16, %v9106_v50 }
 0x4e0   : > { %v6987_v18 = vunpack.i.h.bf16 %v9691_v21  ;;  %v6986_v30 = vunpack.i.l.bf16 %v9691_v21  ;;  %v2199_v63 = vsel %vm10859_vm8, %v10858_v49, %v6976_v26  ;;  %v2206_v33 = vsel %vm10839_vm0, %v6981_v17, %v6982_v39  ;;  %vm10872_vm8 = vmmov %vm10839_vm0 }
 0x4e1   : > { %2363 = vperm.xlu1 %6672, %v2359_v12   ;;  %7054 = vrot.lane.b32.xlu0 %v7053_v9, %s10712_s21  ;;  %v9725_v44 = vpop.permute.xlu0 %6989  ;;  %v2331_v41 = vpack.c.bf16 %v2199_v63, %v9192_v58  ;;  %v10867_v63 = vunpack.i.h.bf16 %v9551_v57 }
 0x4e2   : > { %2453 = vmatpush1.bf16.msra.mxu0 %v2322_v11  ;;  %v2212_v19 = vsel %vm10860_vm7, %v6986_v30, %v6987_v18  ;;  %v6992_v14 = vunpack.i.h.bf16 %v9725_v44  ;;  %v6991_v42 = vunpack.i.l.bf16 %v9725_v44  ;;  %v2211_v3 = vsel %vm10862_vm2, %v10861_v35, %v6986_v30  ;;  %vm10873_vm7 = vmmov %vm10839_vm0 }
 0x4e3   : > { %2454 = vmatprep.subr.bf16.mxu0 %v9696_v29  ;;  %v9713_v54 = vpop.permute.xlu1 %6994  ;;  %v2338_v12 = vpack.c.bf16 %v2212_v19, %v2206_v33  ;;  %v10870_v33 = vunpack.i.h.bf16 %v9557_v22  ;;  %vm10874_vm2 = vmmov %vm10839_vm0 }
 0x4e4   : > { %v6997_v28 = vunpack.i.h.bf16 %v9713_v54  ;;  %v6996_v36 = vunpack.i.l.bf16 %v9713_v54  ;;  %v2218_v49 = vsel %vm10866_vm10, %v6991_v42, %v6992_v14  ;;  %vm10883_vm10 = vmmov %vm10839_vm0 }
 0x4e5   : > { %2368 = vperm.xlu0 %7058, %v2360_v43   ;;  %v10864_v43 = vunpack.i.h.bf16 %v9519_v6 }
 0x4e6   : > { %2455 = vmatpush1.bf16.msra.mxu0 %v9605_v47  ;;  %v2200_v47 = vsel %vm10857_vm15, %v6976_v26, %v6977_v59  ;;  %v2224_v58 = vsel %vm10863_vm12, %v6996_v36, %v6997_v28  ;;  %vm10871_vm15 = vmmov %vm10839_vm0 }
 0x4e7   : > { %2456 = vmatprep.subr.bf16.mxu0 %v9364_v51  ;;  %v9733_v55 = vpop.permute.xlu1 %6999  ;;  %v2205_v26 = vsel %vm10865_vm14, %v10864_v43, %v6981_v17  ;;  %v2344_v19 = vpack.c.bf16 %v2224_v58, %v2218_v49  ;;  %v2217_v35 = vsel %vm10871_vm15, %v10870_v33, %v6991_v42  ;;  %vm10875_vm12 = vmmov %vm10839_vm0 }
 0x4e8   : > { %v7002_v9 = vunpack.i.h.bf16 %v9733_v55  ;;  %v7001_v11 = vunpack.i.l.bf16 %v9733_v55  ;;  %v2337_v46 = vpack.c.bf16 %v2211_v3, %v2205_v26  ;;  %vm10882_vm14 = vmmov %vm10839_vm0 }
 0x4e9   : > { %vm10886_vm15 = vmmov %vm10839_vm0 }
 0x4ea   : > { %2457 = vmatpush1.bf16.msra.mxu0 %v9148_v37  ;;  %v2332_v37 = vpack.c.bf16 %v2200_v47, %v9463_v48 }
 0x4eb   : > { %2458 = vmatprep.subr.bf16.mxu0 %v9717_v32  ;;  %v9761_v20 = vpop.permute.xlu1 %7009 }
 0x4ec   : > { %v7012_v6 = vunpack.i.h.bf16 %v9761_v20  ;;  %v7011_v17 = vunpack.i.l.bf16 %v9761_v20 }
 0x4ee   : > { %2459 = vmatpush1.bf16.msra.mxu0 %v9649_v23  ;;  %v9751_v23 = vpop.permute.xlu0 %7004  ;;  %v2242_v58 = vsel %vm10839_vm0, %v7011_v17, %v7012_v6  ;;  %v2241_v22 = vsel %vm10874_vm2, %v9588_v8, %v7011_v17  ;;  %v10878_v8 = vld [vmem:[#allocation22_spill] sm:$0xff]  ;;  %vm10889_vm2 = vmmov %vm10839_vm0 }
 0x4ef   : > { %2460 = vmatprep.subr.bf16.mxu0 %v2332_v37  ;;  %v7007_v30 = vunpack.i.h.bf16 %v9751_v23  ;;  %v7006_v47 = vunpack.i.l.bf16 %v9751_v23  ;;  %v2223_v37 = vsel %vm10868_vm6, %v10867_v63, %v6996_v36  ;;  %v2229_v36 = vsel %vm10873_vm7, %v6912_v40, %v7001_v11  ;;  %v10876_v40 = vld [vmem:[#allocation21_spill] sm:$0xff]  ;;  %vm10884_vm6 = vmmov %vm10839_vm0 }
 0x4f0   : > { %v2343_v3 = vpack.c.bf16 %v2223_v37, %v2217_v35  ;;  %v2356_v26 = vpack.c.bf16 %v2242_v58, %v2242_v58  ;;  %vm10888_vm7 = vmmov %vm10839_vm0 }
 0x4f1   : > { %v2236_v57 = vsel %vm10872_vm8, %v7006_v47, %v7007_v30  ;;  %v2235_v42 = vsel %vm10875_vm12, %v6917_v61, %v7006_v47  ;;  %v7015_v61 = vpop.permute.xlu1 %7014  ;;  %vm10887_vm8 = vmmov %vm10839_vm0 }
 0x4f2   : > { %2461 = vmatpush1.bf16.msra.mxu0 %v2331_v41  ;;  %v2230_v41 = vsel %vm10869_vm4, %v7001_v11, %v7002_v9  ;;  %v2349_v43 = vpack.c.bf16 %v2235_v42, %v2229_v36  ;;  %v2301_v11 = vpack.c.bf16 %v10877_v5, %v10876_v40  ;;  %v1867_v63 = vpop.permute.xlu0 %1866  ;;  %v7017_v37 = vunpack.i.h.bf16 %v7015_v61  ;;  %vm10885_vm4 = vmmov %vm10839_vm0 }
 0x4f3   : > { %2462 = vmatprep.subr.bf16.mxu0 %v2338_v12  ;;  %v2350_v12 = vpack.c.bf16 %v2236_v57, %v2230_v41  ;;  %v1874_v34 = vsel %vm1868_vm3, %v6927_v53, %v1867_v63  ;;  %vm10890_vm12 = vmmov %vm10839_vm0 }
 0x4f4   : > { %v2313_v47 = vpack.c.bf16 %v9435_v27, %v1874_v34 }
 0x4f6   : > { %2463 = vmatpush1.bf16.msra.mxu0 %v2337_v46  ;;  %v2355_v46 = vpack.c.bf16 %v2241_v22, %v2241_v22 }
 0x4f7   : > { %2464 = vmatprep.subr.bf16.mxu0 %v2344_v19  ;;  %v7016_v19 = vunpack.i.l.bf16 %v7015_v61 }
 0x4f8   : > { %v2390_v49 = vsel %vm1436_vm5, %v2355_v46, 0 }
 0x4f9   : > { %v2005_v27 = vsel %vm2000_vm9, %v6932_v10, %v7016_v19 }
 0x4fa   : > { %2465 = vmatpush1.bf16.msra.mxu0 %v2343_v3 }
 0x4fb   : > { %2466 = vmatprep.subr.bf16.mxu0 %v2350_v12 }
 0x4fe   : > { %2467 = vmatpush1.bf16.msra.mxu0 %v2349_v43 }
 0x4ff   : > { %5212 = vmatprep.subr.msk.bf16.mxu0 %vm1436_vm5, %v2356_v26 }
 0x502   : > { %2469 = vmatpush1.bf16.msra.mxu0 %v2390_v49 }
 0x503   : > { %2487 = vmatprep.subr.bf16.mxu0 %v2301_v11 }
 0x505   : > { %2477 = vmatmul.mubr.bf16.vlgmr.msra.gmra.mrb[20].mxu0 %v9610_v52 }
 0x506   : > { %2488 = vmatpush1.bf16.msra.mxu0 %v9696_v29  ;;  %5215 = vmatprep.mubr.msk.bf16.mxu0 %vm1432_vm13, %v9319_v4  ;;  %v2006_v29 = vsel %vm2000_vm9, %v7016_v19, %v7017_v37  ;;  %v2318_v4 = vpack.c.bf16 %v9473_v13, %v9463_v48  ;;  %vm10879_vm13 = vmmov %vm10839_vm0 }
 0x507   : > { %2489 = vmatprep.subr.bf16.mxu0 %v10878_v8  ;;  %v2325_v53 = vpack.c.bf16 %v2006_v29, %v9492_v7  ;;  %vm10880_vm9 = vmmov %vm10839_vm0 }
 0x50a   : > { %2490 = vmatpush1.bf16.msra.mxu0 %v9364_v51  ;;  %v2324_v51 = vpack.c.bf16 %v2005_v27, %v9504_v0 }
 0x50b   : > { %2491 = vmatprep.subr.bf16.mxu0 %v2313_v47 }
 0x50e   : > { %2492 = vmatpush1.bf16.msra.mxu0 %v9717_v32  ;;  %v2027_v32 = vpop.permute.xlu0 %2026 }
 0x50f   : > { %2493 = vmatprep.subr.bf16.mxu0 %v2319_v1  ;;  %v2028_v17 = vsel %vm1868_vm3, %v1867_v63, %v2027_v32  ;;  %vm10881_vm3 = vmmov %vm10839_vm0 }
 0x510   : > { %v2328_v48 = vpack.c.bf16 %v9641_v2, %v2028_v17  ;;  %v7154_v17 = vld [vmem:[%s10525_s5 + $0x40] sm:$0xff]  }
 0x512   : > { %2494 = vmatpush1.bf16.msra.mxu0 %v2318_v4 }
 0x513   : > { %2495 = vmatprep.subr.bf16.mxu0 %v2325_v53 }
 0x516   : > { %2496 = vmatpush1.bf16.msra.mxu0 %v2324_v51 }
 0x517   : > { %2497 = vmatprep.subr.bf16.mxu0 %v2326_v62 }
 0x51a   : > { %2498 = vmatpush1.bf16.msra.mxu0 %v2301_v11 }
 0x51b   : > { %2499 = vmatprep.subr.bf16.mxu0 %v2327_v15 }
 0x51e   : > { %2500 = vmatpush1.bf16.msra.mxu0 %v10878_v8 }
 0x51f   : > { %2501 = vmatprep.subr.bf16.mxu0 %v2328_v48  ;;  %v7155_v48 = vld [vmem:[%s10525_s5] sm:$0xff]  }
 0x522   : > { %2502 = vmatpush1.bf16.msra.mxu0 %v2313_v47 }
 0x541   : > { %v7020_v13 = vpop.permute.xlu1 %7019 }
 0x542   : > { %v7022_v7 = vunpack.i.h.bf16 %v7020_v13  ;;  %v7021_v0 = vunpack.i.l.bf16 %v7020_v13  ;;  %v7156_v13 = vld [vmem:[%s10525_s5 + $0x48] sm:$0xff]  }
 0x544   : > { %v2201_v50 = vsel %vm10879_vm13, %v6977_v59, %v7021_v0  ;;  %v2202_v38 = vsel %vm10880_vm9, %v7021_v0, %v7022_v7  ;;  %vm10891_vm13 = vmmov %vm10839_vm0  ;;  %v7157_v7 = vld [vmem:[%s10525_s5 + $0x8] sm:$0xff]   ;;  %v7158_v0 = vld [vmem:[%s10525_s5 + $0x50] sm:$0xff]  }
 0x545   : > { %v2333_v16 = vpack.c.bf16 %v2201_v50, %v9468_v25  ;;  %v7030_v10 = vpop.permute.xlu1 %7029  ;;  %v2334_v31 = vpack.c.bf16 %v2202_v38, %v9660_v24  ;;  %vm10892_vm9 = vmmov %vm10839_vm0  ;;  %v7159_v50 = vld [vmem:[%s10525_s5 + $0x10] sm:$0xff]   ;;  %v7160_v38 = vld [vmem:[%s10525_s5 + $0x58] sm:$0xff]  }
 0x546   : > { %v7032_v45 = vunpack.i.h.bf16 %v7030_v10  ;;  %v7031_v15 = vunpack.i.l.bf16 %v7030_v10 }
 0x547   : > { %v7025_v2 = vpop.permute.xlu0 %7024  ;;  %2503 = vmatprep.subr.bf16.mxu0 %v2334_v31 }
 0x548   : > { %v7027_v41 = vunpack.i.h.bf16 %v7025_v2  ;;  %v7026_v33 = vunpack.i.l.bf16 %v7025_v2  ;;  %2504 = vmatpush1.bf16.msra.mxu0 %v2333_v16  ;;  %v2213_v56 = vsel %vm10881_vm3, %v6987_v18, %v7031_v15  ;;  %v2214_v59 = vsel %vm10882_vm14, %v7031_v15, %v7032_v45  ;;  %vm10893_vm3 = vmmov %vm10839_vm0  ;;  %v7161_v16 = vld [vmem:[%s10525_s5 + $0x18] sm:$0xff]   ;;  %v7162_v2 = vld [vmem:[%s10525_s5 + $0x60] sm:$0xff]  }
 0x549   : > { %v7040_v35 = vpop.permute.xlu1 %7039  ;;  %vm10895_vm14 = vmmov %vm10839_vm0 }
 0x54a   : > { %v2207_v25 = vsel %vm10883_vm10, %v6982_v39, %v7026_v33  ;;  %v7042_v3 = vunpack.i.h.bf16 %v7040_v35  ;;  %v7041_v24 = vunpack.i.l.bf16 %v7040_v35  ;;  %v2208_v57 = vsel %vm10884_vm6, %v7026_v33, %v7027_v41  ;;  %v7163_v41 = vld [vmem:[%s10525_s5 + $0x20] sm:$0xff]   ;;  %vm10896_vm10 = vmmov %vm10839_vm0 }
 0x54b   : > { %v2339_v36 = vpack.c.bf16 %v2213_v56, %v2207_v25  ;;  %v7035_v12 = vpop.permute.xlu0 %7034  ;;  %v2340_v58 = vpack.c.bf16 %v2214_v59, %v2208_v57  ;;  %vm10897_vm6 = vmmov %vm10839_vm0 }
 0x54c   : > { %v7037_v22 = vunpack.i.h.bf16 %v7035_v12  ;;  %v7036_v42 = vunpack.i.l.bf16 %v7035_v12  ;;  %v2225_v21 = vsel %vm10885_vm4, %v6997_v28, %v7041_v24  ;;  %v2226_v39 = vsel %vm10888_vm7, %v7041_v24, %v7042_v3  ;;  %v7165_v12 = vld [vmem:[%s10525_s5 + $0x28] sm:$0xff]   ;;  %vm10898_vm4 = vmmov %vm10839_vm0 }
 0x54d   : > { %2505 = vmatprep.subr.bf16.mxu0 %v2340_v58  ;;  %vm10901_vm7 = vmmov %vm10839_vm0 }
 0x54e   : > { %v2219_v60 = vsel %vm10886_vm15, %v6992_v14, %v7036_v42  ;;  %2506 = vmatpush1.bf16.msra.mxu0 %v2339_v36  ;;  %v2220_v18 = vsel %vm10887_vm8, %v7036_v42, %v7037_v22  ;;  %v7164_v36 = vld [vmem:[%s10525_s5 + $0x68] sm:$0xff]   ;;  %v7166_v42 = vld [vmem:[%s10525_s5 + $0x70] sm:$0xff]   ;;  %vm10899_vm15 = vmmov %vm10839_vm0 }
 0x54f   : > { %v2345_v43 = vpack.c.bf16 %v2225_v21, %v2219_v60  ;;  %v7050_v26 = vpop.permute.xlu1 %7049  ;;  %v7045_v46 = vpop.permute.xlu0 %7044  ;;  %v2346_v40 = vpack.c.bf16 %v2226_v39, %v2220_v18  ;;  %v7167_v21 = vld [vmem:[%s10525_s5 + $0x30] sm:$0xff]   ;;  %v7168_v60 = vld [vmem:[%s10525_s5 + $0x78] sm:$0xff]   ;;  %v7170_v39 = vld [vmem:[%s10525_s5 + $0xc0] sm:$0xff]  }
 0x550   : > { %v7052_v5 = vunpack.i.h.bf16 %v7050_v26  ;;  %v7051_v11 = vunpack.i.l.bf16 %v7050_v26  ;;  %v7047_v49 = vunpack.i.h.bf16 %v7045_v46  ;;  %v7046_v63 = vunpack.i.l.bf16 %v7045_v46  ;;  %v7169_v18 = vld [vmem:[%s10525_s5 + $0x38] sm:$0xff]   ;;  %vm10900_vm8 = vmmov %vm10839_vm0 }
 0x551   : > { %2507 = vmatprep.subr.bf16.mxu0 %v2346_v40 }
 0x552   : > { %v2237_v54 = vsel %vm10839_vm0, %v7007_v30, %v7051_v11  ;;  %v2231_v44 = vsel %vm10889_vm2, %v7002_v9, %v7046_v63  ;;  %2508 = vmatpush1.bf16.msra.mxu0 %v2345_v43  ;;  %v2232_v28 = vsel %vm10890_vm12, %v7046_v63, %v7047_v49  ;;  %v2238_v14 = vsel %vm10891_vm13, %v7051_v11, %v7052_v5  ;;  %vm10903_vm2 = vmmov %vm10839_vm0 }
 0x553   : > { %v2351_v34 = vpack.c.bf16 %v2237_v54, %v2231_v44  ;;  %v7055_v61 = vpop.permute.xlu0 %7054  ;;  %v2352_v8 = vpack.c.bf16 %v2238_v14, %v2232_v28 }
 0x554   : > { %v7057_v47 = vunpack.i.h.bf16 %v7055_v61  ;;  %v7056_v37 = vunpack.i.l.bf16 %v7055_v61 }
 0x555   : > { %2509 = vmatprep.subr.bf16.mxu0 %v2352_v8 }
 0x556   : > { %v2244_v19 = vsel %vm10892_vm9, %v7056_v37, %v7057_v47  ;;  %2510 = vmatpush1.bf16.msra.mxu0 %v2351_v34  ;;  %v2243_v55 = vsel %vm10893_vm3, %v7012_v6, %v7056_v37 }
 0x557   : > { %v2358_v23 = vpack.c.bf16 %v2244_v19, %v2244_v19  ;;  %v2357_v9 = vpack.c.bf16 %v2243_v55, %v2243_v55 }
 0x559   : > { %5214 = vmatprep.subr.msk.bf16.mxu0 %vm1436_vm5, %v2358_v23  ;;  %v2396_v30 = vsel %vm1436_vm5, %v2357_v9, 0  ;;  %vm7468_vm5 = vmmov 0  }
 0x55a   : > { %2512 = vmatpush1.bf16.msra.mxu0 %v2396_v30 }
 0x55b   : > { %5403 = vmatprep.subr.bf16.mxu0 %v7154_v17 }
 0x55d   : > { %2520 = vmatmul.mubr.bf16.vlgmr.msra.gmra.mrb[24].mxu0 %v9610_v52 }
 0x55e   : > { %5404 = vmatpush3.bf16.msra.mxu0 %v7155_v48 }
 0x55f   : > { %5405 = vmatprep.subr.bf16.mxu0 %v7156_v13 }
 0x560   : > { %v9863_v1 = vpop.permute.xlu1 %2363 }
 0x562   : > { %5406 = vmatpush3.bf16.msra.mxu0 %v7157_v7 }
 0x563   : > { %5407 = vmatprep.subr.bf16.mxu0 %v7158_v0 }
 0x564   : > { %v9865_v4 = vpop.permute.xlu0 %2368 }
 0x566   : > { %5408 = vmatpush3.bf16.msra.mxu0 %v7159_v50 }
 0x567   : > { %5409 = vmatprep.subr.bf16.mxu0 %v7160_v38 }
 0x56a   : > { %5410 = vmatpush3.bf16.msra.mxu0 %v7161_v16 }
 0x56b   : > { %5411 = vmatprep.subr.bf16.mxu0 %v7162_v2 }
 0x56e   : > { %5412 = vmatpush3.bf16.msra.mxu0 %v7163_v41 }
 0x56f   : > { %5413 = vmatprep.subr.bf16.mxu0 %v7164_v36 }
 0x572   : > { %5414 = vmatpush3.bf16.msra.mxu0 %v7165_v12 }
 0x573   : > { %5415 = vmatprep.subr.bf16.mxu0 %v7166_v42 }
 0x576   : > { %5416 = vmatpush3.bf16.msra.mxu0 %v7167_v21 }
 0x577   : > { %5417 = vmatprep.subr.bf16.mxu0 %v7168_v60 }
 0x57a   : > { %5418 = vmatpush3.bf16.msra.mxu0 %v7169_v18 }
 0x57b   : > { %5425 = vmatprep.subr.bf16.mxu0 %v7170_v39 }
 0x5a4   : > { %v2435_v29 = vpop.f32.mrb[16].mxu0 }
 0x5a5   : > { %v9868_v27 = vadd.f32 %v2435_v29, %v9863_v1  ;;  %v2437_v20 = vpop.f32.mrb[17].mxu0 }
 0x5a6   : > { %v2439_v53 = vpop.f32.mrb[18].mxu0  ;;  %v9906_v10 = vadd.f32 %v2437_v20, %v9863_v1 }
 0x5a7   : > { %v9871_v6 = vadd.f32 %v2439_v53, %v9865_v4  ;;  %v2441_v51 = vpop.f32.mrb[19].mxu0  ;;  %v2530_v62 = vmax.f32 %v9868_v27, 0.0 }
 0x5a8   : > { %v2531_v56 = vmax.f32 %v9906_v10, 0.0  ;;  %v9919_v35 = vadd.f32 %v2441_v51, %v9865_v4 }
 0x5a9   : > { %v2536_v32 = vmax.f32 %v9871_v6, 0.0 }
 0x5aa   : > { %v2537_v58 = vmax.f32 %v9919_v35, 0.0 }
 0x5ab   : > { %v7064_v52 = vpack.i.bf16 %v2536_v32, %v2530_v62 }
 0x5ad   : > { %7065 = vrot.lane.b32.xlu1 %v7064_v52, %s10688_s23  ;;  %7060 = vrot.lane.b32.xlu0 %v7064_v52, %s10699_s18 }
 0x5d8   : > { %v2478_v31 = vpop.f32.mrb[20].mxu0 }
 0x5d9   : > { %v9909_v45 = vadd.f32 %v2478_v31, %v9863_v1  ;;  %v2480_v15 = vpop.f32.mrb[21].mxu0 }
 0x5da   : > { %v2482_v33 = vpop.f32.mrb[22].mxu0  ;;  %v9964_v43 = vadd.f32 %v2480_v15, %v9863_v1 }
 0x5db   : > { %v2532_v59 = vmax.f32 %v9909_v45, 0.0  ;;  %v9923_v25 = vadd.f32 %v2482_v33, %v9865_v4  ;;  %v2484_v3 = vpop.f32.mrb[23].mxu0 }
 0x5dc   : > { %v9967_v46 = vadd.f32 %v2484_v3, %v9865_v4  ;;  %v2533_v63 = vmax.f32 %v9964_v43, 0.0 }
 0x5dd   : > { %v2538_v24 = vmax.f32 %v9923_v25, 0.0  ;;  %v7079_v57 = vpack.i.bf16 %v2532_v59, %v2531_v56 }
 0x5de   : > { %v2539_v34 = vmax.f32 %v9967_v46, 0.0 }
 0x5df   : > { %7080 = vrot.lane.b32.xlu0 %v7079_v57, %s10712_s21  ;;  %7070 = vrot.lane.b32.xlu1 %v7079_v57, %s10699_s18  ;;  %v7089_v22 = vpack.i.bf16 %v2538_v24, %v2537_v58 }
 0x5e3   : > { %7090 = vrot.lane.b32.xlu0 %v7089_v22, %s10688_s23  ;;  %7075 = vrot.lane.b32.xlu1 %v7079_v57, %s10688_s23  ;;  %v10894_v57 = vmov 0.0  }
 0x5e4   : > { %5654 = vmatprep.mubr.msk.bf16.mxu1 %vm7468_vm5, %v10894_v57 }
 0x5e7   : > { %7100 = vrot.lane.b32.xlu0 %v7064_v52, %s10712_s21  ;;  %7085 = vrot.lane.b32.xlu1 %v7089_v22, %s10699_s18 }
 0x5eb   : > { %7095 = vrot.lane.b32.xlu1 %v7089_v22, %s10712_s21 }
 0x61f   : > { %v7066_v23 = vpop.permute.xlu1 %7065  ;;  %v7061_v9 = vpop.permute.xlu0 %7060 }
 0x620   : > { %v7062_v51 = vunpack.i.l.bf16 %v7061_v9  ;;  %v7068_v48 = vunpack.i.h.bf16 %v7066_v23  ;;  %v7067_v50 = vunpack.i.l.bf16 %v7066_v23  ;;  %v7063_v38 = vunpack.i.h.bf16 %v7061_v9 }
 0x630   : > { %v2521_v26 = vpop.f32.mrb[24].mxu0 }
 0x631   : > { %v9970_v40 = vadd.f32 %v2521_v26, %v9863_v1  ;;  %v2523_v5 = vpop.f32.mrb[25].mxu0 }
 0x632   : > { %v2524_v11 = vadd.f32 %v2523_v5, %v9863_v1  ;;  %v2525_v49 = vpop.f32.mrb[26].mxu0 }
 0x633   : > { %v2534_v54 = vmax.f32 %v9970_v40, 0.0  ;;  %v9976_v44 = vadd.f32 %v2525_v49, %v9865_v4  ;;  %v2527_v28 = vpop.f32.mrb[27].mxu0 }
 0x634   : > { %v2528_v14 = vadd.f32 %v2527_v28, %v9865_v4  ;;  %v2535_v47 = vmax.f32 %v2524_v11, 0.0 }
 0x635   : > { %v2540_v61 = vmax.f32 %v9976_v44, 0.0  ;;  %v7104_v8 = vpack.i.bf16 %v2534_v54, %v2533_v63 }
 0x636   : > { %v2541_v37 = vmax.f32 %v2528_v14, 0.0 }
 0x637   : > { %7105 = vrot.lane.b32.xlu1 %v7104_v8, %s10699_s18  ;;  %v7119_v19 = vpack.i.bf16 %v2540_v61, %v2539_v34 }
 0x638   : > { %v7144_v55 = vpack.i.bf16 %v2541_v37, %v2535_v47 }
 0x639   : > { %7120 = vrot.lane.b32.xlu0 %v7119_v19, %s10699_s18 }
 0x63b   : > { %7110 = vrot.lane.b32.xlu1 %v7104_v8, %s10688_s23 }
 0x63d   : > { %7125 = vrot.lane.b32.xlu0 %v7119_v19, %s10688_s23 }
 0x63f   : > { %7115 = vrot.lane.b32.xlu1 %v7104_v8, %s10712_s21 }
 0x641   : > { %7130 = vrot.lane.b32.xlu0 %v7119_v19, %s10712_s21 }
 0x643   : > { %7135 = vrot.lane.b32.xlu1 %v7144_v55, %s10699_s18  ;;  %s7469_s18 = smov [#allocation5]  }
 0x644   : > { %s7377_s16 = sshll.u32 %s7469_s18, 4  ;;  %s7378_s16 = int_to_ptr.vmem [resolvable:$false] %s7377_s16 }
 0x645   : > { %7140 = vrot.lane.b32.xlu0 %v7144_v55, %s10688_s23  ;;  %s5112_s23 = scalar_lea.sflag [#allocation4], %s419_s30  ;;  %s7379_s15 = scalar_lea.vmem %s7378_s16, 32 }
 0x646   : > { %p7380_p2 = scmp.lt.s32.totalorder %s10480_s1, %s7378_s16  ;;  %p7381_p3 = scmp.lt.s32.totalorder %s7379_s15, %s7373_s25 }
 0x647   : > { %7145 = vrot.lane.b32.xlu1 %v7144_v55, %s10712_s21  ;;  %s10478_s21 = scalar_lea.hbm %s10532_s12, %s5400_s28 }
 0x648   : > { %p7382_p4 = por %p7381_p3, %p7380_p2 }
 0x64a   : > { %p7383_p7 = pnand %p7382_p4, %p7376_p12 }
 0x651   : > { %v9998_v30 = vpop.permute.xlu0 %7080  ;;  %v10000_v1 = vpop.permute.xlu1 %7070 }
 0x652   : > { %v7073_v29 = vunpack.i.h.bf16 %v10000_v1  ;;  %v7072_v4 = vunpack.i.l.bf16 %v10000_v1  ;;  %v7083_v36 = vunpack.i.h.bf16 %v9998_v30  ;;  %v7082_v12 = vunpack.i.l.bf16 %v9998_v30 }
 0x654   : > { %v2578_v13 = vsel %vm499_vm1, %v7062_v51, %v7072_v4  ;;  %v2579_v7 = vsel %vm499_vm1, %v7072_v4, %v7073_v29  ;;  %v2687_v6 = vsel %vm10896_vm10, %v7082_v12, %v7083_v36  ;;  %v7171_v4 = vld [vmem:[%s10525_s5 + $0x80] sm:$0xff]   ;;  %v7172_v51 = vld [vmem:[%s10525_s5 + $0xc8] sm:$0xff]  }
 0x655   : > { %v10004_v20 = vpop.permute.xlu0 %7090  ;;  %v10006_v53 = vpop.permute.xlu1 %7075  ;;  %v2598_v22 = vmax.f32 %v2530_v62, %v2578_v13  ;;  %v2599_v42 = vmax.f32 %v2531_v56, %v2579_v7  ;;  %v7175_v13 = vld [vmem:[%s10525_s5 + $0x90] sm:$0xff]   ;;  %v7176_v7 = vld [vmem:[%s10525_s5 + $0xd8] sm:$0xff]  }
 0x656   : > { %v7078_v52 = vunpack.i.h.bf16 %v10006_v53  ;;  %v7077_v17 = vunpack.i.l.bf16 %v10006_v53  ;;  %v7092_v0 = vunpack.i.l.bf16 %v10004_v20  ;;  %v7093_v16 = vunpack.i.h.bf16 %v10004_v20 }
 0x658   : > { %v2633_v2 = vsel %vm779_vm11, %v7077_v17, %v7078_v52  ;;  %v2637_v21 = vsel %vm779_vm11, %v7068_v48, %v7092_v0  ;;  %v2632_v60 = vsel %vm779_vm11, %v7067_v50, %v7077_v17  ;;  %v2638_v26 = vsel %vm779_vm11, %v7092_v0, %v7093_v16  ;;  %v7173_v17 = vld [vmem:[%s10525_s5 + $0x88] sm:$0xff]   ;;  %v7174_v48 = vld [vmem:[%s10525_s5 + $0xd0] sm:$0xff]   ;;  %v7177_v0 = vld [vmem:[%s10525_s5 + $0x98] sm:$0xff]  }
 0x659   : > { %v7101_v31 = vpop.permute.xlu0 %7100  ;;  %v10016_v15 = vpop.permute.xlu1 %7085  ;;  %v2653_v5 = vmax.f32 %v2599_v42, %v2633_v2  ;;  %v2652_v14 = vmax.f32 %v2598_v22, %v2632_v60  ;;  %v7178_v50 = vld [vmem:[%s10525_s5 + $0xe0] sm:$0xff]   ;;  %v7181_v2 = vld [vmem:[%s10525_s5 + $0xa8] sm:$0xff]   ;;  %v7185_v22 = vld [vmem:[%s10525_s5 + $0xb8] sm:$0xff]  }
 0x65a   : > { %v7102_v41 = vunpack.i.l.bf16 %v7101_v31  ;;  %v7088_v33 = vunpack.i.h.bf16 %v10016_v15  ;;  %v7087_v3 = vunpack.i.l.bf16 %v10016_v15  ;;  %v7103_v56 = vunpack.i.h.bf16 %v7101_v31  ;;  %v7180_v31 = vld [vmem:[%s10525_s5 + $0xe8] sm:$0xff]  }
 0x65b   : > { %v2707_v19 = vmax.f32 %v2653_v5, %v2687_v6 }
 0x65c   : > { %v2583_v18 = vsel %vm499_vm1, %v7063_v38, %v7087_v3  ;;  %v2584_v39 = vsel %vm499_vm1, %v7087_v3, %v7088_v33  ;;  %v2686_v11 = vsel %vm10895_vm14, %v7102_v41, %v7082_v12  ;;  %v7179_v38 = vld [vmem:[%s10525_s5 + $0xa0] sm:$0xff]   ;;  %v7182_v41 = vld [vmem:[%s10525_s5 + $0xf0] sm:$0xff]   ;;  %v7184_v12 = vld [vmem:[%s10525_s5 + $0xf8] sm:$0xff]  }
 0x65d   : > { %v2603_v27 = vmax.f32 %v2536_v32, %v2583_v18  ;;  %v2604_v62 = vmax.f32 %v2537_v58, %v2584_v39  ;;  %v10044_v10 = vpop.permute.xlu1 %7095  ;;  %v2706_v58 = vmax.f32 %v2652_v14, %v2686_v11  ;;  %v7183_v3 = vld [vmem:[%s10525_s5 + $0xb0] sm:$0xff]  }
 0x65e   : > { %v7098_v49 = vunpack.i.h.bf16 %v10044_v10  ;;  %v7097_v28 = vunpack.i.l.bf16 %v10044_v10  ;;  %v7187_v10 = vld [vmem:[%s10525_s5 + $0x108] sm:$0xff]  }
 0x65f   : > { %v2657_v8 = vmax.f32 %v2603_v27, %v2637_v21  ;;  %v2658_v47 = vmax.f32 %v2604_v62, %v2638_v26 }
 0x660   : > { %v2691_v32 = vsel %vm10897_vm6, %v7103_v56, %v7097_v28  ;;  %v2692_v35 = vsel %vm10898_vm4, %v7097_v28, %v7098_v49 }
 0x661   : > { %v2711_v37 = vmax.f32 %v2657_v8, %v2691_v32  ;;  %v2712_v55 = vmax.f32 %v2658_v47, %v2692_v35 }
 0x663   : > { %v2717_v23 = vpack.c.bf16 %v2712_v55, %v2707_v19  ;;  %v2716_v9 = vpack.c.bf16 %v2711_v37, %v2706_v58 }
 0x665   : > { %3073 = vmatprep.mubr.bf16.mxu0 %v2717_v23 }
 0x666   : > { %3074 = vmatmul.mubr.bf16.vlgmr.msra.gmra.mrb[28].mxu0 %v2716_v9 }
 0x667   : > { %5426 = vmatpush3.bf16.msra.mxu0 %v7171_v4 }
 0x668   : > { %5427 = vmatprep.subr.bf16.mxu0 %v7172_v51 }
 0x66b   : > { %5428 = vmatpush3.bf16.msra.mxu0 %v7173_v17  ;;  %v7186_v17 = vld [vmem:[%s10525_s5 + $0x100] sm:$0xff]  }
 0x66c   : > { %5429 = vmatprep.subr.bf16.mxu0 %v7174_v48 }
 0x66f   : > { %5430 = vmatpush3.bf16.msra.mxu0 %v7175_v13  ;;  %v7189_v13 = vld [vmem:[%s10525_s5 + $0x118] sm:$0xff]  }
 0x670   : > { %5431 = vmatprep.subr.bf16.mxu0 %v7176_v7 }
 0x673   : > { %5432 = vmatpush3.bf16.msra.mxu0 %v7177_v0 }
 0x674   : > { %5433 = vmatprep.subr.bf16.mxu0 %v7178_v50 }
 0x677   : > { %5434 = vmatpush3.bf16.msra.mxu0 %v7179_v38  ;;  %v7190_v38 = vld [vmem:[%s10525_s5 + $0x120] sm:$0xff]  }
 0x678   : > { %5435 = vmatprep.subr.bf16.mxu0 %v7180_v31 }
 0x67b   : > { %5436 = vmatpush3.bf16.msra.mxu0 %v7181_v2 }
 0x67c   : > { %5437 = vmatprep.subr.bf16.mxu0 %v7182_v41 }
 0x67f   : > { %5438 = vmatpush3.bf16.msra.mxu0 %v7183_v3 }
 0x680   : > { %5439 = vmatprep.subr.bf16.mxu0 %v7184_v12 }
 0x683   : > { %5440 = vmatpush3.bf16.msra.mxu0 %v7185_v22  ;;  %v7191_v22 = vld [vmem:[%s10525_s5 + $0x128] sm:$0xff]  }
 0x684   : > { %5618 = vmatprep.subr.bf16.mxu0 %v10894_v57 }
 0x6a9   : > { %v10102_v42 = vpop.permute.xlu1 %7105 }
 0x6aa   : > { %v7108_v21 = vunpack.i.h.bf16 %v10102_v42  ;;  %v7107_v60 = vunpack.i.l.bf16 %v10102_v42 }
 0x6ab   : > { %v10106_v18 = vpop.permute.xlu0 %7120 }
 0x6ac   : > { %v7123_v39 = vunpack.i.h.bf16 %v10106_v18  ;;  %v7122_v26 = vunpack.i.l.bf16 %v10106_v18  ;;  %v2580_v56 = vsel %vm499_vm1, %v7073_v29, %v7107_v60  ;;  %v2581_v11 = vsel %vm499_vm1, %v7107_v60, %v7108_v21 }
 0x6ad   : > { %v10110_v5 = vpop.permute.xlu1 %7110  ;;  %v2600_v53 = vmax.f32 %v2532_v59, %v2580_v56 }
 0x6ae   : > { %v7113_v27 = vunpack.i.h.bf16 %v10110_v5  ;;  %v7112_v62 = vunpack.i.l.bf16 %v10110_v5  ;;  %v2585_v14 = vsel %vm499_vm1, %v7088_v33, %v7122_v26  ;;  %v2586_v8 = vsel %vm499_vm1, %v7122_v26, %v7123_v39  ;;  %v7193_v5 = vld [vmem:[%s10525_s5 + $0x138] sm:$0xff]  }
 0x6af   : > { %v10120_v28 = vpop.permute.xlu0 %7125  ;;  %v2605_v37 = vmax.f32 %v2538_v24, %v2585_v14  ;;  %v2606_v20 = vmax.f32 %v2539_v34, %v2586_v8  ;;  %v7195_v14 = vld [vmem:[#allocation2 + $0x8] sm:$0xff]   ;;  %v7196_v8 = vld [vmem:[#allocation2 + $0x10] sm:$0xff]  }
 0x6b0   : > { %v7128_v47 = vunpack.i.h.bf16 %v10120_v28  ;;  %v7127_v6 = vunpack.i.l.bf16 %v10120_v28  ;;  %v2634_v1 = vsel %vm779_vm11, %v7078_v52, %v7112_v62  ;;  %v2635_v29 = vsel %vm779_vm11, %v7112_v62, %v7113_v27  ;;  %v7192_v62 = vld [vmem:[%s10525_s5 + $0x130] sm:$0xff]   ;;  %v7194_v28 = vld [vmem:[#allocation2] sm:$0xff]  }
 0x6b1   : > { %v10134_v32 = vpop.permute.xlu1 %7115  ;;  %v2601_v52 = vmax.f32 %v2533_v63, %v2581_v11  ;;  %v2654_v23 = vmax.f32 %v2600_v53, %v2634_v1  ;;  %5639 = vmatpush3.bf16.msra.mxu1 %v7194_v28  ;;  %v7199_v1 = vld [vmem:[#allocation2 + $0x28] sm:$0xff]   ;;  %v7233_v28 = vld [vmem:[#allocation2 + $0x138] sm:$0xff]  }
 0x6b2   : > { %v2639_v15 = vsel %vm779_vm11, %v7093_v16, %v7127_v6  ;;  %v2640_v33 = vsel %vm779_vm11, %v7127_v6, %v7128_v47  ;;  %v7118_v35 = vunpack.i.h.bf16 %v10134_v32  ;;  %v7117_v58 = vunpack.i.l.bf16 %v10134_v32  ;;  %5640 = vmatprep.subr.bf16.mxu1 %v10894_v57  ;;  %v7198_v6 = vld [vmem:[#allocation2 + $0x20] sm:$0xff]   ;;  %v7201_v32 = vld [vmem:[#allocation2 + $0x38] sm:$0xff]  }
 0x6b3   : > { %v7131_v19 = vpop.permute.xlu0 %7130  ;;  %v2655_v43 = vmax.f32 %v2601_v52, %v2635_v29  ;;  %v2659_v63 = vmax.f32 %v2605_v37, %v2639_v15  ;;  %v2660_v9 = vmax.f32 %v2606_v20, %v2640_v33  ;;  %v7200_v29 = vld [vmem:[#allocation2 + $0x30] sm:$0xff]  }
 0x6b4   : > { %v2688_v16 = vsel %vm10899_vm15, %v7083_v36, %v7117_v58  ;;  %v2689_v55 = vsel %vm10900_vm8, %v7117_v58, %v7118_v35  ;;  %v7133_v45 = vunpack.i.h.bf16 %v7131_v19  ;;  %v7132_v59 = vunpack.i.l.bf16 %v7131_v19 }
 0x6b5   : > { %v2708_v46 = vmax.f32 %v2654_v23, %v2688_v16  ;;  %v2709_v30 = vmax.f32 %v2655_v43, %v2689_v55  ;;  %v7136_v48 = vpop.permute.xlu1 %7135  ;;  %5641 = vmatpush3.bf16.msra.mxu1 %v7195_v14  ;;  %v7234_v14 = vld [vmem:[#allocation2 + $0x140] sm:$0xff]  }
 0x6b6   : > { %v2693_v25 = vsel %vm10901_vm7, %v7098_v49, %v7132_v59  ;;  %v2694_v24 = vsel %vm10839_vm0, %v7132_v59, %v7133_v45  ;;  %v7188_v49 = vld [vmem:[%s10525_s5 + $0x110] sm:$0xff]   ;;  %v7138_v7 = vunpack.i.h.bf16 %v7136_v48  ;;  %v7137_v0 = vunpack.i.l.bf16 %v7136_v48  ;;  %5642 = vmatprep.subr.bf16.mxu1 %v10894_v57  ;;  %v7209_v48 = vld [vmem:[#allocation2 + $0x78] sm:$0xff]  }
 0x6b7   : > { %v2713_v34 = vmax.f32 %v2659_v63, %v2693_v25  ;;  %v2714_v36 = vmax.f32 %v2660_v9, %v2694_v24  ;;  %v7141_v50 = vpop.permute.xlu0 %7140  ;;  %v7202_v24 = vld [vmem:[#allocation2 + $0x40] sm:$0xff]  }
 0x6b8   : > { %v2587_v31 = vsel %vm499_vm1, %v7123_v39, %v7138_v7  ;;  %v2582_v2 = vsel %vm499_vm1, %v7108_v21, %v7137_v0  ;;  %v7143_v41 = vunpack.i.h.bf16 %v7141_v50  ;;  %v7142_v3 = vunpack.i.l.bf16 %v7141_v50  ;;  %vm10902_vm1 = vmmov %vm10839_vm0  ;;  %v7211_v0 = vld [vmem:[#allocation2 + $0x88] sm:$0xff]   ;;  %v7212_v50 = vld [vmem:[#allocation2 + $0x90] sm:$0xff]  }
 0x6b9   : > { %v2719_v4 = vpack.c.bf16 %v2714_v36, %v2709_v30  ;;  %v2718_v51 = vpack.c.bf16 %v2713_v34, %v2708_v46  ;;  %v7146_v12 = vpop.permute.xlu1 %7145  ;;  %v2607_v60 = vmax.f32 %v2540_v61, %v2587_v31  ;;  %v2602_v18 = vmax.f32 %v2534_v54, %v2582_v2  ;;  %5643 = vmatpush3.bf16.msra.mxu1 %v7196_v8  ;;  %v7203_v36 = vld [vmem:[#allocation2 + $0x48] sm:$0xff]   ;;  %v7214_v31 = vld [vmem:[#allocation2 + $0xa0] sm:$0xff]  }
 0x6ba   : > { %v2636_v42 = vsel %vm779_vm11, %v7113_v27, %v7142_v3  ;;  %v2641_v21 = vsel %vm779_vm11, %v7128_v47, %v7143_v41  ;;  %v7148_v39 = vunpack.i.h.bf16 %v7146_v12  ;;  %v7147_v26 = vunpack.i.l.bf16 %v7146_v12  ;;  %v7197_v47 = vld [vmem:[#allocation2 + $0x18] sm:$0xff]   ;;  %5644 = vmatprep.subr.bf16.mxu1 %v10894_v57  ;;  %v7215_v2 = vld [vmem:[#allocation2 + $0xa8] sm:$0xff]   ;;  %v7216_v41 = vld [vmem:[#allocation2 + $0xb0] sm:$0xff]  }
 0x6bb   : > { %3114 = vmatprep.mubr.bf16.mxu0 %v2719_v4  ;;  %v2656_v44 = vmax.f32 %v2602_v18, %v2636_v42  ;;  %v2661_v61 = vmax.f32 %v2607_v60, %v2641_v21  ;;  %v7204_v4 = vld [vmem:[#allocation2 + $0x50] sm:$0xff]   ;;  %v7217_v3 = vld [vmem:[#allocation2 + $0xb8] sm:$0xff]   ;;  %v7218_v12 = vld [vmem:[#allocation2 + $0xc0] sm:$0xff]  }
 0x6bc   : > { %3115 = vmatmul.mubr.bf16.vlgmr.msra.gmra.mrb[32].mxu0 %v2718_v51  ;;  %v2695_v40 = vsel %vm10902_vm1, %v7133_v45, %v7148_v39  ;;  %v2690_v54 = vsel %vm10903_vm2, %v7118_v35, %v7147_v26  ;;  %v7205_v51 = vld [vmem:[#allocation2 + $0x58] sm:$0xff]   ;;  %v7219_v60 = vld [vmem:[#allocation2 + $0xc8] sm:$0xff]   ;;  %v7220_v18 = vld [vmem:[#allocation2 + $0xd0] sm:$0xff]  }
 0x6bd   : > { %5619 = vmatpush3.bf16.msra.mxu0 %v7186_v17  ;;  %5634 = vmatprep.mubr.msk.bf16.mxu0 %vm7468_vm5, %v10894_v57  ;;  %v2710_v27 = vmax.f32 %v2656_v44, %v2690_v54  ;;  %v2715_v56 = vmax.f32 %v2661_v61, %v2695_v40  ;;  %v7206_v17 = vld [vmem:[#allocation2 + $0x60] sm:$0xff]   ;;  %v7221_v42 = vld [vmem:[#allocation2 + $0xd8] sm:$0xff]   ;;  %v7223_v39 = vld [vmem:[#allocation2 + $0xe8] sm:$0xff]  }
 0x6be   : > { %5620 = vmatprep.subr.bf16.mxu0 %v10894_v57  ;;  %5645 = vmatpush3.bf16.msra.mxu1 %v7197_v47  ;;  %v7222_v21 = vld [vmem:[#allocation2 + $0xe0] sm:$0xff]   ;;  %v7224_v26 = vld [vmem:[#allocation2 + $0xf0] sm:$0xff]   ;;  %v7227_v40 = vld [vmem:[#allocation2 + $0x108] sm:$0xff]  }
 0x6bf   : > { %v2720_v11 = vpack.c.bf16 %v2715_v56, %v2710_v27  ;;  %5646 = vmatprep.subr.bf16.mxu1 %v10894_v57  ;;  %v7226_v44 = vld [vmem:[#allocation2 + $0x100] sm:$0xff]   ;;  %v7228_v54 = vld [vmem:[#allocation2 + $0x110] sm:$0xff]   ;;  %v7231_v56 = vld [vmem:[#allocation2 + $0x128] sm:$0xff]  }
 0x6c0   : > { %v7230_v27 = vld [vmem:[#allocation2 + $0x120] sm:$0xff]   ;;  %v7235_v47 = vld [vmem:[#allocation2 + $0x148] sm:$0xff]  }
 0x6c1   : > { %5621 = vmatpush3.bf16.msra.mxu0 %v7187_v10  ;;  %v7207_v10 = vld [vmem:[#allocation2 + $0x68] sm:$0xff]  }
 0x6c2   : > { %5622 = vmatprep.subr.bf16.mxu0 %v10894_v57  ;;  %5647 = vmatpush3.bf16.msra.mxu1 %v7198_v6  ;;  %v7236_v6 = vld [vmem:[#allocation2 + $0x150] sm:$0xff]  }
 0x6c3   : > { %5648 = vmatprep.subr.bf16.mxu1 %v10894_v57 }
 0x6c5   : > { %5623 = vmatpush3.bf16.msra.mxu0 %v7188_v49  ;;  %v7208_v49 = vld [vmem:[#allocation2 + $0x70] sm:$0xff]  }
 0x6c6   : > { %5624 = vmatprep.subr.bf16.mxu0 %v10894_v57  ;;  %5649 = vmatpush3.bf16.msra.mxu1 %v7199_v1  ;;  %v7237_v1 = vld [vmem:[#allocation2 + $0x158] sm:$0xff]  }
 0x6c7   : > { %5650 = vmatprep.subr.bf16.mxu1 %v10894_v57 }
 0x6c9   : > { %5625 = vmatpush3.bf16.msra.mxu0 %v7189_v13  ;;  %v7210_v13 = vld [vmem:[#allocation2 + $0x80] sm:$0xff]  }
 0x6ca   : > { %5626 = vmatprep.subr.bf16.mxu0 %v10894_v57  ;;  %5651 = vmatpush3.bf16.msra.mxu1 %v7200_v29  ;;  %v7238_v29 = vld [vmem:[#allocation2 + $0x160] sm:$0xff]  }
 0x6cb   : > { %5652 = vmatprep.subr.bf16.mxu1 %v10894_v57 }
 0x6cd   : > { %5627 = vmatpush3.bf16.msra.mxu0 %v7190_v38  ;;  %v7213_v38 = vld [vmem:[#allocation2 + $0x98] sm:$0xff]  }
 0x6ce   : > { %5628 = vmatprep.subr.bf16.mxu0 %v10894_v57  ;;  %5653 = vmatpush3.bf16.msra.mxu1 %v7201_v32  ;;  %v7239_v32 = vld [vmem:[#allocation2 + $0x168] sm:$0xff]  }
 0x6cf   : > { %5658 = vmatprep.subr.bf16.mxu1 %v10894_v57 }
 0x6d1   : > { %5629 = vmatpush3.bf16.msra.mxu0 %v7191_v22 }
 0x6d2   : > { %5630 = vmatprep.subr.bf16.mxu0 %v10894_v57 }
 0x6d5   : > { %5631 = vmatpush3.bf16.msra.mxu0 %v7192_v62  ;;  %v7225_v62 = vld [vmem:[#allocation2 + $0xf8] sm:$0xff]  }
 0x6d6   : > { %5632 = vmatprep.subr.bf16.mxu0 %v10894_v57 }
 0x6d9   : > { %5633 = vmatpush3.bf16.msra.mxu0 %v7193_v5  ;;  %v7229_v5 = vld [vmem:[#allocation2 + $0x118] sm:$0xff]  }
 0x6da   : > { %5958 = vmatprep.subr.bf16.mxu0 %v10894_v57 }
 0x6dc   : > { %5635 = vmatmul.mubr.bf16.vlgmr.msra.gmra.mrb[36].mxu0 %v2720_v11  ;;  %v7232_v11 = vld [vmem:[#allocation2 + $0x130] sm:$0xff]  }
 0x6dd   : > { %5974 = vmatprep.mubr.msk.bf16.mxu0 %vm7468_vm5, %v10894_v57 }
 0x739   : > { %v5419_v15 = vpop.f32.mrb[28].mxu0 }
 0x73a   : > { %v5420_v33 = vpop.f32.mrb[29].mxu0 }
 0x73b   : > { %v5421_v35 = vadd.f32 %v5420_v33, %v5419_v15  ;;  %v5422_v58 = vpop.f32.mrb[30].mxu0  ;;  %v7240_v15 = vld [vmem:[#allocation2 + $0x170] sm:$0xff]   ;;  %v7241_v33 = vld [vmem:[#allocation2 + $0x178] sm:$0xff]  }
 0x73c   : > { %v5423_v53 = vpop.f32.mrb[31].mxu0 }
 0x73d   : > { %v5424_v52 = vadd.f32 %v5423_v53, %v5422_v58  ;;  %v7243_v53 = vld [vmem:[#allocation2 + $0x188] sm:$0xff]  }
 0x78f   : > { %v5441_v37 = vpop.f32.mrb[32].mxu0 }
 0x790   : > { %v5442_v20 = vpop.f32.mrb[33].mxu0 }
 0x791   : > { %v5443_v19 = vadd.f32 %v5442_v20, %v5441_v37  ;;  %v5444_v16 = vpop.f32.mrb[34].mxu0  ;;  %v7245_v37 = vld [vmem:[#allocation2 + $0x198] sm:$0xff]   ;;  %v7246_v20 = vld [vmem:[#allocation2 + $0x1a0] sm:$0xff]  }
 0x792   : > { %v5445_v55 = vpop.f32.mrb[35].mxu0 }
 0x793   : > { %v5446_v45 = vadd.f32 %v5445_v55, %v5444_v16  ;;  %v3117_v59 = vadd.f32 %v5443_v19, %v5421_v35  ;;  %v7242_v35 = vld [vmem:[#allocation2 + $0x180] sm:$0xff]   ;;  %v7247_v19 = vld [vmem:[#allocation2 + $0x1a8] sm:$0xff]   ;;  %v7248_v16 = vld [vmem:[#allocation2 + $0x1b0] sm:$0xff]  }
 0x794   : > { %v7249_v55 = vld [vmem:[#allocation2 + $0x1b8] sm:$0xff]  }
 0x795   : > { %v3120_v23 = vadd.f32 %v5446_v45, %v5424_v52  ;;  %v7244_v52 = vld [vmem:[#allocation2 + $0x190] sm:$0xff]   ;;  %v7250_v45 = vld [vmem:[#allocation2 + $0x1c0] sm:$0xff]  }
 0x7af   : > { %v3157_v43 = vpop.f32.mrb[36].mxu0 }
 0x7b0   : > { %v3158_v63 = vadd.f32 %v3157_v43, %v3117_v59  ;;  %v5636_v9 = vpop.f32.mrb[37].mxu0  ;;  %v7252_v43 = vld [vmem:[#allocation2 + $0x1d0] sm:$0xff]  }
 0x7b1   : > { %v3160_v25 = vpop.f32.mrb[38].mxu0  ;;  %v7254_v9 = vld [vmem:[#allocation2 + $0x1e0] sm:$0xff]  }
 0x7b2   : > { %v10220_v46 = vpack.c.bf16 %v3158_v63, %v3158_v63  ;;  %v10222_v34 = vadd.f32 %v3160_v25, %v3120_v23  ;;  %v5637_v30 = vpop.f32.mrb[39].mxu0  ;;  %v7251_v23 = vld [vmem:[#allocation2 + $0x1c8] sm:$0xff]   ;;  %v7253_v63 = vld [vmem:[#allocation2 + $0x1d8] sm:$0xff]  }
 0x7b3   : > { %v7255_v25 = vld [vmem:[#allocation2 + $0x1e8] sm:$0xff]   ;;  %v7258_v30 = vld [vmem:[#allocation2 + $0x200] sm:$0xff]  }
 0x7b4   : > { %5655 = vmatmul.mubr.bf16.vlgmr.msra.gmra.mrb[0].mxu1 %v10220_v46  ;;  %v10235_v7 = vshrl.u32 %v10220_v46, 16  ;;  %v3399_v22 = vrot.slane %v10220_v46, 1  ;;  %v3615_v8 = vrot.slane %v10220_v46, 2  ;;  %v3831_v59 = vrot.slane %v10220_v46, 3  ;;  %v7257_v46 = vld [vmem:[#allocation2 + $0x1f8] sm:$0xff]  }
 0x7b5   : > { %5659 = vmatpush3.bf16.msra.mxu1 %v7202_v24  ;;  %5674 = vmatprep.mubr.msk.bf16.mxu1 %vm7468_vm5, %v10894_v57  ;;  %v7256_v24 = vld [vmem:[#allocation2 + $0x1f0] sm:$0xff]  }
 0x7b6   : > { %5660 = vmatprep.subr.bf16.mxu1 %v10894_v57  ;;  %v3507_v61 = vrot.slane %v10235_v7, 1  ;;  %v3723_v58 = vrot.slane %v10235_v7, 2 }
 0x7b9   : > { %5661 = vmatpush3.bf16.msra.mxu1 %v7203_v36  ;;  %v3939_v36 = vrot.slane %v10235_v7, 3 }
 0x7ba   : > { %5662 = vmatprep.subr.bf16.mxu1 %v10894_v57 }
 0x7bd   : > { %5663 = vmatpush3.bf16.msra.mxu1 %v7204_v4  ;;  %v7259_v4 = vld [vmem:[#allocation2 + $0x208] sm:$0xff]  }
 0x7be   : > { %5664 = vmatprep.subr.bf16.mxu1 %v10894_v57 }
 0x7c1   : > { %5665 = vmatpush3.bf16.msra.mxu1 %v7205_v51  ;;  %v7260_v51 = vld [vmem:[#allocation2 + $0x210] sm:$0xff]  }
 0x7c2   : > { %5666 = vmatprep.subr.bf16.mxu1 %v10894_v57 }
 0x7c5   : > { %5667 = vmatpush3.bf16.msra.mxu1 %v7206_v17  ;;  %v7261_v17 = vld [vmem:[#allocation2 + $0x218] sm:$0xff]  }
 0x7c6   : > { %5668 = vmatprep.subr.bf16.mxu1 %v10894_v57 }
 0x7c9   : > { %5669 = vmatpush3.bf16.msra.mxu1 %v7207_v10  ;;  %v7262_v10 = vld [vmem:[#allocation2 + $0x220] sm:$0xff]  }
 0x7ca   : > { %5670 = vmatprep.subr.bf16.mxu1 %v10894_v57 }
 0x7cd   : > { %5671 = vmatpush3.bf16.msra.mxu1 %v7208_v49  ;;  %v7263_v49 = vld [vmem:[#allocation2 + $0x228] sm:$0xff]  }
 0x7ce   : > { %5672 = vmatprep.subr.bf16.mxu1 %v10894_v57 }
 0x7d1   : > { %5673 = vmatpush3.bf16.msra.mxu1 %v7209_v48  ;;  %v7264_v48 = vld [vmem:[#allocation2 + $0x230] sm:$0xff]  }
 0x7d2   : > { %5678 = vmatprep.subr.bf16.mxu1 %v10894_v57 }
 0x7d4   : > { %5675 = vmatmul.mubr.bf16.vlgmr.msra.gmra.mrb[0].mxu1 %v10235_v7  ;;  %v7266_v7 = vld [vmem:[#allocation2 + $0x240] sm:$0xff]  }
 0x7d5   : > { %5679 = vmatpush3.bf16.msra.mxu1 %v7210_v13  ;;  %5694 = vmatprep.mubr.msk.bf16.mxu1 %vm7468_vm5, %v10894_v57  ;;  %v7265_v13 = vld [vmem:[#allocation2 + $0x238] sm:$0xff]  }
 0x7d6   : > { %5680 = vmatprep.subr.bf16.mxu1 %v10894_v57 }
 0x7d9   : > { %5681 = vmatpush3.bf16.msra.mxu1 %v7211_v0  ;;  %v10316_v0 = vpack.c.bf16 %v10222_v34, %v10222_v34  ;;  %v7270_v34 = vld [vmem:[#allocation2 + $0x260] sm:$0xff]  }
 0x7da   : > { %5682 = vmatprep.subr.bf16.mxu1 %v10894_v57 }
 0x7dd   : > { %5683 = vmatpush3.bf16.msra.mxu1 %v7212_v50  ;;  %v7267_v50 = vld [vmem:[#allocation2 + $0x248] sm:$0xff]  }
 0x7de   : > { %5684 = vmatprep.subr.bf16.mxu1 %v10894_v57 }
 0x7e1   : > { %5685 = vmatpush3.bf16.msra.mxu1 %v7213_v38  ;;  %v7268_v38 = vld [vmem:[#allocation2 + $0x250] sm:$0xff]  }
 0x7e2   : > { %5686 = vmatprep.subr.bf16.mxu1 %v10894_v57 }
 0x7e5   : > { %5687 = vmatpush3.bf16.msra.mxu1 %v7214_v31  ;;  %v7269_v31 = vld [vmem:[#allocation2 + $0x258] sm:$0xff]  }
 0x7e6   : > { %5688 = vmatprep.subr.bf16.mxu1 %v10894_v57 }
 0x7e9   : > { %5689 = vmatpush3.bf16.msra.mxu1 %v7215_v2  ;;  %v7271_v2 = vld [vmem:[#allocation2 + $0x268] sm:$0xff]  }
 0x7ea   : > { %5690 = vmatprep.subr.bf16.mxu1 %v10894_v57 }
 0x7ed   : > { %5691 = vmatpush3.bf16.msra.mxu1 %v7216_v41  ;;  %v7272_v41 = vld [vmem:[#allocation2 + $0x270] sm:$0xff]  }
 0x7ee   : > { %5692 = vmatprep.subr.bf16.mxu1 %v10894_v57 }
 0x7f1   : > { %5693 = vmatpush3.bf16.msra.mxu1 %v7217_v3  ;;  %v7273_v3 = vld [vmem:[#allocation2 + $0x278] sm:$0xff]  }
 0x7f2   : > { %5698 = vmatprep.subr.bf16.mxu1 %v10894_v57 }
 0x7f4   : > { %5695 = vmatmul.mubr.bf16.vlgmr.msra.gmra.mrb[0].mxu1 %v3399_v22  ;;  %v10330_v22 = vshrl.u32 %v10316_v0, 16 }
 0x7f5   : > { %5699 = vmatpush3.bf16.msra.mxu1 %v7218_v12  ;;  %5714 = vmatprep.mubr.msk.bf16.mxu1 %vm7468_vm5, %v10894_v57  ;;  %v7274_v12 = vld [vmem:[#allocation2 + $0x280] sm:$0xff]  }
 0x7f6   : > { %5700 = vmatprep.subr.bf16.mxu1 %v10894_v57 }
 0x7f9   : > { %5701 = vmatpush3.bf16.msra.mxu1 %v7219_v60  ;;  %v7275_v60 = vld [vmem:[#allocation2 + $0x288] sm:$0xff]  }
 0x7fa   : > { %5702 = vmatprep.subr.bf16.mxu1 %v10894_v57 }
 0x7fd   : > { %5703 = vmatpush3.bf16.msra.mxu1 %v7220_v18  ;;  %v7276_v18 = vld [vmem:[#allocation2 + $0x290] sm:$0xff]  }
 0x7fe   : > { %5704 = vmatprep.subr.bf16.mxu1 %v10894_v57 }
 0x801   : > { %5705 = vmatpush3.bf16.msra.mxu1 %v7221_v42  ;;  %v7277_v42 = vld [vmem:[#allocation2 + $0x298] sm:$0xff]  }
 0x802   : > { %5706 = vmatprep.subr.bf16.mxu1 %v10894_v57 }
 0x805   : > { %5707 = vmatpush3.bf16.msra.mxu1 %v7222_v21  ;;  %v7278_v21 = vld [vmem:[#allocation2 + $0x2a0] sm:$0xff]  }
 0x806   : > { %5708 = vmatprep.subr.bf16.mxu1 %v10894_v57 }
 0x809   : > { %5709 = vmatpush3.bf16.msra.mxu1 %v7223_v39  ;;  %v7279_v39 = vld [vmem:[#allocation2 + $0x2a8] sm:$0xff]  }
 0x80a   : > { %5710 = vmatprep.subr.bf16.mxu1 %v10894_v57 }
 0x80d   : > { %5711 = vmatpush3.bf16.msra.mxu1 %v7224_v26  ;;  %v7280_v26 = vld [vmem:[#allocation2 + $0x2b0] sm:$0xff]  }
 0x80e   : > { %5712 = vmatprep.subr.bf16.mxu1 %v10894_v57 }
 0x811   : > { %5713 = vmatpush3.bf16.msra.mxu1 %v7225_v62  ;;  %v7281_v62 = vld [vmem:[#allocation2 + $0x2b8] sm:$0xff]  }
 0x812   : > { %5718 = vmatprep.subr.bf16.mxu1 %v10894_v57 }
 0x814   : > { %5715 = vmatmul.mubr.bf16.vlgmr.msra.gmra.mrb[0].mxu1 %v3507_v61  ;;  %v4265_v61 = vrot.slane %v10316_v0, 1 }
 0x815   : > { %5719 = vmatpush3.bf16.msra.mxu1 %v7226_v44  ;;  %5734 = vmatprep.mubr.msk.bf16.mxu1 %vm7468_vm5, %v10894_v57  ;;  %v7282_v44 = vld [vmem:[#allocation2 + $0x2c0] sm:$0xff]  }
 0x816   : > { %5720 = vmatprep.subr.bf16.mxu1 %v10894_v57 }
 0x819   : > { %5721 = vmatpush3.bf16.msra.mxu1 %v7227_v40  ;;  %v7283_v40 = vld [vmem:[#allocation2 + $0x2c8] sm:$0xff]  }
 0x81a   : > { %5722 = vmatprep.subr.bf16.mxu1 %v10894_v57 }
 0x81d   : > { %5723 = vmatpush3.bf16.msra.mxu1 %v7228_v54  ;;  %v7284_v54 = vld [vmem:[#allocation2 + $0x2d0] sm:$0xff]  }
 0x81e   : > { %5724 = vmatprep.subr.bf16.mxu1 %v10894_v57 }
 0x821   : > { %5725 = vmatpush3.bf16.msra.mxu1 %v7229_v5  ;;  %v7285_v5 = vld [vmem:[#allocation2 + $0x2d8] sm:$0xff]  }
 0x822   : > { %5726 = vmatprep.subr.bf16.mxu1 %v10894_v57 }
 0x825   : > { %5727 = vmatpush3.bf16.msra.mxu1 %v7230_v27  ;;  %v7286_v27 = vld [vmem:[#allocation2 + $0x2e0] sm:$0xff]  }
 0x826   : > { %5728 = vmatprep.subr.bf16.mxu1 %v10894_v57 }
 0x829   : > { %5729 = vmatpush3.bf16.msra.mxu1 %v7231_v56  ;;  %v7287_v56 = vld [vmem:[#allocation2 + $0x2e8] sm:$0xff]  }
 0x82a   : > { %5730 = vmatprep.subr.bf16.mxu1 %v10894_v57 }
 0x82d   : > { %5731 = vmatpush3.bf16.msra.mxu1 %v7232_v11  ;;  %v7288_v11 = vld [vmem:[#allocation2 + $0x2f0] sm:$0xff]  }
 0x82e   : > { %5732 = vmatprep.subr.bf16.mxu1 %v10894_v57 }
 0x831   : > { %5733 = vmatpush3.bf16.msra.mxu1 %v7233_v28  ;;  %v7289_v28 = vld [vmem:[#allocation2 + $0x2f8] sm:$0xff]  }
 0x832   : > { %5738 = vmatprep.subr.bf16.mxu1 %v10894_v57 }
 0x834   : > { %5735 = vmatmul.mubr.bf16.vlgmr.msra.gmra.mrb[0].mxu1 %v3615_v8  ;;  %v4373_v8 = vrot.slane %v10330_v22, 1 }
 0x835   : > { %5739 = vmatpush3.bf16.msra.mxu1 %v7234_v14  ;;  %5754 = vmatprep.mubr.msk.bf16.mxu1 %vm7468_vm5, %v10894_v57  ;;  %v7290_v14 = vld [vmem:[#allocation2 + $0x300] sm:$0xff]  }
 0x836   : > { %5740 = vmatprep.subr.bf16.mxu1 %v10894_v57 }
 0x839   : > { %5741 = vmatpush3.bf16.msra.mxu1 %v7235_v47  ;;  %v7322_v47 = vld [vmem:[%s10528_s8] sm:$0xff]  }
 0x83a   : > { %5742 = vmatprep.subr.bf16.mxu1 %v10894_v57  ;;  %5959 = vmatpush3.bf16.msra.mxu0 %v7322_v47 }
 0x83b   : > { %5960 = vmatprep.subr.bf16.mxu0 %v10894_v57 }
 0x83d   : > { %5743 = vmatpush3.bf16.msra.mxu1 %v7236_v6  ;;  %v7291_v6 = vld [vmem:[#allocation2 + $0x308] sm:$0xff]  }
 0x83e   : > { %5744 = vmatprep.subr.bf16.mxu1 %v10894_v57 }
 0x841   : > { %5745 = vmatpush3.bf16.msra.mxu1 %v7237_v1  ;;  %v7323_v1 = vld [vmem:[%s10528_s8 + $0x8] sm:$0xff]  }
 0x842   : > { %5746 = vmatprep.subr.bf16.mxu1 %v10894_v57  ;;  %5961 = vmatpush3.bf16.msra.mxu0 %v7323_v1 }
 0x843   : > { %5962 = vmatprep.subr.bf16.mxu0 %v10894_v57 }
 0x845   : > { %5747 = vmatpush3.bf16.msra.mxu1 %v7238_v29  ;;  %v7292_v29 = vld [vmem:[#allocation2 + $0x310] sm:$0xff]  }
 0x846   : > { %5748 = vmatprep.subr.bf16.mxu1 %v10894_v57 }
 0x849   : > { %5749 = vmatpush3.bf16.msra.mxu1 %v7239_v32  ;;  %v7324_v32 = vld [vmem:[%s10528_s8 + $0x10] sm:$0xff]  }
 0x84a   : > { %5750 = vmatprep.subr.bf16.mxu1 %v10894_v57  ;;  %5963 = vmatpush3.bf16.msra.mxu0 %v7324_v32 }
 0x84b   : > { %5964 = vmatprep.subr.bf16.mxu0 %v10894_v57 }
 0x84d   : > { %5751 = vmatpush3.bf16.msra.mxu1 %v7240_v15  ;;  %v7293_v15 = vld [vmem:[#allocation2 + $0x318] sm:$0xff]  }
 0x84e   : > { %5752 = vmatprep.subr.bf16.mxu1 %v10894_v57 }
 0x851   : > { %5753 = vmatpush3.bf16.msra.mxu1 %v7241_v33  ;;  %v7325_v33 = vld [vmem:[%s10528_s8 + $0x18] sm:$0xff]  }
 0x852   : > { %5758 = vmatprep.subr.bf16.mxu1 %v10894_v57  ;;  %5965 = vmatpush3.bf16.msra.mxu0 %v7325_v33 }
 0x853   : > { %5966 = vmatprep.subr.bf16.mxu0 %v10894_v57 }
 0x854   : > { %5755 = vmatmul.mubr.bf16.vlgmr.msra.gmra.mrb[0].mxu1 %v3723_v58  ;;  %v7326_v58 = vld [vmem:[%s10528_s8 + $0x20] sm:$0xff]  }
 0x855   : > { %5759 = vmatpush3.bf16.msra.mxu1 %v7242_v35  ;;  %5774 = vmatprep.mubr.msk.bf16.mxu1 %vm7468_vm5, %v10894_v57  ;;  %v7294_v35 = vld [vmem:[#allocation2 + $0x320] sm:$0xff]  }
 0x856   : > { %5760 = vmatprep.subr.bf16.mxu1 %v10894_v57  ;;  %5967 = vmatpush3.bf16.msra.mxu0 %v7326_v58 }
 0x857   : > { %5968 = vmatprep.subr.bf16.mxu0 %v10894_v57 }
 0x859   : > { %5761 = vmatpush3.bf16.msra.mxu1 %v7243_v53  ;;  %v7295_v53 = vld [vmem:[#allocation2 + $0x328] sm:$0xff]  }
 0x85a   : > { %5762 = vmatprep.subr.bf16.mxu1 %v10894_v57 }
 0x85d   : > { %5763 = vmatpush3.bf16.msra.mxu1 %v7244_v52  ;;  %v7327_v52 = vld [vmem:[%s10528_s8 + $0x28] sm:$0xff]  }
 0x85e   : > { %5764 = vmatprep.subr.bf16.mxu1 %v10894_v57  ;;  %5969 = vmatpush3.bf16.msra.mxu0 %v7327_v52 }
 0x85f   : > { %5970 = vmatprep.subr.bf16.mxu0 %v10894_v57 }
 0x861   : > { %5765 = vmatpush3.bf16.msra.mxu1 %v7245_v37  ;;  %v7296_v37 = vld [vmem:[#allocation2 + $0x330] sm:$0xff]  }
 0x862   : > { %5766 = vmatprep.subr.bf16.mxu1 %v10894_v57 }
 0x865   : > { %5767 = vmatpush3.bf16.msra.mxu1 %v7246_v20  ;;  %v7297_v20 = vld [vmem:[#allocation2 + $0x338] sm:$0xff]  }
 0x866   : > { %5768 = vmatprep.subr.bf16.mxu1 %v10894_v57 }
 0x869   : > { %5769 = vmatpush3.bf16.msra.mxu1 %v7247_v19  ;;  %v7298_v19 = vld [vmem:[#allocation2 + $0x340] sm:$0xff]  }
 0x86a   : > { %5770 = vmatprep.subr.bf16.mxu1 %v10894_v57 }
 0x86d   : > { %5771 = vmatpush3.bf16.msra.mxu1 %v7248_v16  ;;  %v4481_v16 = vrot.slane %v10316_v0, 2 }
 0x86e   : > { %5772 = vmatprep.subr.bf16.mxu1 %v10894_v57 }
 0x871   : > { %5773 = vmatpush3.bf16.msra.mxu1 %v7249_v55  ;;  %v7299_v55 = vld [vmem:[#allocation2 + $0x348] sm:$0xff]  }
 0x872   : > { %5778 = vmatprep.subr.bf16.mxu1 %v10894_v57 }
 0x874   : > { %5775 = vmatmul.mubr.bf16.vlgmr.msra.gmra.mrb[0].mxu1 %v3831_v59  ;;  %v7301_v59 = vld [vmem:[#allocation2 + $0x358] sm:$0xff]  }
 0x875   : > { %5779 = vmatpush3.bf16.msra.mxu1 %v7250_v45  ;;  %5794 = vmatprep.mubr.msk.bf16.mxu1 %vm7468_vm5, %v10894_v57  ;;  %v7300_v45 = vld [vmem:[#allocation2 + $0x350] sm:$0xff]  }
 0x876   : > { %5780 = vmatprep.subr.bf16.mxu1 %v10894_v57 }
 0x879   : > { %5781 = vmatpush3.bf16.msra.mxu1 %v7251_v23  ;;  %v7302_v23 = vld [vmem:[#allocation2 + $0x360] sm:$0xff]  }
 0x87a   : > { %5782 = vmatprep.subr.bf16.mxu1 %v10894_v57 }
 0x87d   : > { %5783 = vmatpush3.bf16.msra.mxu1 %v7252_v43  ;;  %v7303_v43 = vld [vmem:[#allocation2 + $0x368] sm:$0xff]  }
 0x87e   : > { %5784 = vmatprep.subr.bf16.mxu1 %v10894_v57 }
 0x881   : > { %5785 = vmatpush3.bf16.msra.mxu1 %v7253_v63  ;;  %v7304_v63 = vld [vmem:[#allocation2 + $0x370] sm:$0xff]  }
 0x882   : > { %5786 = vmatprep.subr.bf16.mxu1 %v10894_v57 }
 0x885   : > { %5787 = vmatpush3.bf16.msra.mxu1 %v7254_v9  ;;  %v7305_v9 = vld [vmem:[#allocation2 + $0x378] sm:$0xff]  }
 0x886   : > { %5788 = vmatprep.subr.bf16.mxu1 %v10894_v57 }
 0x889   : > { %5789 = vmatpush3.bf16.msra.mxu1 %v7255_v25  ;;  %v7306_v25 = vld [vmem:[#allocation2 + $0x380] sm:$0xff]  }
 0x88a   : > { %5790 = vmatprep.subr.bf16.mxu1 %v10894_v57 }
 0x88d   : > { %5791 = vmatpush3.bf16.msra.mxu1 %v7256_v24  ;;  %v4589_v24 = vrot.slane %v10330_v22, 2 }
 0x88e   : > { %5792 = vmatprep.subr.bf16.mxu1 %v10894_v57 }
 0x891   : > { %5793 = vmatpush3.bf16.msra.mxu1 %v7257_v46  ;;  %v7307_v46 = vld [vmem:[#allocation2 + $0x388] sm:$0xff]  }
 0x892   : > { %5798 = vmatprep.subr.bf16.mxu1 %v10894_v57 }
 0x894   : > { %5795 = vmatmul.mubr.bf16.vlgmr.msra.gmra.mrb[0].mxu1 %v3939_v36  ;;  %v7309_v36 = vld [vmem:[#allocation2 + $0x398] sm:$0xff]  }
 0x895   : > { %5799 = vmatpush3.bf16.msra.mxu1 %v7258_v30  ;;  %5814 = vmatprep.mubr.msk.bf16.mxu1 %vm7468_vm5, %v10894_v57  ;;  %v7308_v30 = vld [vmem:[#allocation2 + $0x390] sm:$0xff]  }
 0x896   : > { %5800 = vmatprep.subr.bf16.mxu1 %v10894_v57 }
 0x899   : > { %5801 = vmatpush3.bf16.msra.mxu1 %v7259_v4  ;;  %v7310_v4 = vld [vmem:[#allocation2 + $0x3a0] sm:$0xff]  }
 0x89a   : > { %5802 = vmatprep.subr.bf16.mxu1 %v10894_v57 }
 0x89d   : > { %5803 = vmatpush3.bf16.msra.mxu1 %v7260_v51  ;;  %v7311_v51 = vld [vmem:[#allocation2 + $0x3a8] sm:$0xff]  }
 0x89e   : > { %5804 = vmatprep.subr.bf16.mxu1 %v10894_v57 }
 0x8a1   : > { %5805 = vmatpush3.bf16.msra.mxu1 %v7261_v17  ;;  %v7312_v17 = vld [vmem:[#allocation2 + $0x3b0] sm:$0xff]  }
 0x8a2   : > { %5806 = vmatprep.subr.bf16.mxu1 %v10894_v57 }
 0x8a5   : > { %5807 = vmatpush3.bf16.msra.mxu1 %v7262_v10  ;;  %v7313_v10 = vld [vmem:[#allocation2 + $0x3b8] sm:$0xff]  }
 0x8a6   : > { %5808 = vmatprep.subr.bf16.mxu1 %v10894_v57 }
 0x8a9   : > { %5809 = vmatpush3.bf16.msra.mxu1 %v7263_v49  ;;  %v7314_v49 = vld [vmem:[#allocation2 + $0x3c0] sm:$0xff]  }
 0x8aa   : > { %5810 = vmatprep.subr.bf16.mxu1 %v10894_v57 }
 0x8ad   : > { %5811 = vmatpush3.bf16.msra.mxu1 %v7264_v48  ;;  %v4697_v48 = vrot.slane %v10316_v0, 3 }
 0x8ae   : > { %5812 = vmatprep.subr.bf16.mxu1 %v10894_v57 }
 0x8b1   : > { %5813 = vmatpush3.bf16.msra.mxu1 %v7265_v13  ;;  %v7315_v13 = vld [vmem:[#allocation2 + $0x3c8] sm:$0xff]  }
 0x8b2   : > { %5818 = vmatprep.subr.bf16.mxu1 %v10894_v57 }
 0x8b4   : > { %5815 = vmatmul.mubr.bf16.vlgmr.msra.gmra.mrb[0].mxu1 %v10316_v0  ;;  %v7318_v0 = vld [vmem:[#allocation2 + $0x3e0] sm:$0xff]  }
 0x8b5   : > { %5819 = vmatpush3.bf16.msra.mxu1 %v7266_v7  ;;  %5834 = vmatprep.mubr.msk.bf16.mxu1 %vm7468_vm5, %v10894_v57  ;;  %v7316_v7 = vld [vmem:[#allocation2 + $0x3d0] sm:$0xff]  }
 0x8b6   : > { %5820 = vmatprep.subr.bf16.mxu1 %v10894_v57 }
 0x8b9   : > { %5821 = vmatpush3.bf16.msra.mxu1 %v7267_v50  ;;  %v7317_v50 = vld [vmem:[#allocation2 + $0x3d8] sm:$0xff]  }
 0x8ba   : > { %5822 = vmatprep.subr.bf16.mxu1 %v10894_v57 }
 0x8bd   : > { %5823 = vmatpush3.bf16.msra.mxu1 %v7268_v38  ;;  %v7319_v38 = vld [vmem:[#allocation2 + $0x3e8] sm:$0xff]  }
 0x8be   : > { %5824 = vmatprep.subr.bf16.mxu1 %v10894_v57 }
 0x8c1   : > { %5825 = vmatpush3.bf16.msra.mxu1 %v7269_v31  ;;  %v7320_v31 = vld [vmem:[#allocation2 + $0x3f0] sm:$0xff]  }
 0x8c2   : > { %5826 = vmatprep.subr.bf16.mxu1 %v10894_v57 }
 0x8c5   : > { %5827 = vmatpush3.bf16.msra.mxu1 %v7270_v34  ;;  %v7321_v34 = vld [vmem:[#allocation2 + $0x3f8] sm:$0xff]  }
 0x8c6   : > { %5828 = vmatprep.subr.bf16.mxu1 %v10894_v57 }
 0x8c9   : > { %5829 = vmatpush3.bf16.msra.mxu1 %v7271_v2  ;;  %v4805_v2 = vrot.slane %v10330_v22, 3 }
 0x8ca   : > { %5830 = vmatprep.subr.bf16.mxu1 %v10894_v57 }
 0x8cd   : > { %5831 = vmatpush3.bf16.msra.mxu1 %v7272_v41  ;;  %v7328_v41 = vld [vmem:[%s10528_s8 + $0x30] sm:$0xff]  }
 0x8ce   : > { %5832 = vmatprep.subr.bf16.mxu1 %v10894_v57  ;;  %5971 = vmatpush3.bf16.msra.mxu0 %v7328_v41 }
 0x8cf   : > { %5972 = vmatprep.subr.bf16.mxu0 %v10894_v57 }
 0x8d1   : > { %5833 = vmatpush3.bf16.msra.mxu1 %v7273_v3  ;;  %v7329_v3 = vld [vmem:[%s10528_s8 + $0x38] sm:$0xff]  }
 0x8d2   : > { %5838 = vmatprep.subr.bf16.mxu1 %v10894_v57  ;;  %5973 = vmatpush3.bf16.msra.mxu0 %v7329_v3 }
 0x8d3   : > { %5978 = vmatprep.subr.bf16.mxu0 %v10894_v57 }
 0x8d4   : > { %5835 = vmatmul.mubr.bf16.vlgmr.msra.gmra.mrb[0].mxu1 %v10330_v22 }
 0x8d5   : > { %5839 = vmatpush3.bf16.msra.mxu1 %v7274_v12  ;;  %5854 = vmatprep.mubr.msk.bf16.mxu1 %vm7468_vm5, %v10894_v57  ;;  %v3164_v12 = vld [vmem:[%s10527_s7] sm:$0x1] }
 0x8d6   : > { %5840 = vmatprep.subr.bf16.mxu1 %v10894_v57 }
 0x8d9   : > { %5841 = vmatpush3.bf16.msra.mxu1 %v7275_v60 }
 0x8da   : > { %5842 = vmatprep.subr.bf16.mxu1 %v10894_v57 }
 0x8dd   : > { %5843 = vmatpush3.bf16.msra.mxu1 %v7276_v18 }
 0x8de   : > { %5844 = vmatprep.subr.bf16.mxu1 %v10894_v57 }
 0x8e1   : > { %5845 = vmatpush3.bf16.msra.mxu1 %v7277_v42 }
 0x8e2   : > { %5846 = vmatprep.subr.bf16.mxu1 %v10894_v57 }
 0x8e5   : > { %5847 = vmatpush3.bf16.msra.mxu1 %v7278_v21 }
 0x8e6   : > { %5848 = vmatprep.subr.bf16.mxu1 %v10894_v57 }
 0x8e9   : > { %5849 = vmatpush3.bf16.msra.mxu1 %v7279_v39 }
 0x8ea   : > { %5850 = vmatprep.subr.bf16.mxu1 %v10894_v57 }
 0x8ed   : > { %5851 = vmatpush3.bf16.msra.mxu1 %v7280_v26  ;;  %v7330_v26 = vld [vmem:[%s10530_s10] sm:$0xff]  }
 0x8ee   : > { %5852 = vmatprep.subr.bf16.mxu1 %v10894_v57 }
 0x8f1   : > { %5853 = vmatpush3.bf16.msra.mxu1 %v7281_v62 }
 0x8f2   : > { %5858 = vmatprep.subr.bf16.mxu1 %v10894_v57 }
 0x8f4   : > { %5855 = vmatmul.mubr.bf16.vlgmr.msra.gmra.mrb[0].mxu1 %v4265_v61  ;;  %v7332_v61 = vld [vmem:[%s10530_s10 + $0x10] sm:$0xff]  }
 0x8f5   : > { %5859 = vmatpush3.bf16.msra.mxu1 %v7282_v44  ;;  %5874 = vmatprep.mubr.msk.bf16.mxu1 %vm7468_vm5, %v10894_v57  ;;  %v7331_v44 = vld [vmem:[%s10530_s10 + $0x8] sm:$0xff]  }
 0x8f6   : > { %5860 = vmatprep.subr.bf16.mxu1 %v10894_v57 }
 0x8f9   : > { %5861 = vmatpush3.bf16.msra.mxu1 %v7283_v40  ;;  %v7333_v40 = vld [vmem:[%s10530_s10 + $0x18] sm:$0xff]  }
 0x8fa   : > { %5862 = vmatprep.subr.bf16.mxu1 %v10894_v57 }
 0x8fd   : > { %5863 = vmatpush3.bf16.msra.mxu1 %v7284_v54  ;;  %v7334_v54 = vld [vmem:[%s10530_s10 + $0x20] sm:$0xff]  }
 0x8fe   : > { %5864 = vmatprep.subr.bf16.mxu1 %v10894_v57 }
 0x901   : > { %5865 = vmatpush3.bf16.msra.mxu1 %v7285_v5  ;;  %v7335_v5 = vld [vmem:[%s10530_s10 + $0x28] sm:$0xff]  }
 0x902   : > { %5866 = vmatprep.subr.bf16.mxu1 %v10894_v57 }
 0x905   : > { %5867 = vmatpush3.bf16.msra.mxu1 %v7286_v27  ;;  %v7336_v27 = vld [vmem:[%s10530_s10 + $0x30] sm:$0xff]  }
 0x906   : > { %5868 = vmatprep.subr.bf16.mxu1 %v10894_v57 }
 0x909   : > { %5869 = vmatpush3.bf16.msra.mxu1 %v7287_v56  ;;  %v7337_v56 = vld [vmem:[%s10530_s10 + $0x38] sm:$0xff]  }
 0x90a   : > { %5870 = vmatprep.subr.bf16.mxu1 %v10894_v57 }
 0x90d   : > { %5871 = vmatpush3.bf16.msra.mxu1 %v7288_v11  ;;  %v4914_v11 = vld [vmem:[%s10529_s9] sm:$0x1] }
 0x90e   : > { %5872 = vmatprep.subr.bf16.mxu1 %v10894_v57 }
 0x911   : > { %5873 = vmatpush3.bf16.msra.mxu1 %v7289_v28 }
 0x912   : > { %5878 = vmatprep.subr.bf16.mxu1 %v10894_v57 }
 0x914   : > { %5875 = vmatmul.mubr.bf16.vlgmr.msra.gmra.mrb[0].mxu1 %v4373_v8 }
 0x915   : > { %5879 = vmatpush3.bf16.msra.mxu1 %v7290_v14  ;;  %5894 = vmatprep.mubr.msk.bf16.mxu1 %vm7468_vm5, %v10894_v57 }
 0x916   : > { %5880 = vmatprep.subr.bf16.mxu1 %v10894_v57 }
 0x919   : > { %5881 = vmatpush3.bf16.msra.mxu1 %v7291_v6 }
 0x91a   : > { %5882 = vmatprep.subr.bf16.mxu1 %v10894_v57 }
 0x91d   : > { %5883 = vmatpush3.bf16.msra.mxu1 %v7292_v29 }
 0x91e   : > { %5884 = vmatprep.subr.bf16.mxu1 %v10894_v57 }
 0x921   : > { %5885 = vmatpush3.bf16.msra.mxu1 %v7293_v15 }
 0x922   : > { %5886 = vmatprep.subr.bf16.mxu1 %v10894_v57 }
 0x925   : > { %5887 = vmatpush3.bf16.msra.mxu1 %v7294_v35 }
 0x926   : > { %5888 = vmatprep.subr.bf16.mxu1 %v10894_v57 }
 0x929   : > { %5889 = vmatpush3.bf16.msra.mxu1 %v7295_v53 }
 0x92a   : > { %5890 = vmatprep.subr.bf16.mxu1 %v10894_v57 }
 0x92d   : > { %5891 = vmatpush3.bf16.msra.mxu1 %v7296_v37 }
 0x92e   : > { %5892 = vmatprep.subr.bf16.mxu1 %v10894_v57 }
 0x931   : > { %5893 = vmatpush3.bf16.msra.mxu1 %v7297_v20 }
 0x932   : > { %5898 = vmatprep.subr.bf16.mxu1 %v10894_v57 }
 0x934   : > { %5895 = vmatmul.mubr.bf16.vlgmr.msra.gmra.mrb[0].mxu1 %v4481_v16 }
 0x935   : > { %5899 = vmatpush3.bf16.msra.mxu1 %v7298_v19  ;;  %5914 = vmatprep.mubr.msk.bf16.mxu1 %vm7468_vm5, %v10894_v57 }
 0x936   : > { %5900 = vmatprep.subr.bf16.mxu1 %v10894_v57 }
 0x939   : > { %5901 = vmatpush3.bf16.msra.mxu1 %v7299_v55 }
 0x93a   : > { %5902 = vmatprep.subr.bf16.mxu1 %v10894_v57 }
 0x93d   : > { %5903 = vmatpush3.bf16.msra.mxu1 %v7300_v45 }
 0x93e   : > { %5904 = vmatprep.subr.bf16.mxu1 %v10894_v57 }
 0x941   : > { %5905 = vmatpush3.bf16.msra.mxu1 %v7301_v59 }
 0x942   : > { %5906 = vmatprep.subr.bf16.mxu1 %v10894_v57 }
 0x945   : > { %5907 = vmatpush3.bf16.msra.mxu1 %v7302_v23 }
 0x946   : > { %5908 = vmatprep.subr.bf16.mxu1 %v10894_v57 }
 0x949   : > { %5909 = vmatpush3.bf16.msra.mxu1 %v7303_v43 }
 0x94a   : > { %5910 = vmatprep.subr.bf16.mxu1 %v10894_v57 }
 0x94d   : > { %5911 = vmatpush3.bf16.msra.mxu1 %v7304_v63 }
 0x94e   : > { %5912 = vmatprep.subr.bf16.mxu1 %v10894_v57 }
 0x951   : > { %5913 = vmatpush3.bf16.msra.mxu1 %v7305_v9 }
 0x952   : > { %5918 = vmatprep.subr.bf16.mxu1 %v10894_v57 }
 0x954   : > { %5915 = vmatmul.mubr.bf16.vlgmr.msra.gmra.mrb[0].mxu1 %v4589_v24 }
 0x955   : > { %5919 = vmatpush3.bf16.msra.mxu1 %v7306_v25  ;;  %5934 = vmatprep.mubr.msk.bf16.mxu1 %vm7468_vm5, %v10894_v57 }
 0x956   : > { %5920 = vmatprep.subr.bf16.mxu1 %v10894_v57 }
 0x959   : > { %5921 = vmatpush3.bf16.msra.mxu1 %v7307_v46 }
 0x95a   : > { %5922 = vmatprep.subr.bf16.mxu1 %v10894_v57 }
 0x95d   : > { %5923 = vmatpush3.bf16.msra.mxu1 %v7308_v30 }
 0x95e   : > { %5924 = vmatprep.subr.bf16.mxu1 %v10894_v57 }
 0x961   : > { %5925 = vmatpush3.bf16.msra.mxu1 %v7309_v36 }
 0x962   : > { %5926 = vmatprep.subr.bf16.mxu1 %v10894_v57 }
 0x965   : > { %5927 = vmatpush3.bf16.msra.mxu1 %v7310_v4 }
 0x966   : > { %5928 = vmatprep.subr.bf16.mxu1 %v10894_v57 }
 0x969   : > { %5929 = vmatpush3.bf16.msra.mxu1 %v7311_v51 }
 0x96a   : > { %5930 = vmatprep.subr.bf16.mxu1 %v10894_v57 }
 0x96d   : > { %5931 = vmatpush3.bf16.msra.mxu1 %v7312_v17 }
 0x96e   : > { %5932 = vmatprep.subr.bf16.mxu1 %v10894_v57 }
 0x971   : > { %5933 = vmatpush3.bf16.msra.mxu1 %v7313_v10 }
 0x972   : > { %5938 = vmatprep.subr.bf16.mxu1 %v10894_v57 }
 0x974   : > { %5935 = vmatmul.mubr.bf16.vlgmr.msra.gmra.mrb[0].mxu1 %v4697_v48 }
 0x975   : > { %5939 = vmatpush3.bf16.msra.mxu1 %v7314_v49  ;;  %5954 = vmatprep.mubr.msk.bf16.mxu1 %vm7468_vm5, %v10894_v57 }
 0x976   : > { %5940 = vmatprep.subr.bf16.mxu1 %v10894_v57 }
 0x979   : > { %5941 = vmatpush3.bf16.msra.mxu1 %v7315_v13 }
 0x97a   : > { %5942 = vmatprep.subr.bf16.mxu1 %v10894_v57 }
 0x97d   : > { %5943 = vmatpush3.bf16.msra.mxu1 %v7316_v7 }
 0x97e   : > { %5944 = vmatprep.subr.bf16.mxu1 %v10894_v57 }
 0x981   : > { %5945 = vmatpush3.bf16.msra.mxu1 %v7317_v50 }
 0x982   : > { %5946 = vmatprep.subr.bf16.mxu1 %v10894_v57 }
 0x985   : > { %5947 = vmatpush3.bf16.msra.mxu1 %v7318_v0 }
 0x986   : > { %5948 = vmatprep.subr.bf16.mxu1 %v10894_v57 }
 0x989   : > { %5949 = vmatpush3.bf16.msra.mxu1 %v7319_v38 }
 0x98a   : > { %5950 = vmatprep.subr.bf16.mxu1 %v10894_v57 }
 0x98d   : > { %5951 = vmatpush3.bf16.msra.mxu1 %v7320_v31 }
 0x98e   : > { %5952 = vmatprep.subr.bf16.mxu1 %v10894_v57 }
 0x991   : > { %5953 = vmatpush3.bf16.msra.mxu1 %v7321_v34 }
 0x994   : > { %5955 = vmatmul.mubr.bf16.vlgmr.msra.gmra.mrb[0].mxu1 %v4805_v2 }
 0xa67   : > { %v4889_v22 = vpop.f32.mrb[0].mxu1 }
 0xa68   : > { %v5998_v60 = vadd.f32 %v4889_v22, %v3164_v12  ;;  %v5956_v18 = vpop.f32.mrb[1].mxu1 }
 0xa69   : > { %v4892_v42 = vpop.f32.mrb[2].mxu1 }
 0xa6a   : > { %v4896_v21 = vmax.f32 %v5998_v60, 0.0  ;;  %v5957_v39 = vpop.f32.mrb[3].mxu1 }
 0xa6c   : > { %v4897_v62 = vpack.c.bf16 %v4896_v21, %v4896_v21 }
 0xa6e   : > { %5975 = vmatmul.mubr.bf16.vlgmr.msra.gmra.mrb[40].mxu0 %v4897_v62 }
 0xa6f   : > { %5979 = vmatpush3.bf16.msra.mxu0 %v7330_v26  ;;  %5994 = vmatprep.mubr.msk.bf16.mxu0 %vm7468_vm5, %v10894_v57 }
 0xa70   : > { %5980 = vmatprep.subr.bf16.mxu0 %v10894_v57 }
 0xa73   : > { %5981 = vmatpush3.bf16.msra.mxu0 %v7331_v44 }
 0xa74   : > { %5982 = vmatprep.subr.bf16.mxu0 %v10894_v57 }
 0xa77   : > { %5983 = vmatpush3.bf16.msra.mxu0 %v7332_v61 }
 0xa78   : > { %5984 = vmatprep.subr.bf16.mxu0 %v10894_v57 }
 0xa7b   : > { %5985 = vmatpush3.bf16.msra.mxu0 %v7333_v40 }
 0xa7c   : > { %5986 = vmatprep.subr.bf16.mxu0 %v10894_v57 }
 0xa7f   : > { %5987 = vmatpush3.bf16.msra.mxu0 %v7334_v54 }
 0xa80   : > { %5988 = vmatprep.subr.bf16.mxu0 %v10894_v57 }
 0xa83   : > { %5989 = vmatpush3.bf16.msra.mxu0 %v7335_v5 }
 0xa84   : > { %5990 = vmatprep.subr.bf16.mxu0 %v10894_v57 }
 0xa87   : > { %5991 = vmatpush3.bf16.msra.mxu0 %v7336_v27 }
 0xa88   : > { %5992 = vmatprep.subr.bf16.mxu0 %v10894_v57  ;;  %v5021_v57 = vld [vmem:[%s10531_s11] sm:$0x1] }
 0xa8b   : > { %5993 = vmatpush3.bf16.msra.mxu0 %v7337_v56 }
 0xb41   : > { %v4997_v28 = vpop.f32.mrb[40].mxu0 }
 0xb42   : > { %v4998_v14 = vadd.f32 %v4997_v28, %v4914_v11  ;;  %v5976_v8 = vpop.f32.mrb[41].mxu0 }
 0xb43   : > { %v5000_v47 = vpop.f32.mrb[42].mxu0 }
 0xb44   : > { %v5003_v6 = vmax.f32 %v4998_v14, 0.0  ;;  %v5977_v1 = vpop.f32.mrb[43].mxu0 }
 0xb46   : > { %v5004_v29 = vpack.c.bf16 %v5003_v6, %v5003_v6 }
 0xb48   : > { %5995 = vmatmul.mubr.bf16.vlgmr.msra.gmra.mrb[44].mxu0 %v5004_v29 }
 0xc1b   : > { %v5104_v32 = vpop.f32.mrb[44].mxu0 }
 0xc1c   : > { %v5105_v15 = vadd.f32 %v5104_v32, %v5021_v57  ;;  %v5996_v33 = vpop.f32.mrb[45].mxu0 }
 0xc1d   : > { %v5107_v35 = vpop.f32.mrb[46].mxu0 }
 0xc1e   : > { %5110 = vst [vmem:[%s420_s0] sm:$0x1] %v5105_v15  ;;  %v5997_v58 = vpop.f32.mrb[47].mxu0 }
 0xc1f   : > { %7386 = shalt.err (!%p7383_p7)
}
 0xc20   : > { %s7387_s27 = scalar_lea.hbm %s10478_s21, 16  ;;  %s7391_s24 = scalar_lea.hbm %s10532_s12, 32 }
 0xc21   : > { %p7388_p8 = scmp.ne.s32.totalorder %s10478_s21, %s7387_s27  ;;  %p7392_p1 = scmp.lt.u32.totalorder %s10478_s21, %s10532_s12 }
 0xc22   : > { %p7393_p0 = scmp.lt.u32.totalorder %s7391_s24, %s7387_s27  ;;  %p7395_p6 = scmp.lt.u32.totalorder %s7387_s27, %s10478_s21 }
 0xc23   : > { %p7389_p11 = pnand %p7388_p8, %p10904_p9 }
 0xc24   : > { %p7394_p5 = por %p7393_p0, %p7392_p1 }
 0xc25   : > { %p7390_p13 = pneg %p7389_p11 }
 0xc26   : > { %p7396_p10 = por %p7395_p6, %p7394_p5 }
 0xc28   : > { %p7397_p12 = pnand %p7396_p10, %p7390_p13 }
 0xc2a   : > { %7400 = shalt.err (!%p7397_p12)
}
 0xc2b   : > { %6064 = dma.vmem_to_hbm [thread:$0]  (%p10904_p9), %s10480_s1, 16, %s10478_s21, %s5112_s23  }
 0xc2c PF: > { %s10905_s26 = sld [smem:[#allocation10_spill]]  ;;  %s10906_s20 = sld [smem:[#allocation8_spill]] }
 0xc2d   : > { %s10907_s28 = sld [smem:[#allocation13_spill]] }
 0xc32   : > { %p6076_p2 = scmp.ge.s32.totalorder %s10905_s26, 2  ;;  %s5136_s0 = sand.u32 1, %s10906_s20  }
 0xc33   : > { %p10908_p3 = scmp.ne.s32.totalorder %s10907_s28, 0  ;;  %s5137_s6 = scalar_lea.sflag [#allocation4], %s5136_s0 }
 0xc35   : > { %p6071_p4 = pnand %p6076_p2, %p10908_p3 }
 0xc37   : > { %7422 = dma.done.wait (!%p6071_p4), %s5137_s6, 16  }
 0xc38   : > { %7424 = vsyncadd (!%p6071_p4), %s5137_s6, 4294967280  ;;  %s10909_s24 = sld [smem:[#allocation11_spill]]  ;;  %s10910_s14 = sld [smem:[#allocation9_spill]] }
 0xc39   : > { %s10911_s23 = sld [smem:[#allocation12_spill]]  ;;  %s10912_s21 = smov %s7431_s22 }
 0xc3e   : > { %p23_p7 = scmp.ge.s32.totalorder %s10909_s24, 4   ;;  %s10913_s22 = smov %s10910_s14 }
 0xc40   :  { %25 = sbr.rel (!%p23_p7) target bundleno = 8 (0x8), region = 123 }
 0xc47   :  { %5141 = vsyncpa [#allocation3], 1 }
 0xc48   :  { %5143 = vsyncpa [#allocation3 + $0x1], 1 }
 0xc49   :  { %5144 = vsyncpa [#allocation4], 1 }
 0xc4a   :  { %5146 = vsyncpa [#allocation4 + $0x1], 1 }

</bundles_post_ra>
